<compile_context>
chip_gen: v7x
topology: tpu7x:2x2x1
jax: 0.10.0
libtpu: 0.0.40
codegen_flags: <defaults>
</compile_context>

<pallas_src>
import jax
import jax.numpy as jnp
from jax.experimental import pallas as pl
from jax.experimental.pallas import tpu as pltpu

INPUT_DIM = 256 * 2   # 512
HL1 = 256
HL2 = 256
BN_EPS = 1e-5
VMEM_LIMIT = 32 * 1024 * 1024   # safe on v5e/v6e/v7x; tiles keep us far below it


# ----------------------------- kernels --------------------------------------

def _stats1_kernel(x_ref, w1_ref, s_ref):
    """Accumulate per-feature sum / sum-of-squares of h1 = x @ W1."""
    @pl.when(pl.program_id(0) == 0)
    def _():
        s_ref[...] = jnp.zeros_like(s_ref)
    h = jnp.dot(x_ref[...], w1_ref[...], preferred_element_type=jnp.float32)
    s_ref[...] += jnp.concatenate(
        [jnp.sum(h, axis=0, keepdims=True),
         jnp.sum(h * h, axis=0, keepdims=True)], axis=0)


def _stats2_kernel(x_ref, w1_ref, w2_ref, p1_ref, s_ref):
    """Recompute h1, apply folded BN1+ReLU, h2 = a @ W2, accumulate h2 stats."""
    @pl.when(pl.program_id(0) == 0)
    def _():
        s_ref[...] = jnp.zeros_like(s_ref)
    h1 = jnp.dot(x_ref[...], w1_ref[...], preferred_element_type=jnp.float32)
    a = jnp.maximum(h1 * p1_ref[0:1, :] + p1_ref[1:2, :], 0.0)
    h2 = jnp.dot(a.astype(jnp.bfloat16), w2_ref[...],
                 preferred_element_type=jnp.float32)
    s_ref[...] += jnp.concatenate(
        [jnp.sum(h2, axis=0, keepdims=True),
         jnp.sum(h2 * h2, axis=0, keepdims=True)], axis=0)


def _apply_kernel(x_ref, w1_ref, w2_ref, p_ref, o_ref):
    """Recompute both layers, apply folded BN1/BN2 + ReLU, write output."""
    h1 = jnp.dot(x_ref[...], w1_ref[...], preferred_element_type=jnp.float32)
    a = jnp.maximum(h1 * p_ref[0:1, :] + p_ref[1:2, :], 0.0)
    h2 = jnp.dot(a.astype(jnp.bfloat16), w2_ref[...],
                 preferred_element_type=jnp.float32)
    o_ref[...] = jnp.maximum(h2 * p_ref[2:3, :] + p_ref[3:4, :], 0.0)


# ----------------------------- wrapper ---------------------------------------

def _pick_batch_tile(B):
    assert B % 16 == 0, "batch must be a multiple of 16 (bf16 sublane tile)"
    cap = max(B // 2, 16)   # prefer >= 2 grid steps so DMA/compute can overlap
    for tb in (512, 256, 128, 64, 32, 16):
        if tb <= cap and B % tb == 0:
            return tb
    return 16


def _bn_fold(stats, gamma, beta, n):
    """stats rows: [sum, sumsq] -> (scale, shift) of the folded BN affine."""
    inv_n = jnp.float32(1.0 / n)
    mu = stats[0] * inv_n
    var = jnp.maximum(stats[1] * inv_n - mu * mu, 0.0)   # clamp: cancellation
    scale = gamma * jax.lax.rsqrt(var + BN_EPS)
    shift = beta - mu * scale
    return scale, shift


def ficlass_forward(x, w1_bf16, w2_bf16, bn):
    """Training-mode forward of FIClass. bn = {g1, be1, g2, be2} (f32)."""
    B = x.shape[0]
    tb = _pick_batch_tile(B)
    nb = B // tb
    x_bf16 = x.astype(jnp.bfloat16)          # halve the dominant HBM read

    x_spec = pl.BlockSpec((tb, INPUT_DIM), lambda i: (i, 0))
    w1_spec = pl.BlockSpec((INPUT_DIM, HL1), lambda i: (0, 0))   # VMEM-resident
    w2_spec = pl.BlockSpec((HL1, HL2), lambda i: (0, 0))         # VMEM-resident
    stats_spec = pl.BlockSpec((2, HL1), lambda i: (0, 0))        # resident accum
    cp_reduce = pltpu.CompilerParams(
        dimension_semantics=("arbitrary",), vmem_limit_bytes=VMEM_LIMIT)

    mm1_flops = 2 * B * INPUT_DIM * HL1
    mm2_flops = 2 * B * HL1 * HL2
    x_bytes = B * INPUT_DIM * 2
    w_bytes = (INPUT_DIM * HL1 + HL1 * HL2) * 2

    # -- pass 1: per-feature sum / sumsq of h1 --------------------------------
    s1 = pl.pallas_call(
        _stats1_kernel,
        out_shape=jax.ShapeDtypeStruct((2, HL1), jnp.float32),
        grid=(nb,),
        in_specs=[x_spec, w1_spec],
        out_specs=stats_spec,
        compiler_params=cp_reduce,
        cost_estimate=pl.CostEstimate(
            flops=mm1_flops + 3 * B * HL1, transcendentals=0,
            bytes_accessed=x_bytes + INPUT_DIM * HL1 * 2 + 2 * HL1 * 4),
    )(x_bf16, w1_bf16)
    scale1, shift1 = _bn_fold(s1, bn["g1"], bn["be1"], B)
    p1 = jnp.stack([scale1, shift1], axis=0)                     # (2, 256) f32

    # -- pass 2: per-feature sum / sumsq of h2 --------------------------------
    p1_spec = pl.BlockSpec((2, HL1), lambda i: (0, 0))
    s2 = pl.pallas_call(
        _stats2_kernel,
        out_shape=jax.ShapeDtypeStruct((2, HL2), jnp.float32),
        grid=(nb,),
        in_specs=[x_spec, w1_spec, w2_spec, p1_spec],
        out_specs=stats_spec,
        compiler_params=cp_reduce,
        cost_estimate=pl.CostEstimate(
            flops=mm1_flops + mm2_flops + 6 * B * HL1, transcendentals=0,
            bytes_accessed=x_bytes + w_bytes + 2 * HL1 * 4 + 2 * HL2 * 4),
    )(x_bf16, w1_bf16, w2_bf16, p1)
    scale2, shift2 = _bn_fold(s2, bn["g2"], bn["be2"], B)
    p_all = jnp.stack([scale1, shift1, scale2, shift2], axis=0)  # (4, 256) f32

    # -- pass 3: apply both folded BN+ReLU layers, write output ---------------
    p_spec = pl.BlockSpec((4, HL1), lambda i: (0, 0))
    out = pl.pallas_call(
        _apply_kernel,
        out_shape=jax.ShapeDtypeStruct((B, HL2), jnp.float32),
        grid=(nb,),
        in_specs=[x_spec, w1_spec, w2_spec, p_spec],
        out_specs=pl.BlockSpec((tb, HL2), lambda i: (i, 0)),
        compiler_params=pltpu.CompilerParams(
            dimension_semantics=("parallel",),       # both TCs on v7x
            vmem_limit_bytes=VMEM_LIMIT),
        cost_estimate=pl.CostEstimate(
            flops=mm1_flops + mm2_flops + 8 * B * HL1, transcendentals=0,
            bytes_accessed=x_bytes + w_bytes + 4 * HL1 * 4 + B * HL2 * 4),
    )(x_bf16, w1_bf16, w2_bf16, p_all)
    return out


# ----------------------------- params / demo ---------------------------------

def init_params(key):
    """Mirror PyTorch defaults: Linear U(-1/sqrt(fan_in), 1/sqrt(fan_in)),
       BatchNorm gamma=1, beta=0.  Weights stored [in, out] (pre-transposed)."""
    k1, k2, k3, k4 = jax.random.split(key, 4)
    bound1 = 1.0 / jnp.sqrt(jnp.float32(INPUT_DIM))
    bound2 = 1.0 / jnp.sqrt(jnp.float32(HL1))
    return {
        "w1": jax.random.uniform(k1, (INPUT_DIM, HL1), jnp.float32, -bound1, bound1),
        "b1": jax.random.uniform(k2, (HL1,), jnp.float32, -bound1, bound1),
        "g1": jnp.ones((HL1,), jnp.float32),
        "be1": jnp.zeros((HL1,), jnp.float32),
        "w2": jax.random.uniform(k3, (HL1, HL2), jnp.float32, -bound2, bound2),
        "b2": jax.random.uniform(k4, (HL2,), jnp.float32, -bound2, bound2),
        "g2": jnp.ones((HL2,), jnp.float32),
        "be2": jnp.zeros((HL2,), jnp.float32),
    }


if __name__ == "__main__":
    key = jax.random.PRNGKey(0)
    pkey, xkey = jax.random.split(key)
    params = init_params(pkey)

    w1b = params["w1"].astype(jnp.bfloat16)
    w2b = params["w2"].astype(jnp.bfloat16)
    bn = {"g1": params["g1"], "be1": params["be1"],
          "g2": params["g2"], "be2": params["be2"]}

    B = 256                                   # -> batch tile 128, 2 grid steps
    x = jax.random.normal(xkey, (B, INPUT_DIM), jnp.float32)

    fwd = jax.jit(ficlass_forward)
    out = jax.block_until_ready(fwd(x, w1b, w2b, bn))

    # Reference: full f32 PyTorch training-mode semantics (biases included,
    # two-pass variance).  Kernel drops the fc biases (they cancel under
    # batch-stat BN) and feeds the MXU bf16, hence the bf16-level tolerance.
    def ref(x, pr):
        h = x @ pr["w1"] + pr["b1"]
        mu = h.mean(0, keepdims=True)
        var = ((h - mu) ** 2).mean(0, keepdims=True)
        h = jnp.maximum((h - mu) / jnp.sqrt(var + BN_EPS) * pr["g1"] + pr["be1"], 0.0)
        h2 = h @ pr["w2"] + pr["b2"]
        mu2 = h2.mean(0, keepdims=True)
        var2 = ((h2 - mu2) ** 2).mean(0, keepdims=True)
        return jnp.maximum((h2 - mu2) / jnp.sqrt(var2 + BN_EPS) * pr["g2"] + pr["be2"], 0.0)

    expected = jax.block_until_ready(ref(x, params))
    assert out.shape == (B, HL2)
    max_err = float(jnp.max(jnp.abs(out - expected)))
    assert jnp.allclose(out, expected, atol=5e-2, rtol=5e-2), max_err
    print("KERNEL_OK")
</pallas_src>

<mosaic_0001>
module attributes {stable_mosaic.version = 11 : i64} {
  func.func @_stats1_kernel(%arg0: i32, %arg1: memref<128x512xbf16, #tpu.memory_space<vmem>>, %arg2: memref<512x256xbf16, #tpu.memory_space<vmem>>, %arg3: memref<2x256xf32, #tpu.memory_space<vmem>>) attributes {dimension_semantics = [#tpu.dimension_semantics<arbitrary>], iteration_bounds = array<i64: 2>, scalar_prefetch = 0 : i64, scratch_operands = 0 : i64, tpu.core_type = #tpu.core_type<tc>, window_params = [{transform_indices = @transform_0, window_bounds = array<i64: 128, 512>}, {pipeline_mode = #tpu.pipeline_mode<synchronous>, transform_indices = @transform_1, window_bounds = array<i64: 512, 256>}, {pipeline_mode = #tpu.pipeline_mode<synchronous>, transform_indices = @transform_2, window_bounds = array<i64: 2, 256>}]} {
    %c0_i32 = arith.constant 0 : i32
    %0 = arith.cmpi eq, %arg0, %c0_i32 : i32
    %1 = arith.extui %0 : i1 to i32
    %c0_i32_0 = arith.constant 0 : i32
    %2 = arith.cmpi ne, %1, %c0_i32_0 : i32
    scf.if %2 {
      %cst_10 = arith.constant 0.000000e+00 : f32
      %15 = vector.broadcast %cst_10 : f32 to vector<2x256xf32>
      %c0_11 = arith.constant 0 : index
      %c0_12 = arith.constant 0 : index
      %16 = vector.load %arg3[%c0_11, %c0_12] : memref<2x256xf32, #tpu.memory_space<vmem>>, vector<2x256xf32>
      tpu.vector_store %arg3[%c0_11, %c0_12], %15 {strides = array<i32>} : memref<2x256xf32, #tpu.memory_space<vmem>>, vector<2x256xf32>,
    } else {
    }
    %c0 = arith.constant 0 : index
    %c0_1 = arith.constant 0 : index
    %3 = vector.load %arg1[%c0, %c0_1] : memref<128x512xbf16, #tpu.memory_space<vmem>>, vector<128x512xbf16>
    %c0_2 = arith.constant 0 : index
    %c0_3 = arith.constant 0 : index
    %4 = vector.load %arg2[%c0_2, %c0_3] : memref<512x256xbf16, #tpu.memory_space<vmem>>, vector<512x256xbf16>
    %cst = arith.constant dense<0.000000e+00> : vector<128x256xf32>
    %5 = tpu.matmul %3, %4, %cst {dimension_numbers = #tpu.dot_dimension_numbers<[1], [0], [0], [1], [0, 0, 1, 1], [], []>} : vector<128x512xbf16>, vector<512x256xbf16>, vector<128x256xf32> -> vector<128x256xf32>
    %c0_4 = arith.constant 0 : index
    %c0_5 = arith.constant 0 : index
    %6 = vector.load %arg3[%c0_4, %c0_5] : memref<2x256xf32, #tpu.memory_space<vmem>>, vector<2x256xf32>
    %cst_6 = arith.constant dense<0.000000e+00> : vector<256xf32>
    %7 = vector.multi_reduction <add>, %5, %cst_6 [0] : vector<128x256xf32> to vector<256xf32>
    %8 = vector.shape_cast %7 : vector<256xf32> to vector<1x256xf32>
    %9 = arith.mulf %5, %5 : vector<128x256xf32>
    %cst_7 = arith.constant dense<0.000000e+00> : vector<256xf32>
    %10 = vector.multi_reduction <add>, %9, %cst_7 [0] : vector<128x256xf32> to vector<256xf32>
    %11 = vector.shape_cast %10 : vector<256xf32> to vector<1x256xf32>
    %12 = tpu.concatenate %8, %11 in 0 : vector<1x256xf32>, vector<1x256xf32> -> vector<2x256xf32>
    %13 = arith.addf %6, %12 : vector<2x256xf32>
    %c0_8 = arith.constant 0 : index
    %c0_9 = arith.constant 0 : index
    %14 = vector.load %arg3[%c0_8, %c0_9] : memref<2x256xf32, #tpu.memory_space<vmem>>, vector<2x256xf32>
    tpu.vector_store %arg3[%c0_8, %c0_9], %13 {strides = array<i32>} : memref<2x256xf32, #tpu.memory_space<vmem>>, vector<2x256xf32>,
    return
  }
  func.func @transform_0(%arg0: i32) -> (i32, i32) {
    %c0_i32 = arith.constant 0 : i32
    %c0_i32_0 = arith.constant 0 : i32
    return %arg0, %c0_i32 : i32, i32
  }
  func.func @transform_1(%arg0: i32) -> (i32, i32) {
    %c0_i32 = arith.constant 0 : i32
    %c0_i32_0 = arith.constant 0 : i32
    %c0_i32_1 = arith.constant 0 : i32
    return %c0_i32, %c0_i32_0 : i32, i32
  }
  func.func @transform_2(%arg0: i32) -> (i32, i32) {
    %c0_i32 = arith.constant 0 : i32
    %c0_i32_0 = arith.constant 0 : i32
    %c0_i32_1 = arith.constant 0 : i32
    return %c0_i32, %c0_i32_0 : i32, i32
  }
}

module attributes {stable_mosaic.version = 11 : i64} {
  func.func @_stats2_kernel(%arg0: i32, %arg1: memref<128x512xbf16, #tpu.memory_space<vmem>>, %arg2: memref<512x256xbf16, #tpu.memory_space<vmem>>, %arg3: memref<256x256xbf16, #tpu.memory_space<vmem>>, %arg4: memref<2x256xf32, #tpu.memory_space<vmem>>, %arg5: memref<2x256xf32, #tpu.memory_space<vmem>>) attributes {dimension_semantics = [#tpu.dimension_semantics<arbitrary>], iteration_bounds = array<i64: 2>, scalar_prefetch = 0 : i64, scratch_operands = 0 : i64, tpu.core_type = #tpu.core_type<tc>, window_params = [{transform_indices = @transform_0, window_bounds = array<i64: 128, 512>}, {pipeline_mode = #tpu.pipeline_mode<synchronous>, transform_indices = @transform_1, window_bounds = array<i64: 512, 256>}, {pipeline_mode = #tpu.pipeline_mode<synchronous>, transform_indices = @transform_2, window_bounds = array<i64: 256, 256>}, {pipeline_mode = #tpu.pipeline_mode<synchronous>, transform_indices = @transform_3, window_bounds = array<i64: 2, 256>}, {pipeline_mode = #tpu.pipeline_mode<synchronous>, transform_indices = @transform_4, window_bounds = array<i64: 2, 256>}]} {
    %c0_i32 = arith.constant 0 : i32
    %0 = arith.cmpi eq, %arg0, %c0_i32 : i32
    %1 = arith.extui %0 : i1 to i32
    %c0_i32_0 = arith.constant 0 : i32
    %2 = arith.cmpi ne, %1, %c0_i32_0 : i32
    scf.if %2 {
      %cst_17 = arith.constant 0.000000e+00 : f32
      %26 = vector.broadcast %cst_17 : f32 to vector<2x256xf32>
      %c0_18 = arith.constant 0 : index
      %c0_19 = arith.constant 0 : index
      %27 = vector.load %arg5[%c0_18, %c0_19] : memref<2x256xf32, #tpu.memory_space<vmem>>, vector<2x256xf32>
      tpu.vector_store %arg5[%c0_18, %c0_19], %26 {strides = array<i32>} : memref<2x256xf32, #tpu.memory_space<vmem>>, vector<2x256xf32>,
    } else {
    }
    %c0 = arith.constant 0 : index
    %c0_1 = arith.constant 0 : index
    %3 = vector.load %arg1[%c0, %c0_1] : memref<128x512xbf16, #tpu.memory_space<vmem>>, vector<128x512xbf16>
    %c0_2 = arith.constant 0 : index
    %c0_3 = arith.constant 0 : index
    %4 = vector.load %arg2[%c0_2, %c0_3] : memref<512x256xbf16, #tpu.memory_space<vmem>>, vector<512x256xbf16>
    %cst = arith.constant dense<0.000000e+00> : vector<128x256xf32>
    %5 = tpu.matmul %3, %4, %cst {dimension_numbers = #tpu.dot_dimension_numbers<[1], [0], [0], [1], [0, 0, 1, 1], [], []>} : vector<128x512xbf16>, vector<512x256xbf16>, vector<128x256xf32> -> vector<128x256xf32>
    %c0_4 = arith.constant 0 : index
    %c0_5 = arith.constant 0 : index
    %6 = vector.load %arg4[%c0_4, %c0_5] : memref<2x256xf32, #tpu.memory_space<vmem>>, vector<1x256xf32>
    %7 = vector.broadcast %6 : vector<1x256xf32> to vector<128x256xf32>
    %8 = arith.mulf %5, %7 : vector<128x256xf32>
    %c1 = arith.constant 1 : index
    %c0_6 = arith.constant 0 : index
    %9 = vector.load %arg4[%c1, %c0_6] : memref<2x256xf32, #tpu.memory_space<vmem>>, vector<1x256xf32>
    %10 = vector.broadcast %9 : vector<1x256xf32> to vector<128x256xf32>
    %11 = arith.addf %8, %10 : vector<128x256xf32>
    %cst_7 = arith.constant 0.000000e+00 : f32
    %12 = vector.broadcast %cst_7 : f32 to vector<128x256xf32>
    %13 = arith.maximumf %11, %12 : vector<128x256xf32>
    %14 = arith.truncf %13 : vector<128x256xf32> to vector<128x256xbf16>
    %c0_8 = arith.constant 0 : index
    %c0_9 = arith.constant 0 : index
    %15 = vector.load %arg3[%c0_8, %c0_9] : memref<256x256xbf16, #tpu.memory_space<vmem>>, vector<256x256xbf16>
    %cst_10 = arith.constant dense<0.000000e+00> : vector<128x256xf32>
    %16 = tpu.matmul %14, %15, %cst_10 {dimension_numbers = #tpu.dot_dimension_numbers<[1], [0], [0], [1], [0, 0, 1, 1], [], []>} : vector<128x256xbf16>, vector<256x256xbf16>, vector<128x256xf32> -> vector<128x256xf32>
    %c0_11 = arith.constant 0 : index
    %c0_12 = arith.constant 0 : index
    %17 = vector.load %arg5[%c0_11, %c0_12] : memref<2x256xf32, #tpu.memory_space<vmem>>, vector<2x256xf32>
    %cst_13 = arith.constant dense<0.000000e+00> : vector<256xf32>
    %18 = vector.multi_reduction <add>, %16, %cst_13 [0] : vector<128x256xf32> to vector<256xf32>
    %19 = vector.shape_cast %18 : vector<256xf32> to vector<1x256xf32>
    %20 = arith.mulf %16, %16 : vector<128x256xf32>
    %cst_14 = arith.constant dense<0.000000e+00> : vector<256xf32>
    %21 = vector.multi_reduction <add>, %20, %cst_14 [0] : vector<128x256xf32> to vector<256xf32>
    %22 = vector.shape_cast %21 : vector<256xf32> to vector<1x256xf32>
    %23 = tpu.concatenate %19, %22 in 0 : vector<1x256xf32>, vector<1x256xf32> -> vector<2x256xf32>
    %24 = arith.addf %17, %23 : vector<2x256xf32>
    %c0_15 = arith.constant 0 : index
    %c0_16 = arith.constant 0 : index
    %25 = vector.load %arg5[%c0_15, %c0_16] : memref<2x256xf32, #tpu.memory_space<vmem>>, vector<2x256xf32>
    tpu.vector_store %arg5[%c0_15, %c0_16], %24 {strides = array<i32>} : memref<2x256xf32, #tpu.memory_space<vmem>>, vector<2x256xf32>,
    return
  }
  func.func @transform_0(%arg0: i32) -> (i32, i32) {
    %c0_i32 = arith.constant 0 : i32
    %c0_i32_0 = arith.constant 0 : i32
    return %arg0, %c0_i32 : i32, i32
  }
  func.func @transform_1(%arg0: i32) -> (i32, i32) {
    %c0_i32 = arith.constant 0 : i32
    %c0_i32_0 = arith.constant 0 : i32
    %c0_i32_1 = arith.constant 0 : i32
    return %c0_i32, %c0_i32_0 : i32, i32
  }
  func.func @transform_2(%arg0: i32) -> (i32, i32) {
    %c0_i32 = arith.constant 0 : i32
    %c0_i32_0 = arith.constant 0 : i32
    %c0_i32_1 = arith.constant 0 : i32
    return %c0_i32, %c0_i32_0 : i32, i32
  }
  func.func @transform_3(%arg0: i32) -> (i32, i32) {
    %c0_i32 = arith.constant 0 : i32
    %c0_i32_0 = arith.constant 0 : i32
    %c0_i32_1 = arith.constant 0 : i32
    return %c0_i32, %c0_i32_0 : i32, i32
  }
  func.func @transform_4(%arg0: i32) -> (i32, i32) {
    %c0_i32 = arith.constant 0 : i32
    %c0_i32_0 = arith.constant 0 : i32
    %c0_i32_1 = arith.constant 0 : i32
    return %c0_i32, %c0_i32_0 : i32, i32
  }
}

module attributes {stable_mosaic.version = 11 : i64} {
  func.func @_apply_kernel(%arg0: i32, %arg1: memref<128x512xbf16, #tpu.memory_space<vmem>>, %arg2: memref<512x256xbf16, #tpu.memory_space<vmem>>, %arg3: memref<256x256xbf16, #tpu.memory_space<vmem>>, %arg4: memref<4x256xf32, #tpu.memory_space<vmem>>, %arg5: memref<128x256xf32, #tpu.memory_space<vmem>>) attributes {dimension_semantics = [#tpu.dimension_semantics<parallel>], iteration_bounds = array<i64: 2>, scalar_prefetch = 0 : i64, scratch_operands = 0 : i64, tpu.core_type = #tpu.core_type<tc>, window_params = [{transform_indices = @transform_0, window_bounds = array<i64: 128, 512>}, {pipeline_mode = #tpu.pipeline_mode<synchronous>, transform_indices = @transform_1, window_bounds = array<i64: 512, 256>}, {pipeline_mode = #tpu.pipeline_mode<synchronous>, transform_indices = @transform_2, window_bounds = array<i64: 256, 256>}, {pipeline_mode = #tpu.pipeline_mode<synchronous>, transform_indices = @transform_3, window_bounds = array<i64: 4, 256>}, {transform_indices = @transform_4, window_bounds = array<i64: 128, 256>}]} {
    %c0 = arith.constant 0 : index
    %c0_0 = arith.constant 0 : index
    %0 = vector.load %arg1[%c0, %c0_0] : memref<128x512xbf16, #tpu.memory_space<vmem>>, vector<128x512xbf16>
    %c0_1 = arith.constant 0 : index
    %c0_2 = arith.constant 0 : index
    %1 = vector.load %arg2[%c0_1, %c0_2] : memref<512x256xbf16, #tpu.memory_space<vmem>>, vector<512x256xbf16>
    %cst = arith.constant dense<0.000000e+00> : vector<128x256xf32>
    %2 = tpu.matmul %0, %1, %cst {dimension_numbers = #tpu.dot_dimension_numbers<[1], [0], [0], [1], [0, 0, 1, 1], [], []>} : vector<128x512xbf16>, vector<512x256xbf16>, vector<128x256xf32> -> vector<128x256xf32>
    %c0_3 = arith.constant 0 : index
    %c0_4 = arith.constant 0 : index
    %3 = vector.load %arg4[%c0_3, %c0_4] : memref<4x256xf32, #tpu.memory_space<vmem>>, vector<1x256xf32>
    %4 = vector.broadcast %3 : vector<1x256xf32> to vector<128x256xf32>
    %5 = arith.mulf %2, %4 : vector<128x256xf32>
    %c1 = arith.constant 1 : index
    %c0_5 = arith.constant 0 : index
    %6 = vector.load %arg4[%c1, %c0_5] : memref<4x256xf32, #tpu.memory_space<vmem>>, vector<1x256xf32>
    %7 = vector.broadcast %6 : vector<1x256xf32> to vector<128x256xf32>
    %8 = arith.addf %5, %7 : vector<128x256xf32>
    %cst_6 = arith.constant 0.000000e+00 : f32
    %9 = vector.broadcast %cst_6 : f32 to vector<128x256xf32>
    %10 = arith.maximumf %8, %9 : vector<128x256xf32>
    %11 = arith.truncf %10 : vector<128x256xf32> to vector<128x256xbf16>
    %c0_7 = arith.constant 0 : index
    %c0_8 = arith.constant 0 : index
    %12 = vector.load %arg3[%c0_7, %c0_8] : memref<256x256xbf16, #tpu.memory_space<vmem>>, vector<256x256xbf16>
    %cst_9 = arith.constant dense<0.000000e+00> : vector<128x256xf32>
    %13 = tpu.matmul %11, %12, %cst_9 {dimension_numbers = #tpu.dot_dimension_numbers<[1], [0], [0], [1], [0, 0, 1, 1], [], []>} : vector<128x256xbf16>, vector<256x256xbf16>, vector<128x256xf32> -> vector<128x256xf32>
    %c2 = arith.constant 2 : index
    %c0_10 = arith.constant 0 : index
    %14 = vector.load %arg4[%c2, %c0_10] : memref<4x256xf32, #tpu.memory_space<vmem>>, vector<1x256xf32>
    %15 = vector.broadcast %14 : vector<1x256xf32> to vector<128x256xf32>
    %16 = arith.mulf %13, %15 : vector<128x256xf32>
    %c3 = arith.constant 3 : index
    %c0_11 = arith.constant 0 : index
    %17 = vector.load %arg4[%c3, %c0_11] : memref<4x256xf32, #tpu.memory_space<vmem>>, vector<1x256xf32>
    %18 = vector.broadcast %17 : vector<1x256xf32> to vector<128x256xf32>
    %19 = arith.addf %16, %18 : vector<128x256xf32>
    %cst_12 = arith.constant 0.000000e+00 : f32
    %20 = vector.broadcast %cst_12 : f32 to vector<128x256xf32>
    %21 = arith.maximumf %19, %20 : vector<128x256xf32>
    %c0_13 = arith.constant 0 : index
    %c0_14 = arith.constant 0 : index
    %22 = vector.load %arg5[%c0_13, %c0_14] : memref<128x256xf32, #tpu.memory_space<vmem>>, vector<128x256xf32>
    tpu.vector_store %arg5[%c0_13, %c0_14], %21 {strides = array<i32>} : memref<128x256xf32, #tpu.memory_space<vmem>>, vector<128x256xf32>,
    return
  }
  func.func @transform_0(%arg0: i32) -> (i32, i32) {
    %c0_i32 = arith.constant 0 : i32
    %c0_i32_0 = arith.constant 0 : i32
    return %arg0, %c0_i32 : i32, i32
  }
  func.func @transform_1(%arg0: i32) -> (i32, i32) {
    %c0_i32 = arith.constant 0 : i32
    %c0_i32_0 = arith.constant 0 : i32
    %c0_i32_1 = arith.constant 0 : i32
    return %c0_i32, %c0_i32_0 : i32, i32
  }
  func.func @transform_2(%arg0: i32) -> (i32, i32) {
    %c0_i32 = arith.constant 0 : i32
    %c0_i32_0 = arith.constant 0 : i32
    %c0_i32_1 = arith.constant 0 : i32
    return %c0_i32, %c0_i32_0 : i32, i32
  }
  func.func @transform_3(%arg0: i32) -> (i32, i32) {
    %c0_i32 = arith.constant 0 : i32
    %c0_i32_0 = arith.constant 0 : i32
    %c0_i32_1 = arith.constant 0 : i32
    return %c0_i32, %c0_i32_0 : i32, i32
  }
  func.func @transform_4(%arg0: i32) -> (i32, i32) {
    %c0_i32 = arith.constant 0 : i32
    %c0_i32_0 = arith.constant 0 : i32
    return %arg0, %c0_i32 : i32, i32
  }
}

</mosaic_0001>

<bundles_post_ra>
// kernel: ficlass_forward.3
= control target key start
LH: loop header
LB: loop body
LE: loop exit
PB: predicated region body
PF: predicated region fallthrough
CT: control target
= control target key end

     0   :  { %s1420_s9 = smov 0   ;;  %s1669_s0 = inlined_call_operand.vmem [shape: bf16[256,512], index: 0, kind: input, shape index: {}]   ;;  %s1670_s1 = inlined_call_operand.vmem [shape: bf16[512,256], index: 1, kind: input, shape index: {}]   ;;  %s1671_s2 = inlined_call_operand.vmem [shape: f32[2,256], index: 2, kind: output, shape index: {}]  }
   0x1 LB: > { %s1102_s10 = sadd.s32 4294967295, %s1401_s9   ;;  %p1105_p0 = scmp.ge.s32.totalorder %s1401_s9, 1  ;;  %s1401_s9 = sphi %s1420_s9, %s12_s9  }
   0x2   : > { %p109_p1 = scmp.lt.s32.totalorder %s1401_s9, 3 }
   0x4   : > { %p110_p2 = pnand %p1105_p0, %p109_p1 }
   0x5   : > { %s1106_s11 = sshll.u32 (!%p110_p2), %s1102_s10, 4  ;;  %p1109_p4 = scmp.ne.s32.totalorder (!%p110_p2), %s1102_s10, 0 }
   0x6   : > { %113 = sbr.rel (%p110_p2) target bundleno = 383 (0x17f), region = 28  ;;  %p128_p3 = scmp.lt.s32.totalorder (!%p110_p2), %s1106_s11, 31 }
   0xd   : > { %s1673_s11 = smov (!%p128_p3, %s1106_s11), 31  ;;  %137 = sbr.rel (%p1109_p4) target bundleno = 20 (0x14), region = 32 }
   0xe   : > { %s1208_s12 = sshll.u32 %s1673_s11, 4  ;;  %v1403_v0 = vmov (!%p1109_p4), 0.0  }
   0xf   : > { %s1431_s15 = scalar_lea.vmem %s1669_s0, %s1208_s12  ;;  %138 = vst [vmem:[%s1671_s2] sm:$0xf] (!%p1109_p4), %v1403_v0 }
  0x14 PF: > { %v1251_v1 = vld [vmem:[%s1670_s1 + $0x4] ss:$8 sps:$4 sm:$0xff]   ;;  %v1255_v3 = vld [vmem:[%s1670_s1] ss:$8 sps:$4 sm:$0xff]   ;;  %v1257_v5 = vld [vmem:[%s1670_s1 + $0x14] ss:$8 sps:$4 sm:$0xff]  }
  0x15   : > { %v1253_v2 = vld [vmem:[%s1670_s1 + $0x104] ss:$8 sps:$4 sm:$0xff]   ;;  %715 = vmatprep.subr.bf16.mxu1 %v1251_v1  ;;  %v1256_v4 = vld [vmem:[%s1670_s1 + $0x100] ss:$8 sps:$4 sm:$0xff]   ;;  %v1259_v6 = vld [vmem:[%s1670_s1 + $0x114] ss:$8 sps:$4 sm:$0xff]  }
  0x16   : > { %828 = vmatprep.subr.bf16.mxu0 %v1253_v2  ;;  %716 = vmatpush1.bf16.msra.mxu1 %v1255_v3  ;;  %v1261_v7 = vld [vmem:[%s1670_s1 + $0x10] ss:$8 sps:$4 sm:$0xff]   ;;  %v1263_v9 = vld [vmem:[%s1670_s1 + $0x24] ss:$8 sps:$4 sm:$0xff]   ;;  %v1267_v11 = vld [vmem:[%s1670_s1 + $0x20] ss:$8 sps:$4 sm:$0xff]  }
  0x17   : > { %829 = vmatpush1.bf16.msra.mxu0 %v1256_v4  ;;  %717 = vmatprep.subr.bf16.mxu1 %v1257_v5  ;;  %v1262_v8 = vld [vmem:[%s1670_s1 + $0x110] ss:$8 sps:$4 sm:$0xff]   ;;  %v1265_v10 = vld [vmem:[%s1670_s1 + $0x124] ss:$8 sps:$4 sm:$0xff]   ;;  %v1268_v12 = vld [vmem:[%s1670_s1 + $0x120] ss:$8 sps:$4 sm:$0xff]  }
  0x18   : > { %830 = vmatprep.subr.bf16.mxu0 %v1259_v6  ;;  %v1269_v13 = vld [vmem:[%s1670_s1 + $0x34] ss:$8 sps:$4 sm:$0xff]   ;;  %v1273_v15 = vld [vmem:[%s1670_s1 + $0x30] ss:$8 sps:$4 sm:$0xff]   ;;  %v1275_v17 = vld [vmem:[%s1670_s1 + $0x44] ss:$8 sps:$4 sm:$0xff]  }
  0x19   : > { %v1271_v14 = vld [vmem:[%s1670_s1 + $0x134] ss:$8 sps:$4 sm:$0xff]   ;;  %v1274_v16 = vld [vmem:[%s1670_s1 + $0x130] ss:$8 sps:$4 sm:$0xff]   ;;  %v1277_v18 = vld [vmem:[%s1670_s1 + $0x144] ss:$8 sps:$4 sm:$0xff]  }
  0x1a   : > { %718 = vmatpush1.bf16.msra.mxu1 %v1261_v7  ;;  %v1279_v19 = vld [vmem:[%s1670_s1 + $0x40] ss:$8 sps:$4 sm:$0xff]   ;;  %v1281_v21 = vld [vmem:[%s1670_s1 + $0x54] ss:$8 sps:$4 sm:$0xff]   ;;  %v1285_v23 = vld [vmem:[%s1670_s1 + $0x50] ss:$8 sps:$4 sm:$0xff]  }
  0x1b   : > { %831 = vmatpush1.bf16.msra.mxu0 %v1262_v8  ;;  %719 = vmatprep.subr.bf16.mxu1 %v1263_v9  ;;  %v1280_v20 = vld [vmem:[%s1670_s1 + $0x140] ss:$8 sps:$4 sm:$0xff]   ;;  %v1283_v22 = vld [vmem:[%s1670_s1 + $0x154] ss:$8 sps:$4 sm:$0xff]   ;;  %v1286_v24 = vld [vmem:[%s1670_s1 + $0x150] ss:$8 sps:$4 sm:$0xff]  }
  0x1c   : > { %832 = vmatprep.subr.bf16.mxu0 %v1265_v10  ;;  %v1287_v25 = vld [vmem:[%s1670_s1 + $0x64] ss:$8 sps:$4 sm:$0xff]   ;;  %v1291_v27 = vld [vmem:[%s1670_s1 + $0x60] ss:$8 sps:$4 sm:$0xff]   ;;  %v1293_v29 = vld [vmem:[%s1670_s1 + $0x74] ss:$8 sps:$4 sm:$0xff]  }
  0x1d   : > { %v1289_v26 = vld [vmem:[%s1670_s1 + $0x164] ss:$8 sps:$4 sm:$0xff]   ;;  %v1292_v28 = vld [vmem:[%s1670_s1 + $0x160] ss:$8 sps:$4 sm:$0xff]   ;;  %v1295_v30 = vld [vmem:[%s1670_s1 + $0x174] ss:$8 sps:$4 sm:$0xff]  }
  0x1e   : > { %720 = vmatpush1.bf16.msra.mxu1 %v1267_v11  ;;  %v1297_v31 = vld [vmem:[%s1670_s1 + $0x70] ss:$8 sps:$4 sm:$0xff]   ;;  %v1299_v33 = vld [vmem:[%s1670_s1 + $0x84] ss:$8 sps:$4 sm:$0xff]   ;;  %v1303_v35 = vld [vmem:[%s1670_s1 + $0x80] ss:$8 sps:$4 sm:$0xff]  }
  0x1f   : > { %833 = vmatpush1.bf16.msra.mxu0 %v1268_v12  ;;  %721 = vmatprep.subr.bf16.mxu1 %v1269_v13  ;;  %v1298_v32 = vld [vmem:[%s1670_s1 + $0x170] ss:$8 sps:$4 sm:$0xff]   ;;  %v1301_v34 = vld [vmem:[%s1670_s1 + $0x184] ss:$8 sps:$4 sm:$0xff]   ;;  %v1304_v36 = vld [vmem:[%s1670_s1 + $0x180] ss:$8 sps:$4 sm:$0xff]  }
  0x20   : > { %834 = vmatprep.subr.bf16.mxu0 %v1271_v14  ;;  %v1305_v37 = vld [vmem:[%s1670_s1 + $0x94] ss:$8 sps:$4 sm:$0xff]   ;;  %v1309_v39 = vld [vmem:[%s1670_s1 + $0x90] ss:$8 sps:$4 sm:$0xff]   ;;  %v1311_v41 = vld [vmem:[%s1670_s1 + $0xa4] ss:$8 sps:$4 sm:$0xff]  }
  0x21   : > { %v1307_v38 = vld [vmem:[%s1670_s1 + $0x194] ss:$8 sps:$4 sm:$0xff]   ;;  %v1310_v40 = vld [vmem:[%s1670_s1 + $0x190] ss:$8 sps:$4 sm:$0xff]   ;;  %v1313_v42 = vld [vmem:[%s1670_s1 + $0x1a4] ss:$8 sps:$4 sm:$0xff]  }
  0x22   : > { %722 = vmatpush1.bf16.msra.mxu1 %v1273_v15  ;;  %v1315_v43 = vld [vmem:[%s1670_s1 + $0xa0] ss:$8 sps:$4 sm:$0xff]   ;;  %v1317_v45 = vld [vmem:[%s1670_s1 + $0xb4] ss:$8 sps:$4 sm:$0xff]   ;;  %v1321_v47 = vld [vmem:[%s1670_s1 + $0xb0] ss:$8 sps:$4 sm:$0xff]  }
  0x23   : > { %835 = vmatpush1.bf16.msra.mxu0 %v1274_v16  ;;  %723 = vmatprep.subr.bf16.mxu1 %v1275_v17  ;;  %v1316_v44 = vld [vmem:[%s1670_s1 + $0x1a0] ss:$8 sps:$4 sm:$0xff]   ;;  %v1319_v46 = vld [vmem:[%s1670_s1 + $0x1b4] ss:$8 sps:$4 sm:$0xff]   ;;  %v1322_v48 = vld [vmem:[%s1670_s1 + $0x1b0] ss:$8 sps:$4 sm:$0xff]  }
  0x24   : > { %836 = vmatprep.subr.bf16.mxu0 %v1277_v18  ;;  %v1323_v49 = vld [vmem:[%s1670_s1 + $0xc4] ss:$8 sps:$4 sm:$0xff]   ;;  %v1327_v53 = vld [vmem:[%s1670_s1 + $0xc0] ss:$8 sps:$4 sm:$0xff]   ;;  %v1329_v55 = vld [vmem:[%s1670_s1 + $0xd4] ss:$8 sps:$4 sm:$0xff]  }
  0x25   : > { %v1349_v50 = vld [vmem:[%s1431_s15 + $0x4] ss:$16 sps:$4 sm:$0xff]   ;;  %v1352_v52 = vld [vmem:[%s1431_s15 + $0xc] ss:$16 sps:$4 sm:$0xff]   ;;  %v1328_v54 = vld [vmem:[%s1670_s1 + $0x1c0] ss:$8 sps:$4 sm:$0xff]  }
  0x26   : > { %724 = vmatpush1.bf16.msra.mxu1 %v1279_v19  ;;  %v1325_v51 = vld [vmem:[%s1670_s1 + $0x1c4] ss:$8 sps:$4 sm:$0xff]   ;;  %747 = vmatprep.mubr.bf16.mxu1 %v1349_v50  ;;  %v1331_v56 = vld [vmem:[%s1670_s1 + $0x1d4] ss:$8 sps:$4 sm:$0xff]   ;;  %v1333_v57 = vld [vmem:[%s1670_s1 + $0xd0] ss:$8 sps:$4 sm:$0xff]  }
  0x27   : > { %837 = vmatpush1.bf16.msra.mxu0 %v1280_v20  ;;  %725 = vmatprep.subr.bf16.mxu1 %v1281_v21  ;;  %v1334_v58 = vld [vmem:[%s1670_s1 + $0x1d0] ss:$8 sps:$4 sm:$0xff]   ;;  %v1335_v59 = vld [vmem:[%s1670_s1 + $0xe4] ss:$8 sps:$4 sm:$0xff]   ;;  %v1339_v61 = vld [vmem:[%s1670_s1 + $0xe0] ss:$8 sps:$4 sm:$0xff]  }
  0x28   : > { %838 = vmatprep.subr.bf16.mxu0 %v1283_v22  ;;  %860 = vmatprep.mubr.bf16.mxu0 %v1352_v52  ;;  %v1337_v60 = vld [vmem:[%s1670_s1 + $0x1e4] ss:$8 sps:$4 sm:$0xff]   ;;  %v1340_v62 = vld [vmem:[%s1670_s1 + $0x1e0] ss:$8 sps:$4 sm:$0xff]   ;;  %v1341_v63 = vld [vmem:[%s1670_s1 + $0xf4] ss:$8 sps:$4 sm:$0xff]  }
  0x29   : > { %v1343_v0 = vld [vmem:[%s1670_s1 + $0x1f4] ss:$8 sps:$4 sm:$0xff]   ;;  %v1345_v1 = vld [vmem:[%s1670_s1 + $0xf0] ss:$8 sps:$4 sm:$0xff]   ;;  %vm1058_vm0 = vcmask 1040384  }
  0x2a   : > { %726 = vmatpush1.bf16.msra.mxu1 %v1285_v23  ;;  %v1346_v2 = vld [vmem:[%s1670_s1 + $0x1f0] ss:$8 sps:$4 sm:$0xff]   ;;  %v1353_v5 = vld [vmem:[%s1431_s15 + $0x24] ss:$16 sps:$4 sm:$0xff]   ;;  %v1355_v6 = vld [vmem:[%s1431_s15 + $0x2c] ss:$16 sps:$4 sm:$0xff]  }
  0x2b   : > { %839 = vmatpush1.bf16.msra.mxu0 %v1286_v24  ;;  %727 = vmatprep.subr.bf16.mxu1 %v1287_v25  ;;  %v1347_v3 = vld [vmem:[%s1431_s15] ss:$16 sps:$4 sm:$0xff]   ;;  %v1350_v4 = vld [vmem:[%s1431_s15 + $0x8] ss:$16 sps:$4 sm:$0xff]   ;;  %v1359_v9 = vld [vmem:[%s1431_s15 + $0x44] ss:$16 sps:$4 sm:$0xff]  }
  0x2c   : > { %840 = vmatprep.subr.bf16.mxu0 %v1289_v26  ;;  %v1357_v7 = vld [vmem:[%s1431_s15 + $0x20] ss:$16 sps:$4 sm:$0xff]   ;;  %v1358_v8 = vld [vmem:[%s1431_s15 + $0x28] ss:$16 sps:$4 sm:$0xff]   ;;  %v1361_v10 = vld [vmem:[%s1431_s15 + $0x4c] ss:$16 sps:$4 sm:$0xff]  }
  0x2d   : > { %v1363_v11 = vld [vmem:[%s1431_s15 + $0x40] ss:$16 sps:$4 sm:$0xff]   ;;  %v1364_v12 = vld [vmem:[%s1431_s15 + $0x48] ss:$16 sps:$4 sm:$0xff]   ;;  %v1365_v13 = vld [vmem:[%s1431_s15 + $0x64] ss:$16 sps:$4 sm:$0xff]  }
  0x2e   : > { %728 = vmatpush1.bf16.msra.mxu1 %v1291_v27  ;;  %v1367_v14 = vld [vmem:[%s1431_s15 + $0x6c] ss:$16 sps:$4 sm:$0xff]   ;;  %v1369_v15 = vld [vmem:[%s1431_s15 + $0x60] ss:$16 sps:$4 sm:$0xff]   ;;  %v1370_v16 = vld [vmem:[%s1431_s15 + $0x68] ss:$16 sps:$4 sm:$0xff]  }
  0x2f   : > { %841 = vmatpush1.bf16.msra.mxu0 %v1292_v28  ;;  %729 = vmatprep.subr.bf16.mxu1 %v1293_v29  ;;  %v1371_v17 = vld [vmem:[%s1431_s15 + $0x84] ss:$16 sps:$4 sm:$0xff]   ;;  %v1373_v18 = vld [vmem:[%s1431_s15 + $0x8c] ss:$16 sps:$4 sm:$0xff]   ;;  %v1375_v19 = vld [vmem:[%s1431_s15 + $0x80] ss:$16 sps:$4 sm:$0xff]  }
  0x30   : > { %842 = vmatprep.subr.bf16.mxu0 %v1295_v30  ;;  %v1376_v20 = vld [vmem:[%s1431_s15 + $0x88] ss:$16 sps:$4 sm:$0xff]   ;;  %v1377_v21 = vld [vmem:[%s1431_s15 + $0xa4] ss:$16 sps:$4 sm:$0xff]   ;;  %v1379_v22 = vld [vmem:[%s1431_s15 + $0xac] ss:$16 sps:$4 sm:$0xff]  }
  0x31   : > { %v1381_v23 = vld [vmem:[%s1431_s15 + $0xa0] ss:$16 sps:$4 sm:$0xff]   ;;  %v1382_v24 = vld [vmem:[%s1431_s15 + $0xa8] ss:$16 sps:$4 sm:$0xff]   ;;  %v1383_v25 = vld [vmem:[%s1431_s15 + $0xc4] ss:$16 sps:$4 sm:$0xff]  }
  0x32   : > { %730 = vmatpush1.bf16.msra.mxu1 %v1297_v31  ;;  %v1385_v26 = vld [vmem:[%s1431_s15 + $0xcc] ss:$16 sps:$4 sm:$0xff]   ;;  %v1387_v27 = vld [vmem:[%s1431_s15 + $0xc0] ss:$16 sps:$4 sm:$0xff]   ;;  %v1388_v28 = vld [vmem:[%s1431_s15 + $0xc8] ss:$16 sps:$4 sm:$0xff]  }
  0x33   : > { %843 = vmatpush1.bf16.msra.mxu0 %v1298_v32  ;;  %731 = vmatprep.subr.bf16.mxu1 %v1299_v33  ;;  %v1389_v29 = vld [vmem:[%s1431_s15 + $0xe4] ss:$16 sps:$4 sm:$0xff]   ;;  %v1391_v30 = vld [vmem:[%s1431_s15 + $0xec] ss:$16 sps:$4 sm:$0xff]   ;;  %v1393_v31 = vld [vmem:[%s1431_s15 + $0xe0] ss:$16 sps:$4 sm:$0xff]  }
  0x34   : > { %844 = vmatprep.subr.bf16.mxu0 %v1301_v34  ;;  %v1394_v32 = vld [vmem:[%s1431_s15 + $0xe8] ss:$16 sps:$4 sm:$0xff]  }
  0x36   : > { %732 = vmatpush1.bf16.msra.mxu1 %v1303_v35 }
  0x37   : > { %845 = vmatpush1.bf16.msra.mxu0 %v1304_v36  ;;  %733 = vmatprep.subr.bf16.mxu1 %v1305_v37 }
  0x38   : > { %846 = vmatprep.subr.bf16.mxu0 %v1307_v38 }
  0x3a   : > { %734 = vmatpush1.bf16.msra.mxu1 %v1309_v39 }
  0x3b   : > { %847 = vmatpush1.bf16.msra.mxu0 %v1310_v40  ;;  %735 = vmatprep.subr.bf16.mxu1 %v1311_v41 }
  0x3c   : > { %848 = vmatprep.subr.bf16.mxu0 %v1313_v42 }
  0x3e   : > { %736 = vmatpush1.bf16.msra.mxu1 %v1315_v43 }
  0x3f   : > { %849 = vmatpush1.bf16.msra.mxu0 %v1316_v44  ;;  %737 = vmatprep.subr.bf16.mxu1 %v1317_v45 }
  0x40   : > { %850 = vmatprep.subr.bf16.mxu0 %v1319_v46 }
  0x42   : > { %738 = vmatpush1.bf16.msra.mxu1 %v1321_v47 }
  0x43   : > { %851 = vmatpush1.bf16.msra.mxu0 %v1322_v48  ;;  %739 = vmatprep.subr.bf16.mxu1 %v1323_v49 }
  0x44   : > { %852 = vmatprep.subr.bf16.mxu0 %v1325_v51 }
  0x46   : > { %740 = vmatpush1.bf16.msra.mxu1 %v1327_v53 }
  0x47   : > { %853 = vmatpush1.bf16.msra.mxu0 %v1328_v54  ;;  %741 = vmatprep.subr.bf16.mxu1 %v1329_v55 }
  0x48   : > { %854 = vmatprep.subr.bf16.mxu0 %v1331_v56 }
  0x4a   : > { %742 = vmatpush1.bf16.msra.mxu1 %v1333_v57 }
  0x4b   : > { %855 = vmatpush1.bf16.msra.mxu0 %v1334_v58  ;;  %743 = vmatprep.subr.bf16.mxu1 %v1335_v59 }
  0x4c   : > { %856 = vmatprep.subr.bf16.mxu0 %v1337_v60 }
  0x4e   : > { %744 = vmatpush1.bf16.msra.mxu1 %v1339_v61 }
  0x4f   : > { %857 = vmatpush1.bf16.msra.mxu0 %v1340_v62  ;;  %745 = vmatprep.subr.bf16.mxu1 %v1341_v63 }
  0x50   : > { %858 = vmatprep.subr.bf16.mxu0 %v1343_v0 }
  0x52   : > { %746 = vmatpush1.bf16.msra.mxu1 %v1345_v1 }
  0x53   : > { %859 = vmatpush1.bf16.msra.mxu0 %v1346_v2 }
  0x55   : > { %748 = vmatmul.mubr.bf16.vlgmr.msra.gmra.mrb[0].mxu1 %v1347_v3 }
  0x56   : > { %861 = vmatmul.mubr.bf16.vlgmr.msra.gmra.mrb[0].mxu0 %v1350_v4  ;;  %757 = vmatprep.mubr.bf16.mxu1 %v1353_v5 }
  0x57   : > { %870 = vmatprep.mubr.bf16.mxu0 %v1355_v6 }
  0x5d   : > { %758 = vmatmul.mubr.bf16.gmra.mrb[4].mxu1 %v1357_v7 }
  0x5e   : > { %871 = vmatmul.mubr.bf16.gmra.mrb[4].mxu0 %v1358_v8  ;;  %767 = vmatprep.mubr.bf16.mxu1 %v1359_v9 }
  0x5f   : > { %880 = vmatprep.mubr.bf16.mxu0 %v1361_v10 }
  0x65   : > { %768 = vmatmul.mubr.bf16.gmra.mrb[8].mxu1 %v1363_v11 }
  0x66   : > { %881 = vmatmul.mubr.bf16.gmra.mrb[8].mxu0 %v1364_v12  ;;  %777 = vmatprep.mubr.bf16.mxu1 %v1365_v13 }
  0x67   : > { %890 = vmatprep.mubr.bf16.mxu0 %v1367_v14 }
  0x6d   : > { %778 = vmatmul.mubr.bf16.gmra.mrb[12].mxu1 %v1369_v15 }
  0x6e   : > { %891 = vmatmul.mubr.bf16.gmra.mrb[12].mxu0 %v1370_v16  ;;  %787 = vmatprep.mubr.bf16.mxu1 %v1371_v17 }
  0x6f   : > { %900 = vmatprep.mubr.bf16.mxu0 %v1373_v18 }
  0x75   : > { %788 = vmatmul.mubr.bf16.gmra.mrb[16].mxu1 %v1375_v19 }
  0x76   : > { %901 = vmatmul.mubr.bf16.gmra.mrb[16].mxu0 %v1376_v20  ;;  %797 = vmatprep.mubr.bf16.mxu1 %v1377_v21 }
  0x77   : > { %910 = vmatprep.mubr.bf16.mxu0 %v1379_v22 }
  0x7d   : > { %798 = vmatmul.mubr.bf16.gmra.mrb[20].mxu1 %v1381_v23 }
  0x7e   : > { %911 = vmatmul.mubr.bf16.gmra.mrb[20].mxu0 %v1382_v24  ;;  %807 = vmatprep.mubr.bf16.mxu1 %v1383_v25 }
  0x7f   : > { %920 = vmatprep.mubr.bf16.mxu0 %v1385_v26 }
  0x85   : > { %808 = vmatmul.mubr.bf16.gmra.mrb[24].mxu1 %v1387_v27 }
  0x86   : > { %921 = vmatmul.mubr.bf16.gmra.mrb[24].mxu0 %v1388_v28  ;;  %817 = vmatprep.mubr.bf16.mxu1 %v1389_v29 }
  0x87   : > { %930 = vmatprep.mubr.bf16.mxu0 %v1391_v30 }
  0x8d   : > { %818 = vmatmul.mubr.bf16.gmra.mrb[28].mxu1 %v1393_v31 }
  0x8e   : > { %931 = vmatmul.mubr.bf16.gmra.mrb[28].mxu0 %v1394_v32 }
 0x128   : > { %v749_v33 = vpop.f32.mrb[0].mxu1 }
 0x129   : > { %v862_v34 = vpop.f32.mrb[0].mxu0  ;;  %v751_v36 = vpop.f32.mrb[1].mxu1 }
 0x12a   : > { %v863_v35 = vadd.f32 %v862_v34, %v749_v33  ;;  %v864_v37 = vpop.f32.mrb[1].mxu0  ;;  %v753_v39 = vpop.f32.mrb[2].mxu1 }
 0x12b   : > { %v865_v38 = vadd.f32 %v864_v37, %v751_v36  ;;  %v866_v40 = vpop.f32.mrb[2].mxu0  ;;  %v755_v42 = vpop.f32.mrb[3].mxu1 }
 0x12c   : > { %v867_v41 = vadd.f32 %v866_v40, %v753_v39  ;;  %v868_v43 = vpop.f32.mrb[3].mxu0  ;;  %v984_v45 = vmul.f32 %v863_v35, %v863_v35 }
 0x12d   : > { %v869_v44 = vadd.f32 %v868_v43, %v755_v42  ;;  %v985_v48 = vmul.f32 %v865_v38, %v865_v38 }
 0x12e   : > { %v942_v46 = vadd.f32 %v867_v41, %v863_v35  ;;  %v986_v47 = vmul.f32 %v867_v41, %v867_v41 }
 0x12f   : > { %v963_v49 = vadd.f32 %v869_v44, %v865_v38  ;;  %v987_v50 = vmul.f32 %v869_v44, %v869_v44 }
 0x130   : > { %v1016_v51 = vadd.f32 %v986_v47, %v984_v45  ;;  %v759_v53 = vpop.f32.mrb[4].mxu1 }
 0x131   : > { %v1037_v52 = vadd.f32 %v987_v50, %v985_v48  ;;  %v872_v54 = vpop.f32.mrb[4].mxu0  ;;  %v761_v56 = vpop.f32.mrb[5].mxu1 }
 0x132   : > { %v873_v55 = vadd.f32 %v872_v54, %v759_v53  ;;  %v874_v57 = vpop.f32.mrb[5].mxu0  ;;  %v763_v59 = vpop.f32.mrb[6].mxu1 }
 0x133   : > { %v875_v58 = vadd.f32 %v874_v57, %v761_v56  ;;  %v876_v60 = vpop.f32.mrb[6].mxu0  ;;  %v765_v0 = vpop.f32.mrb[7].mxu1 }
 0x134   : > { %v943_v61 = vadd.f32 %v942_v46, %v873_v55  ;;  %v988_v62 = vmul.f32 %v873_v55, %v873_v55  ;;  %v877_v63 = vadd.f32 %v876_v60, %v763_v59  ;;  %v878_v1 = vpop.f32.mrb[7].mxu0 }
 0x135   : > { %v964_v2 = vadd.f32 %v963_v49, %v875_v58  ;;  %v989_v3 = vmul.f32 %v875_v58, %v875_v58  ;;  %v879_v4 = vadd.f32 %v878_v1, %v765_v0 }
 0x136   : > { %v1017_v5 = vadd.f32 %v1016_v51, %v988_v62  ;;  %v944_v6 = vadd.f32 %v943_v61, %v877_v63  ;;  %v990_v7 = vmul.f32 %v877_v63, %v877_v63 }
 0x137   : > { %v1038_v8 = vadd.f32 %v1037_v52, %v989_v3  ;;  %v965_v9 = vadd.f32 %v964_v2, %v879_v4  ;;  %v991_v10 = vmul.f32 %v879_v4, %v879_v4 }
 0x138   : > { %v1018_v11 = vadd.f32 %v1017_v5, %v990_v7  ;;  %v769_v13 = vpop.f32.mrb[8].mxu1 }
 0x139   : > { %v1039_v12 = vadd.f32 %v1038_v8, %v991_v10  ;;  %v882_v14 = vpop.f32.mrb[8].mxu0  ;;  %v771_v16 = vpop.f32.mrb[9].mxu1 }
 0x13a   : > { %v883_v15 = vadd.f32 %v882_v14, %v769_v13  ;;  %v884_v17 = vpop.f32.mrb[9].mxu0  ;;  %v773_v19 = vpop.f32.mrb[10].mxu1 }
 0x13b   : > { %v885_v18 = vadd.f32 %v884_v17, %v771_v16  ;;  %v886_v20 = vpop.f32.mrb[10].mxu0  ;;  %v775_v24 = vpop.f32.mrb[11].mxu1 }
 0x13c   : > { %v945_v21 = vadd.f32 %v944_v6, %v883_v15  ;;  %v992_v22 = vmul.f32 %v883_v15, %v883_v15  ;;  %v887_v23 = vadd.f32 %v886_v20, %v773_v19  ;;  %v888_v25 = vpop.f32.mrb[11].mxu0 }
 0x13d   : > { %v966_v26 = vadd.f32 %v965_v9, %v885_v18  ;;  %v993_v27 = vmul.f32 %v885_v18, %v885_v18  ;;  %v889_v28 = vadd.f32 %v888_v25, %v775_v24 }
 0x13e   : > { %v1019_v29 = vadd.f32 %v1018_v11, %v992_v22  ;;  %v946_v30 = vadd.f32 %v945_v21, %v887_v23  ;;  %v994_v31 = vmul.f32 %v887_v23, %v887_v23 }
 0x13f   : > { %v1040_v32 = vadd.f32 %v1039_v12, %v993_v27  ;;  %v967_v33 = vadd.f32 %v966_v26, %v889_v28  ;;  %v995_v34 = vmul.f32 %v889_v28, %v889_v28 }
 0x140   : > { %v1020_v35 = vadd.f32 %v1019_v29, %v994_v31  ;;  %v779_v37 = vpop.f32.mrb[12].mxu1 }
 0x141   : > { %v1041_v36 = vadd.f32 %v1040_v32, %v995_v34  ;;  %v892_v38 = vpop.f32.mrb[12].mxu0  ;;  %v781_v40 = vpop.f32.mrb[13].mxu1 }
 0x142   : > { %v893_v39 = vadd.f32 %v892_v38, %v779_v37  ;;  %v894_v41 = vpop.f32.mrb[13].mxu0  ;;  %v783_v43 = vpop.f32.mrb[14].mxu1 }
 0x143   : > { %v895_v42 = vadd.f32 %v894_v41, %v781_v40  ;;  %v896_v44 = vpop.f32.mrb[14].mxu0  ;;  %v785_v48 = vpop.f32.mrb[15].mxu1 }
 0x144   : > { %v947_v45 = vadd.f32 %v946_v30, %v893_v39  ;;  %v996_v46 = vmul.f32 %v893_v39, %v893_v39  ;;  %v897_v47 = vadd.f32 %v896_v44, %v783_v43  ;;  %v898_v49 = vpop.f32.mrb[15].mxu0 }
 0x145   : > { %v968_v50 = vadd.f32 %v967_v33, %v895_v42  ;;  %v997_v51 = vmul.f32 %v895_v42, %v895_v42  ;;  %v899_v52 = vadd.f32 %v898_v49, %v785_v48 }
 0x146   : > { %v1021_v53 = vadd.f32 %v1020_v35, %v996_v46  ;;  %v948_v54 = vadd.f32 %v947_v45, %v897_v47  ;;  %v998_v55 = vmul.f32 %v897_v47, %v897_v47 }
 0x147   : > { %v1042_v56 = vadd.f32 %v1041_v36, %v997_v51  ;;  %v969_v57 = vadd.f32 %v968_v50, %v899_v52  ;;  %v999_v58 = vmul.f32 %v899_v52, %v899_v52 }
 0x148   : > { %v1022_v59 = vadd.f32 %v1021_v53, %v998_v55  ;;  %v789_v61 = vpop.f32.mrb[16].mxu1 }
 0x149   : > { %v1043_v60 = vadd.f32 %v1042_v56, %v999_v58  ;;  %v902_v62 = vpop.f32.mrb[16].mxu0  ;;  %v791_v0 = vpop.f32.mrb[17].mxu1 }
 0x14a   : > { %v903_v63 = vadd.f32 %v902_v62, %v789_v61  ;;  %v904_v1 = vpop.f32.mrb[17].mxu0  ;;  %v793_v3 = vpop.f32.mrb[18].mxu1 }
 0x14b   : > { %v905_v2 = vadd.f32 %v904_v1, %v791_v0  ;;  %v906_v4 = vpop.f32.mrb[18].mxu0  ;;  %v795_v8 = vpop.f32.mrb[19].mxu1 }
 0x14c   : > { %v949_v5 = vadd.f32 %v948_v54, %v903_v63  ;;  %v1000_v6 = vmul.f32 %v903_v63, %v903_v63  ;;  %v907_v7 = vadd.f32 %v906_v4, %v793_v3  ;;  %v908_v9 = vpop.f32.mrb[19].mxu0 }
 0x14d   : > { %v970_v10 = vadd.f32 %v969_v57, %v905_v2  ;;  %v1001_v11 = vmul.f32 %v905_v2, %v905_v2  ;;  %v909_v12 = vadd.f32 %v908_v9, %v795_v8 }
 0x14e   : > { %v1023_v13 = vadd.f32 %v1022_v59, %v1000_v6  ;;  %v950_v14 = vadd.f32 %v949_v5, %v907_v7  ;;  %v1002_v15 = vmul.f32 %v907_v7, %v907_v7 }
 0x14f   : > { %v1044_v16 = vadd.f32 %v1043_v60, %v1001_v11  ;;  %v971_v17 = vadd.f32 %v970_v10, %v909_v12  ;;  %v1003_v18 = vmul.f32 %v909_v12, %v909_v12 }
 0x150   : > { %v1024_v19 = vadd.f32 %v1023_v13, %v1002_v15  ;;  %v799_v21 = vpop.f32.mrb[20].mxu1 }
 0x151   : > { %v1045_v20 = vadd.f32 %v1044_v16, %v1003_v18  ;;  %v912_v22 = vpop.f32.mrb[20].mxu0  ;;  %v801_v24 = vpop.f32.mrb[21].mxu1 }
 0x152   : > { %v913_v23 = vadd.f32 %v912_v22, %v799_v21  ;;  %v914_v25 = vpop.f32.mrb[21].mxu0  ;;  %v803_v27 = vpop.f32.mrb[22].mxu1 }
 0x153   : > { %v915_v26 = vadd.f32 %v914_v25, %v801_v24  ;;  %v916_v28 = vpop.f32.mrb[22].mxu0  ;;  %v805_v32 = vpop.f32.mrb[23].mxu1 }
 0x154   : > { %v951_v29 = vadd.f32 %v950_v14, %v913_v23  ;;  %v1004_v30 = vmul.f32 %v913_v23, %v913_v23  ;;  %v917_v31 = vadd.f32 %v916_v28, %v803_v27  ;;  %v918_v33 = vpop.f32.mrb[23].mxu0 }
 0x155   : > { %v972_v34 = vadd.f32 %v971_v17, %v915_v26  ;;  %v1005_v35 = vmul.f32 %v915_v26, %v915_v26  ;;  %v919_v36 = vadd.f32 %v918_v33, %v805_v32 }
 0x156   : > { %v1025_v37 = vadd.f32 %v1024_v19, %v1004_v30  ;;  %v952_v38 = vadd.f32 %v951_v29, %v917_v31  ;;  %v1006_v39 = vmul.f32 %v917_v31, %v917_v31 }
 0x157   : > { %v1046_v40 = vadd.f32 %v1045_v20, %v1005_v35  ;;  %v973_v41 = vadd.f32 %v972_v34, %v919_v36  ;;  %v1007_v42 = vmul.f32 %v919_v36, %v919_v36 }
 0x158   : > { %v1026_v43 = vadd.f32 %v1025_v37, %v1006_v39  ;;  %v809_v45 = vpop.f32.mrb[24].mxu1 }
 0x159   : > { %v1047_v44 = vadd.f32 %v1046_v40, %v1007_v42  ;;  %v922_v46 = vpop.f32.mrb[24].mxu0  ;;  %v811_v48 = vpop.f32.mrb[25].mxu1 }
 0x15a   : > { %v923_v47 = vadd.f32 %v922_v46, %v809_v45  ;;  %v924_v49 = vpop.f32.mrb[25].mxu0  ;;  %v813_v51 = vpop.f32.mrb[26].mxu1 }
 0x15b   : > { %v925_v50 = vadd.f32 %v924_v49, %v811_v48  ;;  %v926_v52 = vpop.f32.mrb[26].mxu0  ;;  %v815_v56 = vpop.f32.mrb[27].mxu1 }
 0x15c   : > { %v953_v53 = vadd.f32 %v952_v38, %v923_v47  ;;  %v1008_v54 = vmul.f32 %v923_v47, %v923_v47  ;;  %v927_v55 = vadd.f32 %v926_v52, %v813_v51  ;;  %v928_v57 = vpop.f32.mrb[27].mxu0 }
 0x15d   : > { %v974_v58 = vadd.f32 %v973_v41, %v925_v50  ;;  %v1009_v59 = vmul.f32 %v925_v50, %v925_v50  ;;  %v929_v60 = vadd.f32 %v928_v57, %v815_v56  ;;  %v1404_v41 = vmov 1983009808  }
 0x15e   : > { %v1027_v61 = vadd.f32 %v1026_v43, %v1008_v54  ;;  %v954_v62 = vadd.f32 %v953_v53, %v927_v55  ;;  %v1010_v63 = vmul.f32 %v927_v55, %v927_v55  ;;  %v1065_v42 = vunpack.c.l.s4 %v1404_v41 }
 0x15f   : > { %v1048_v0 = vadd.f32 %v1047_v44, %v1009_v59  ;;  %v975_v1 = vadd.f32 %v974_v58, %v929_v60  ;;  %v1011_v2 = vmul.f32 %v929_v60, %v929_v60  ;;  %v1067_v43 = vlaneseq }
 0x160   : > { %v1028_v3 = vadd.f32 %v1027_v61, %v1010_v63  ;;  %v819_v5 = vpop.f32.mrb[28].mxu1  ;;  %v1066_v51 = vunpack.c.0.s8 %v1065_v42 }
 0x161   : > { %v1049_v4 = vadd.f32 %v1048_v0, %v1011_v2  ;;  %v932_v6 = vpop.f32.mrb[28].mxu0  ;;  %v821_v8 = vpop.f32.mrb[29].mxu1  ;;  %v1068_v52 = vshrl.u32 %v1067_v43, 7 }
 0x162   : > { %v933_v7 = vadd.f32 %v932_v6, %v819_v5  ;;  %v934_v9 = vpop.f32.mrb[29].mxu0  ;;  %v823_v11 = vpop.f32.mrb[30].mxu1 }
 0x163   : > { %v935_v10 = vadd.f32 %v934_v9, %v821_v8  ;;  %v936_v12 = vpop.f32.mrb[30].mxu0  ;;  %v825_v16 = vpop.f32.mrb[31].mxu1  ;;  %v1069_v59 = vsub.s32 %v1066_v51, %v1068_v52 }
 0x164   : > { %v955_v13 = vadd.f32 %v954_v62, %v933_v7  ;;  %v1012_v14 = vmul.f32 %v933_v7, %v933_v7  ;;  %v937_v15 = vadd.f32 %v936_v12, %v823_v11  ;;  %v938_v17 = vpop.f32.mrb[31].mxu0  ;;  %v941_v62 = vld [vmem:[%s1671_s2] sm:$0xf] }
 0x165   : > { %v976_v18 = vadd.f32 %v975_v1, %v935_v10  ;;  %v1013_v19 = vmul.f32 %v935_v10, %v935_v10  ;;  %v939_v20 = vadd.f32 %v938_v17, %v825_v16 }
 0x166   : > { %v1029_v21 = vadd.f32 %v1028_v3, %v1012_v14  ;;  %v956_v22 = vadd.f32 %v955_v13, %v937_v15  ;;  %v1014_v23 = vmul.f32 %v937_v15, %v937_v15 }
 0x167   : > { %v1050_v24 = vadd.f32 %v1049_v4, %v1013_v19  ;;  %v977_v25 = vadd.f32 %v976_v18, %v939_v20  ;;  %v1015_v26 = vmul.f32 %v939_v20, %v939_v20 }
 0x168   : > { %v957_v27 = vrot.slane %v956_v22, 4  ;;  %v1030_v28 = vadd.f32 %v1029_v21, %v1014_v23 }
 0x169   : > { %v978_v29 = vrot.slane %v977_v25, 4  ;;  %v1051_v30 = vadd.f32 %v1050_v24, %v1015_v26 }
 0x16a   : > { %v958_v31 = vadd.f32 %v957_v27, %v956_v22  ;;  %v1031_v32 = vrot.slane %v1030_v28, 4 }
 0x16b   : > { %v979_v33 = vadd.f32 %v978_v29, %v977_v25  ;;  %v1052_v34 = vrot.slane %v1051_v30, 4 }
 0x16c   : > { %v959_v35 = vrot.slane %v958_v31, 2  ;;  %v1032_v36 = vadd.f32 %v1031_v32, %v1030_v28 }
 0x16d   : > { %v980_v37 = vrot.slane %v979_v33, 2  ;;  %v1053_v38 = vadd.f32 %v1052_v34, %v1051_v30 }
 0x16e   : > { %v960_v39 = vadd.f32 %v959_v35, %v958_v31  ;;  %v1033_v40 = vrot.slane %v1032_v36, 2 }
 0x16f   : > { %v981_v44 = vadd.f32 %v980_v37, %v979_v33  ;;  %v1054_v45 = vrot.slane %v1053_v38, 2 }
 0x170   : > { %v961_v46 = vrot.slane %v960_v39, 1  ;;  %v1034_v47 = vadd.f32 %v1033_v40, %v1032_v36 }
 0x171   : > { %v982_v48 = vrot.slane %v981_v44, 1  ;;  %v1055_v49 = vadd.f32 %v1054_v45, %v1053_v38 }
 0x172   : > { %v1035_v50 = vrot.slane %v1034_v47, 1  ;;  %v962_v54 = vadd.f32 %v961_v46, %v960_v39 }
 0x173   : > { %v1056_v53 = vrot.slane %v1055_v49, 1  ;;  %v983_v56 = vadd.f32 %v982_v48, %v981_v44 }
 0x174   : > { %v1036_v55 = vadd.f32 %v1035_v50, %v1034_v47 }
 0x175   : > { %v1057_v57 = vadd.f32 %v1056_v53, %v1055_v49 }
 0x176   : > { %v1059_v58 = vsel %vm1058_vm0, %v962_v54, %v1036_v55 }
 0x177   : > { %v1060_v60 = vsel %vm1058_vm0, %v983_v56, %v1057_v57 }
 0x178   : > { %v1063_v61 = vcombine.low %v1059_v58, %v1060_v60 }
 0x17a   : > { %v1070_v63 = vrot.slane %v1063_v61, %v1069_v59 }
 0x17c   : > { %v1072_v0 = vadd.f32 %v1070_v63, %v941_v62 }
 0x17e   : > { %1073 = vst [vmem:[%s1671_s2] sm:$0xf] %v1072_v0 }
 0x17f PF: > { %s12_s9 = sadd.s32 1, %s1401_s9  }
 0x180   : > { %p9_p5 = scmp.ge.s32.totalorder %s12_s9, 4  }
 0x182   :  { %11 = sbr.rel (!%p9_p5) target bundleno = 1 (0x1), region = 58 }

// kernel: ficlass_forward.4
= control target key start
LH: loop header
LB: loop body
LE: loop exit
PB: predicated region body
PF: predicated region fallthrough
CT: control target
= control target key end

     0   :  { %s2007_s15 = smov 0   ;;  %s2435_s0 = inlined_call_operand.vmem [shape: bf16[256,512], index: 0, kind: input, shape index: {}]   ;;  %s2436_s1 = inlined_call_operand.vmem [shape: bf16[512,256], index: 1, kind: input, shape index: {}]   ;;  %s2437_s2 = inlined_call_operand.vmem [shape: bf16[256,256], index: 2, kind: input, shape index: {}]   ;;  %s2438_s3 = inlined_call_operand.vmem [shape: f32[2,256], index: 3, kind: input, shape index: {}]   ;;  %s2439_s4 = inlined_call_operand.vmem [shape: f32[2,256], index: 4, kind: output, shape index: {}]  }
   0x1 LB: > { %s1598_s16 = sadd.s32 4294967295, %s1978_s15   ;;  %p1601_p0 = scmp.ge.s32.totalorder %s1978_s15, 1  ;;  %s1978_s15 = sphi %s2007_s15, %s14_s15  }
   0x2   : > { %p159_p1 = scmp.lt.s32.totalorder %s1978_s15, 3 }
   0x4   : > { %p160_p2 = pnand %p1601_p0, %p159_p1 }
   0x5   : > { %s1602_s17 = sshll.u32 (!%p160_p2), %s1598_s16, 4  ;;  %p1605_p4 = scmp.ne.s32.totalorder (!%p160_p2), %s1598_s16, 0 }
   0x6   : > { %163 = sbr.rel (%p160_p2) target bundleno = 668 (0x29c), region = 36  ;;  %p182_p3 = scmp.lt.s32.totalorder (!%p160_p2), %s1602_s17, 31 }
   0xd   : > { %s2441_s17 = smov (!%p182_p3, %s1602_s17), 31  ;;  %191 = sbr.rel (%p1605_p4) target bundleno = 20 (0x14), region = 40 }
   0xe   : > { %s1737_s18 = sshll.u32 %s2441_s17, 4  ;;  %v1980_v0 = vmov (!%p1605_p4), 0.0  }
   0xf   : > { %s2018_s21 = scalar_lea.vmem %s2435_s0, %s1737_s18  ;;  %192 = vst [vmem:[%s2439_s4] sm:$0xf] (!%p1605_p4), %v1980_v0 }
  0x14 PF: > { %v1780_v1 = vld [vmem:[%s2436_s1 + $0x4] ss:$8 sps:$4 sm:$0xff]   ;;  %v1782_v2 = vld [vmem:[%s2436_s1] ss:$8 sps:$4 sm:$0xff]   ;;  %v1783_v3 = vld [vmem:[%s2436_s1 + $0x14] ss:$8 sps:$4 sm:$0xff]  }
  0x15   : > { %769 = vmatprep.subr.bf16.mxu0 %v1780_v1  ;;  %v1785_v4 = vld [vmem:[%s2436_s1 + $0x10] ss:$8 sps:$4 sm:$0xff]   ;;  %v1786_v5 = vld [vmem:[%s2436_s1 + $0x24] ss:$8 sps:$4 sm:$0xff]   ;;  %v1788_v6 = vld [vmem:[%s2436_s1 + $0x20] ss:$8 sps:$4 sm:$0xff]  }
  0x16   : > { %770 = vmatpush1.bf16.msra.mxu0 %v1782_v2  ;;  %v1789_v7 = vld [vmem:[%s2436_s1 + $0x34] ss:$8 sps:$4 sm:$0xff]   ;;  %v1791_v8 = vld [vmem:[%s2436_s1 + $0x30] ss:$8 sps:$4 sm:$0xff]   ;;  %v1792_v9 = vld [vmem:[%s2436_s1 + $0x44] ss:$8 sps:$4 sm:$0xff]  }
  0x17   : > { %771 = vmatprep.subr.bf16.mxu0 %v1783_v3  ;;  %v1794_v10 = vld [vmem:[%s2436_s1 + $0x40] ss:$8 sps:$4 sm:$0xff]   ;;  %v1795_v11 = vld [vmem:[%s2436_s1 + $0x54] ss:$8 sps:$4 sm:$0xff]   ;;  %v1797_v12 = vld [vmem:[%s2436_s1 + $0x50] ss:$8 sps:$4 sm:$0xff]  }
  0x18   : > { %v1798_v13 = vld [vmem:[%s2436_s1 + $0x64] ss:$8 sps:$4 sm:$0xff]   ;;  %v1800_v15 = vld [vmem:[%s2436_s1 + $0x60] ss:$8 sps:$4 sm:$0xff]   ;;  %v1801_v16 = vld [vmem:[%s2436_s1 + $0x74] ss:$8 sps:$4 sm:$0xff]  }
  0x19   : > { %v1830_v14 = vld [vmem:[%s2018_s21 + $0x4] ss:$16 sps:$4 sm:$0xff]   ;;  %v1803_v17 = vld [vmem:[%s2436_s1 + $0x70] ss:$8 sps:$4 sm:$0xff]   ;;  %v1806_v19 = vld [vmem:[%s2436_s1 + $0x80] ss:$8 sps:$4 sm:$0xff]  }
  0x1a   : > { %772 = vmatpush1.bf16.msra.mxu0 %v1785_v4  ;;  %801 = vmatprep.mubr.bf16.mxu0 %v1830_v14  ;;  %v1804_v18 = vld [vmem:[%s2436_s1 + $0x84] ss:$8 sps:$4 sm:$0xff]   ;;  %v1807_v20 = vld [vmem:[%s2436_s1 + $0x94] ss:$8 sps:$4 sm:$0xff]   ;;  %v1809_v21 = vld [vmem:[%s2436_s1 + $0x90] ss:$8 sps:$4 sm:$0xff]  }
  0x1b   : > { %773 = vmatprep.subr.bf16.mxu0 %v1786_v5  ;;  %v1810_v22 = vld [vmem:[%s2436_s1 + $0xa4] ss:$8 sps:$4 sm:$0xff]   ;;  %v1812_v23 = vld [vmem:[%s2436_s1 + $0xa0] ss:$8 sps:$4 sm:$0xff]   ;;  %v1813_v24 = vld [vmem:[%s2436_s1 + $0xb4] ss:$8 sps:$4 sm:$0xff]  }
  0x1c   : > { %v1815_v25 = vld [vmem:[%s2436_s1 + $0xb0] ss:$8 sps:$4 sm:$0xff]   ;;  %v1816_v26 = vld [vmem:[%s2436_s1 + $0xc4] ss:$8 sps:$4 sm:$0xff]   ;;  %v1818_v27 = vld [vmem:[%s2436_s1 + $0xc0] ss:$8 sps:$4 sm:$0xff]  }
  0x1d   : > { %v1819_v28 = vld [vmem:[%s2436_s1 + $0xd4] ss:$8 sps:$4 sm:$0xff]   ;;  %v1821_v29 = vld [vmem:[%s2436_s1 + $0xd0] ss:$8 sps:$4 sm:$0xff]   ;;  %v1822_v30 = vld [vmem:[%s2436_s1 + $0xe4] ss:$8 sps:$4 sm:$0xff]  }
  0x1e   : > { %774 = vmatpush1.bf16.msra.mxu0 %v1788_v6  ;;  %v1824_v31 = vld [vmem:[%s2436_s1 + $0xe0] ss:$8 sps:$4 sm:$0xff]   ;;  %v1825_v32 = vld [vmem:[%s2436_s1 + $0xf4] ss:$8 sps:$4 sm:$0xff]   ;;  %v1827_v33 = vld [vmem:[%s2436_s1 + $0xf0] ss:$8 sps:$4 sm:$0xff]  }
  0x1f   : > { %775 = vmatprep.subr.bf16.mxu0 %v1789_v7  ;;  %v1833_v34 = vld [vmem:[%s2436_s1 + $0x104] ss:$8 sps:$4 sm:$0xff]   ;;  %v1828_v35 = vld [vmem:[%s2018_s21] ss:$16 sps:$4 sm:$0xff]   ;;  %v1836_v37 = vld [vmem:[%s2436_s1 + $0x114] ss:$8 sps:$4 sm:$0xff]  }
  0x20   : > { %v1831_v36 = vld [vmem:[%s2436_s1 + $0x100] ss:$8 sps:$4 sm:$0xff]   ;;  %v1837_v38 = vld [vmem:[%s2018_s21 + $0x24] ss:$16 sps:$4 sm:$0xff]   ;;  %v1834_v42 = vld [vmem:[%s2436_s1 + $0x110] ss:$8 sps:$4 sm:$0xff]  }
  0x21   : > { %v1924_v39 = vld [vmem:[%s2437_s2 + $0x4] ss:$8 sps:$4 sm:$0xff]   ;;  %v1926_v40 = vld [vmem:[%s2437_s2] ss:$8 sps:$4 sm:$0xff]   ;;  %v1927_v41 = vld [vmem:[%s2437_s2 + $0x14] ss:$8 sps:$4 sm:$0xff]  }
  0x22   : > { %776 = vmatpush1.bf16.msra.mxu0 %v1791_v8  ;;  %1324 = vmatprep.subr.bf16.mxu1 %v1924_v39  ;;  %v1842_v43 = vld [vmem:[%s2436_s1 + $0x124] ss:$8 sps:$4 sm:$0xff]   ;;  %v1929_v44 = vld [vmem:[%s2437_s2 + $0x10] ss:$8 sps:$4 sm:$0xff]   ;;  %v1840_v47 = vld [vmem:[%s2436_s1 + $0x120] ss:$8 sps:$4 sm:$0xff]  }
  0x23   : > { %777 = vmatprep.subr.bf16.mxu0 %v1792_v9  ;;  %1325 = vmatpush1.bf16.msra.mxu1 %v1926_v40  ;;  %v1930_v45 = vld [vmem:[%s2437_s2 + $0x24] ss:$8 sps:$4 sm:$0xff]   ;;  %v1839_v46 = vld [vmem:[%s2018_s21 + $0x20] ss:$16 sps:$4 sm:$0xff]   ;;  %v1845_v48 = vld [vmem:[%s2436_s1 + $0x134] ss:$8 sps:$4 sm:$0xff]  }
  0x24   : > { %1326 = vmatprep.subr.bf16.mxu1 %v1927_v41  ;;  %v1846_v49 = vld [vmem:[%s2018_s21 + $0x44] ss:$16 sps:$4 sm:$0xff]   ;;  %v1932_v50 = vld [vmem:[%s2437_s2 + $0x20] ss:$8 sps:$4 sm:$0xff]   ;;  %v1843_v52 = vld [vmem:[%s2436_s1 + $0x130] ss:$8 sps:$4 sm:$0xff]  }
  0x25   : > { %v1933_v51 = vld [vmem:[%s2437_s2 + $0x34] ss:$8 sps:$4 sm:$0xff]   ;;  %v1851_v53 = vld [vmem:[%s2436_s1 + $0x144] ss:$8 sps:$4 sm:$0xff]   ;;  %v1935_v54 = vld [vmem:[%s2437_s2 + $0x30] ss:$8 sps:$4 sm:$0xff]  }
  0x26   : > { %778 = vmatpush1.bf16.msra.mxu0 %v1794_v10  ;;  %v1936_v55 = vld [vmem:[%s2437_s2 + $0x44] ss:$8 sps:$4 sm:$0xff]   ;;  %v1848_v56 = vld [vmem:[%s2018_s21 + $0x40] ss:$16 sps:$4 sm:$0xff]   ;;  %v1854_v58 = vld [vmem:[%s2436_s1 + $0x154] ss:$8 sps:$4 sm:$0xff]  }
  0x27   : > { %779 = vmatprep.subr.bf16.mxu0 %v1795_v11  ;;  %1327 = vmatpush1.bf16.msra.mxu1 %v1929_v44  ;;  %v1849_v57 = vld [vmem:[%s2436_s1 + $0x140] ss:$8 sps:$4 sm:$0xff]   ;;  %v1855_v59 = vld [vmem:[%s2018_s21 + $0x64] ss:$16 sps:$4 sm:$0xff]   ;;  %v1852_v62 = vld [vmem:[%s2436_s1 + $0x150] ss:$8 sps:$4 sm:$0xff]  }
  0x28   : > { %1328 = vmatprep.subr.bf16.mxu1 %v1930_v45  ;;  %v1938_v60 = vld [vmem:[%s2437_s2 + $0x40] ss:$8 sps:$4 sm:$0xff]   ;;  %v1939_v61 = vld [vmem:[%s2437_s2 + $0x54] ss:$8 sps:$4 sm:$0xff]   ;;  %v1860_v63 = vld [vmem:[%s2436_s1 + $0x164] ss:$8 sps:$4 sm:$0xff]  }
  0x29   : > { %v1941_v0 = vld [vmem:[%s2437_s2 + $0x50] ss:$8 sps:$4 sm:$0xff]   ;;  %v1942_v1 = vld [vmem:[%s2437_s2 + $0x64] ss:$8 sps:$4 sm:$0xff]   ;;  %v1858_v3 = vld [vmem:[%s2436_s1 + $0x160] ss:$8 sps:$4 sm:$0xff]  }
  0x2a   : > { %780 = vmatpush1.bf16.msra.mxu0 %v1797_v12  ;;  %v1857_v2 = vld [vmem:[%s2018_s21 + $0x60] ss:$16 sps:$4 sm:$0xff]   ;;  %v1864_v4 = vld [vmem:[%s2018_s21 + $0x84] ss:$16 sps:$4 sm:$0xff]   ;;  %v1902_v41 = vld [vmem:[%s2018_s21 + $0xc] ss:$16 sps:$4 sm:$0xff]  }
  0x2b   : > { %781 = vmatprep.subr.bf16.mxu0 %v1798_v13  ;;  %1329 = vmatpush1.bf16.msra.mxu1 %v1932_v50  ;;  %v1863_v5 = vld [vmem:[%s2436_s1 + $0x174] ss:$8 sps:$4 sm:$0xff]   ;;  %v1944_v6 = vld [vmem:[%s2437_s2 + $0x60] ss:$8 sps:$4 sm:$0xff]   ;;  %v1861_v8 = vld [vmem:[%s2436_s1 + $0x170] ss:$8 sps:$4 sm:$0xff]  }
  0x2c   : > { %1330 = vmatprep.subr.bf16.mxu1 %v1933_v51  ;;  %v1945_v7 = vld [vmem:[%s2437_s2 + $0x74] ss:$8 sps:$4 sm:$0xff]   ;;  %v1869_v9 = vld [vmem:[%s2436_s1 + $0x184] ss:$8 sps:$4 sm:$0xff]   ;;  %v1947_v10 = vld [vmem:[%s2437_s2 + $0x70] ss:$8 sps:$4 sm:$0xff]  }
  0x2d   : > { %v1948_v11 = vld [vmem:[%s2437_s2 + $0x84] ss:$8 sps:$4 sm:$0xff]   ;;  %v1866_v12 = vld [vmem:[%s2018_s21 + $0x80] ss:$16 sps:$4 sm:$0xff]   ;;  %v1900_v44 = vld [vmem:[%s2018_s21 + $0x8] ss:$16 sps:$4 sm:$0xff]  }
  0x2e   : > { %782 = vmatpush1.bf16.msra.mxu0 %v1800_v15  ;;  %v1867_v13 = vld [vmem:[%s2436_s1 + $0x180] ss:$8 sps:$4 sm:$0xff]   ;;  %v1873_v14 = vld [vmem:[%s2018_s21 + $0xa4] ss:$16 sps:$4 sm:$0xff]   ;;  %v1903_v45 = vld [vmem:[%s2018_s21 + $0x2c] ss:$16 sps:$4 sm:$0xff]  }
  0x2f   : > { %783 = vmatprep.subr.bf16.mxu0 %v1801_v16  ;;  %1331 = vmatpush1.bf16.msra.mxu1 %v1935_v54  ;;  %v1872_v15 = vld [vmem:[%s2436_s1 + $0x194] ss:$8 sps:$4 sm:$0xff]   ;;  %v1950_v16 = vld [vmem:[%s2437_s2 + $0x80] ss:$8 sps:$4 sm:$0xff]   ;;  %vm1554_vm0 = vcmask 1040384  }
  0x30   : > { %1332 = vmatprep.subr.bf16.mxu1 %v1936_v55  ;;  %v1893_v39 = vld [vmem:[%s2018_s21 + $0xe0] ss:$16 sps:$4 sm:$0xff]   ;;  %v1911_v50 = vld [vmem:[%s2018_s21 + $0x68] ss:$16 sps:$4 sm:$0xff]   ;;  %v1912_v51 = vld [vmem:[%s2018_s21 + $0x8c] ss:$16 sps:$4 sm:$0xff]  }
  0x31   : > { %v1894_v40 = vld [vmem:[%s2436_s1 + $0x1e0] ss:$8 sps:$4 sm:$0xff]   ;;  %v1918_v55 = vld [vmem:[%s2018_s21 + $0xcc] ss:$16 sps:$4 sm:$0xff]  }
  0x32   : > { %784 = vmatpush1.bf16.msra.mxu0 %v1803_v17  ;;  %v1951_v17 = vld [vmem:[%s2437_s2 + $0x94] ss:$8 sps:$4 sm:$0xff]   ;;  %v1917_v54 = vld [vmem:[%s2018_s21 + $0xa8] ss:$16 sps:$4 sm:$0xff]  }
  0x33   : > { %785 = vmatprep.subr.bf16.mxu0 %v1804_v18  ;;  %1333 = vmatpush1.bf16.msra.mxu1 %v1938_v60  ;;  %v1870_v18 = vld [vmem:[%s2436_s1 + $0x190] ss:$8 sps:$4 sm:$0xff]  }
  0x34   : > { %1334 = vmatprep.subr.bf16.mxu1 %v1939_v61  ;;  %v1965_v60 = vld [vmem:[%s2437_s2 + $0xd0] ss:$8 sps:$4 sm:$0xff]   ;;  %v1966_v61 = vld [vmem:[%s2437_s2 + $0xe4] ss:$8 sps:$4 sm:$0xff]  }
  0x36   : > { %786 = vmatpush1.bf16.msra.mxu0 %v1806_v19  ;;  %v1878_v19 = vld [vmem:[%s2436_s1 + $0x1a4] ss:$8 sps:$4 sm:$0xff]  }
  0x37   : > { %787 = vmatprep.subr.bf16.mxu0 %v1807_v20  ;;  %1335 = vmatpush1.bf16.msra.mxu1 %v1941_v0  ;;  %v1953_v20 = vld [vmem:[%s2437_s2 + $0x90] ss:$8 sps:$4 sm:$0xff]  }
  0x38   : > { %1336 = vmatprep.subr.bf16.mxu1 %v1942_v1  ;;  %v1971_v0 = vld [vmem:[%s2437_s2 + $0xf0] ss:$8 sps:$4 sm:$0xff]   ;;  %v997_v1 = vlaneseq }
  0x3a   : > { %788 = vmatpush1.bf16.msra.mxu0 %v1809_v21  ;;  %v1954_v21 = vld [vmem:[%s2437_s2 + $0xa4] ss:$8 sps:$4 sm:$0xff]  }
  0x3b   : > { %789 = vmatprep.subr.bf16.mxu0 %v1810_v22  ;;  %1337 = vmatpush1.bf16.msra.mxu1 %v1944_v6  ;;  %v1875_v22 = vld [vmem:[%s2018_s21 + $0xa0] ss:$16 sps:$4 sm:$0xff]  }
  0x3c   : > { %1338 = vmatprep.subr.bf16.mxu1 %v1945_v7  ;;  %v1702_v6 = vld [vmem:[%s2438_s3 + $0x1] ss:$2 sm:$0x3] }
  0x3e   : > { %790 = vmatpush1.bf16.msra.mxu0 %v1812_v23  ;;  %v1876_v23 = vld [vmem:[%s2436_s1 + $0x1a0] ss:$8 sps:$4 sm:$0xff]  }
  0x3f   : > { %791 = vmatprep.subr.bf16.mxu0 %v1813_v24  ;;  %1339 = vmatpush1.bf16.msra.mxu1 %v1947_v10  ;;  %v1882_v24 = vld [vmem:[%s2018_s21 + $0xc4] ss:$16 sps:$4 sm:$0xff]  }
  0x40   : > { %1340 = vmatprep.subr.bf16.mxu1 %v1948_v11 }
  0x42   : > { %792 = vmatpush1.bf16.msra.mxu0 %v1815_v25  ;;  %v1881_v25 = vld [vmem:[%s2436_s1 + $0x1b4] ss:$8 sps:$4 sm:$0xff]  }
  0x43   : > { %793 = vmatprep.subr.bf16.mxu0 %v1816_v26  ;;  %1341 = vmatpush1.bf16.msra.mxu1 %v1950_v16  ;;  %v1956_v26 = vld [vmem:[%s2437_s2 + $0xa0] ss:$8 sps:$4 sm:$0xff]  }
  0x44   : > { %1342 = vmatprep.subr.bf16.mxu1 %v1951_v17 }
  0x46   : > { %794 = vmatpush1.bf16.msra.mxu0 %v1818_v27  ;;  %v1957_v27 = vld [vmem:[%s2437_s2 + $0xb4] ss:$8 sps:$4 sm:$0xff]  }
  0x47   : > { %795 = vmatprep.subr.bf16.mxu0 %v1819_v28  ;;  %1343 = vmatpush1.bf16.msra.mxu1 %v1953_v20  ;;  %v1879_v28 = vld [vmem:[%s2436_s1 + $0x1b0] ss:$8 sps:$4 sm:$0xff]  }
  0x48   : > { %1344 = vmatprep.subr.bf16.mxu1 %v1954_v21 }
  0x4a   : > { %796 = vmatpush1.bf16.msra.mxu0 %v1821_v29  ;;  %v1887_v29 = vld [vmem:[%s2436_s1 + $0x1c4] ss:$8 sps:$4 sm:$0xff]  }
  0x4b   : > { %797 = vmatprep.subr.bf16.mxu0 %v1822_v30  ;;  %1345 = vmatpush1.bf16.msra.mxu1 %v1956_v26  ;;  %v1959_v30 = vld [vmem:[%s2437_s2 + $0xb0] ss:$8 sps:$4 sm:$0xff]  }
  0x4c   : > { %1346 = vmatprep.subr.bf16.mxu1 %v1957_v27 }
  0x4e   : > { %798 = vmatpush1.bf16.msra.mxu0 %v1824_v31  ;;  %v1960_v31 = vld [vmem:[%s2437_s2 + $0xc4] ss:$8 sps:$4 sm:$0xff]  }
  0x4f   : > { %799 = vmatprep.subr.bf16.mxu0 %v1825_v32  ;;  %v1884_v32 = vld [vmem:[%s2018_s21 + $0xc0] ss:$16 sps:$4 sm:$0xff]   ;;  %1347 = vmatpush1.bf16.msra.mxu1 %v1959_v30 }
  0x50   : > { %1348 = vmatprep.subr.bf16.mxu1 %v1960_v31 }
  0x52   : > { %800 = vmatpush1.bf16.msra.mxu0 %v1827_v33  ;;  %v1885_v33 = vld [vmem:[%s2436_s1 + $0x1c0] ss:$8 sps:$4 sm:$0xff]  }
  0x53   : > { %882 = vmatprep.subr.bf16.mxu0 %v1833_v34  ;;  %v1891_v34 = vld [vmem:[%s2018_s21 + $0xe4] ss:$16 sps:$4 sm:$0xff]  }
  0x55   : > { %802 = vmatmul.mubr.bf16.vlgmr.msra.gmra.mrb[0].mxu0 %v1828_v35  ;;  %v1890_v35 = vld [vmem:[%s2436_s1 + $0x1d4] ss:$8 sps:$4 sm:$0xff]  }
  0x56   : > { %883 = vmatpush1.bf16.msra.mxu0 %v1831_v36  ;;  %811 = vmatprep.mubr.bf16.mxu0 %v1837_v38  ;;  %v1962_v36 = vld [vmem:[%s2437_s2 + $0xc0] ss:$8 sps:$4 sm:$0xff]   ;;  %v1896_v38 = vld [vmem:[%s2436_s1 + $0x1e4] ss:$8 sps:$4 sm:$0xff]  }
  0x57   : > { %884 = vmatprep.subr.bf16.mxu0 %v1836_v37  ;;  %v1888_v37 = vld [vmem:[%s2436_s1 + $0x1d0] ss:$8 sps:$4 sm:$0xff]   ;;  %1349 = vmatpush1.bf16.msra.mxu1 %v1962_v36 }
  0x5a   : > { %885 = vmatpush1.bf16.msra.mxu0 %v1834_v42  ;;  %v1899_v42 = vld [vmem:[%s2436_s1 + $0x1f4] ss:$8 sps:$4 sm:$0xff]  }
  0x5b   : > { %886 = vmatprep.subr.bf16.mxu0 %v1842_v43  ;;  %v1897_v43 = vld [vmem:[%s2436_s1 + $0x1f0] ss:$8 sps:$4 sm:$0xff]  }
  0x5d   : > { %812 = vmatmul.mubr.bf16.gmra.mrb[4].mxu0 %v1839_v46  ;;  %v1905_v46 = vld [vmem:[%s2018_s21 + $0x28] ss:$16 sps:$4 sm:$0xff]  }
  0x5e   : > { %887 = vmatpush1.bf16.msra.mxu0 %v1840_v47  ;;  %821 = vmatprep.mubr.bf16.mxu0 %v1846_v49  ;;  %v1906_v47 = vld [vmem:[%s2018_s21 + $0x4c] ss:$16 sps:$4 sm:$0xff]  }
  0x5f   : > { %888 = vmatprep.subr.bf16.mxu0 %v1845_v48  ;;  %v1908_v48 = vld [vmem:[%s2018_s21 + $0x48] ss:$16 sps:$4 sm:$0xff]   ;;  %v1909_v49 = vld [vmem:[%s2018_s21 + $0x6c] ss:$16 sps:$4 sm:$0xff]  }
  0x62   : > { %889 = vmatpush1.bf16.msra.mxu0 %v1843_v52  ;;  %v1914_v52 = vld [vmem:[%s2018_s21 + $0x88] ss:$16 sps:$4 sm:$0xff]  }
  0x63   : > { %890 = vmatprep.subr.bf16.mxu0 %v1851_v53  ;;  %v1915_v53 = vld [vmem:[%s2018_s21 + $0xac] ss:$16 sps:$4 sm:$0xff]  }
  0x65   : > { %822 = vmatmul.mubr.bf16.gmra.mrb[8].mxu0 %v1848_v56  ;;  %v1920_v56 = vld [vmem:[%s2018_s21 + $0xc8] ss:$16 sps:$4 sm:$0xff]  }
  0x66   : > { %891 = vmatpush1.bf16.msra.mxu0 %v1849_v57  ;;  %831 = vmatprep.mubr.bf16.mxu0 %v1855_v59  ;;  %v1921_v57 = vld [vmem:[%s2018_s21 + $0xec] ss:$16 sps:$4 sm:$0xff]  }
  0x67   : > { %892 = vmatprep.subr.bf16.mxu0 %v1854_v58  ;;  %v1923_v58 = vld [vmem:[%s2018_s21 + $0xe8] ss:$16 sps:$4 sm:$0xff]   ;;  %v1963_v59 = vld [vmem:[%s2437_s2 + $0xd4] ss:$8 sps:$4 sm:$0xff]  }
  0x68   : > { %1350 = vmatprep.subr.bf16.mxu1 %v1963_v59 }
  0x69   : > { %1351 = vmatpush1.bf16.msra.mxu1 %v1965_v60 }
  0x6a   : > { %893 = vmatpush1.bf16.msra.mxu0 %v1852_v62  ;;  %v1968_v62 = vld [vmem:[%s2437_s2 + $0xe0] ss:$8 sps:$4 sm:$0xff]   ;;  %1352 = vmatprep.subr.bf16.mxu1 %v1966_v61 }
  0x6b   : > { %894 = vmatprep.subr.bf16.mxu0 %v1860_v63  ;;  %v1969_v63 = vld [vmem:[%s2437_s2 + $0xf4] ss:$8 sps:$4 sm:$0xff]  }
  0x6d   : > { %832 = vmatmul.mubr.bf16.gmra.mrb[12].mxu0 %v1857_v2  ;;  %1353 = vmatpush1.bf16.msra.mxu1 %v1968_v62  ;;  %v2343_v2 = vshrl.u32 %v997_v1, 7 }
  0x6e   : > { %895 = vmatpush1.bf16.msra.mxu0 %v1858_v3  ;;  %841 = vmatprep.mubr.bf16.mxu0 %v1864_v4  ;;  %v995_v4 = vld [vmem:[%s2438_s3] ss:$2 sm:$0x3] }
  0x6f   : > { %896 = vmatprep.subr.bf16.mxu0 %v1863_v5  ;;  %1354 = vmatprep.subr.bf16.mxu1 %v1969_v63  ;;  %v999_v3 = vsub.s32 0, %v2343_v2  ;;  %v1003_v5 = vsub.s32 1, %v2343_v2 }
  0x71   : > { %1355 = vmatpush1.bf16.msra.mxu1 %v1971_v0  ;;  %v2353_v7 = vrot.slane %v995_v4, %v999_v3  ;;  %v2359_v11 = vrot.slane %v1702_v6, %v1003_v5 }
  0x72   : > { %897 = vmatpush1.bf16.msra.mxu0 %v1861_v8  ;;  %v2355_v8 = vrot.slane %v995_v4, %v1003_v5 }
  0x73   : > { %898 = vmatprep.subr.bf16.mxu0 %v1869_v9  ;;  %v2357_v9 = vrot.slane %v1702_v6, %v999_v3 }
  0x75   : > { %842 = vmatmul.mubr.bf16.gmra.mrb[16].mxu0 %v1866_v12 }
  0x76   : > { %899 = vmatpush1.bf16.msra.mxu0 %v1867_v13  ;;  %851 = vmatprep.mubr.bf16.mxu0 %v1873_v14 }
  0x77   : > { %900 = vmatprep.subr.bf16.mxu0 %v1872_v15 }
  0x7a   : > { %901 = vmatpush1.bf16.msra.mxu0 %v1870_v18 }
  0x7b   : > { %902 = vmatprep.subr.bf16.mxu0 %v1878_v19 }
  0x7d   : > { %852 = vmatmul.mubr.bf16.gmra.mrb[20].mxu0 %v1875_v22 }
  0x7e   : > { %903 = vmatpush1.bf16.msra.mxu0 %v1876_v23  ;;  %861 = vmatprep.mubr.bf16.mxu0 %v1882_v24 }
  0x7f   : > { %904 = vmatprep.subr.bf16.mxu0 %v1881_v25 }
  0x82   : > { %905 = vmatpush1.bf16.msra.mxu0 %v1879_v28 }
  0x83   : > { %906 = vmatprep.subr.bf16.mxu0 %v1887_v29 }
  0x85   : > { %862 = vmatmul.mubr.bf16.gmra.mrb[24].mxu0 %v1884_v32 }
  0x86   : > { %907 = vmatpush1.bf16.msra.mxu0 %v1885_v33  ;;  %871 = vmatprep.mubr.bf16.mxu0 %v1891_v34 }
  0x87   : > { %908 = vmatprep.subr.bf16.mxu0 %v1890_v35 }
  0x8a   : > { %909 = vmatpush1.bf16.msra.mxu0 %v1888_v37 }
  0x8b   : > { %910 = vmatprep.subr.bf16.mxu0 %v1896_v38 }
  0x8d   : > { %872 = vmatmul.mubr.bf16.gmra.mrb[28].mxu0 %v1893_v39 }
  0x8e   : > { %911 = vmatpush1.bf16.msra.mxu0 %v1894_v40  ;;  %914 = vmatprep.mubr.bf16.mxu0 %v1902_v41 }
  0x8f   : > { %912 = vmatprep.subr.bf16.mxu0 %v1899_v42 }
  0x92   : > { %913 = vmatpush1.bf16.msra.mxu0 %v1897_v43 }
  0x95   : > { %915 = vmatmul.mubr.bf16.vlgmr.msra.gmra.mrb[0].mxu0 %v1900_v44 }
  0x96   : > { %924 = vmatprep.mubr.bf16.mxu0 %v1903_v45 }
  0x9d   : > { %925 = vmatmul.mubr.bf16.gmra.mrb[4].mxu0 %v1905_v46 }
  0x9e   : > { %934 = vmatprep.mubr.bf16.mxu0 %v1906_v47 }
  0xa5   : > { %935 = vmatmul.mubr.bf16.gmra.mrb[8].mxu0 %v1908_v48 }
  0xa6   : > { %944 = vmatprep.mubr.bf16.mxu0 %v1909_v49 }
  0xad   : > { %945 = vmatmul.mubr.bf16.gmra.mrb[12].mxu0 %v1911_v50 }
  0xae   : > { %954 = vmatprep.mubr.bf16.mxu0 %v1912_v51 }
  0xb5   : > { %955 = vmatmul.mubr.bf16.gmra.mrb[16].mxu0 %v1914_v52 }
  0xb6   : > { %964 = vmatprep.mubr.bf16.mxu0 %v1915_v53 }
  0xbd   : > { %965 = vmatmul.mubr.bf16.gmra.mrb[20].mxu0 %v1917_v54 }
  0xbe   : > { %974 = vmatprep.mubr.bf16.mxu0 %v1918_v55 }
  0xc5   : > { %975 = vmatmul.mubr.bf16.gmra.mrb[24].mxu0 %v1920_v56 }
  0xc6   : > { %984 = vmatprep.mubr.bf16.mxu0 %v1921_v57 }
  0xcd   : > { %985 = vmatmul.mubr.bf16.gmra.mrb[28].mxu0 %v1923_v58 }
 0x168   : > { %v916_v10 = vpop.f32.mrb[0].mxu0 }
 0x169   : > { %v1007_v12 = vmul.f32 %v2353_v7, %v916_v10  ;;  %v918_v13 = vpop.f32.mrb[1].mxu0 }
 0x16a   : > { %v1008_v14 = vmul.f32 %v2355_v8, %v918_v13  ;;  %v920_v15 = vpop.f32.mrb[2].mxu0 }
 0x16b   : > { %v1052_v16 = vadd.f32 %v2357_v9, %v1007_v12  ;;  %v1009_v17 = vmul.f32 %v2353_v7, %v920_v15  ;;  %v922_v18 = vpop.f32.mrb[3].mxu0 }
 0x16c   : > { %v1010_v19 = vmul.f32 %v2355_v8, %v922_v18  ;;  %v1053_v20 = vadd.f32 %v2359_v11, %v1008_v14 }
 0x16d   : > { %v1054_v21 = vadd.f32 %v2357_v9, %v1009_v17  ;;  %v1084_v23 = vmax.f32 %v1052_v16, 0.0 }
 0x16e   : > { %v1055_v22 = vadd.f32 %v2359_v11, %v1010_v19  ;;  %v1085_v26 = vmax.f32 %v1053_v20, 0.0 }
 0x16f   : > { %v1086_v24 = vmax.f32 %v1054_v21, 0.0 }
 0x170   : > { %v926_v25 = vpop.f32.mrb[4].mxu0  ;;  %v1087_v27 = vmax.f32 %v1055_v22, 0.0 }
 0x171   : > { %v1011_v28 = vmul.f32 %v2353_v7, %v926_v25  ;;  %v928_v29 = vpop.f32.mrb[5].mxu0  ;;  %v1116_v30 = vpack.c.bf16 %v1086_v24, %v1084_v23 }
 0x172   : > { %v1012_v31 = vmul.f32 %v2355_v8, %v928_v29  ;;  %v930_v32 = vpop.f32.mrb[6].mxu0  ;;  %v1117_v33 = vpack.c.bf16 %v1087_v27, %v1085_v26 }
 0x173   : > { %v1056_v34 = vadd.f32 %v2357_v9, %v1011_v28  ;;  %v1013_v35 = vmul.f32 %v2353_v7, %v930_v32  ;;  %v932_v36 = vpop.f32.mrb[7].mxu0 }
 0x174   : > { %v1057_v37 = vadd.f32 %v2359_v11, %v1012_v31  ;;  %v1014_v38 = vmul.f32 %v2355_v8, %v932_v36  ;;  %1356 = vmatprep.mubr.bf16.mxu1 %v1117_v33 }
 0x175   : > { %v1058_v39 = vadd.f32 %v2357_v9, %v1013_v35  ;;  %1357 = vmatmul.mubr.bf16.vlgmr.msra.gmra.mrb[0].mxu1 %v1116_v30  ;;  %v1088_v41 = vmax.f32 %v1056_v34, 0.0 }
 0x176   : > { %v1059_v40 = vadd.f32 %v2359_v11, %v1014_v38  ;;  %v1089_v43 = vmax.f32 %v1057_v37, 0.0 }
 0x177   : > { %v1090_v42 = vmax.f32 %v1058_v39, 0.0 }
 0x178   : > { %v1091_v44 = vmax.f32 %v1059_v40, 0.0  ;;  %v936_v45 = vpop.f32.mrb[8].mxu0 }
 0x179   : > { %v1015_v46 = vmul.f32 %v2353_v7, %v936_v45  ;;  %v938_v47 = vpop.f32.mrb[9].mxu0  ;;  %v1118_v48 = vpack.c.bf16 %v1090_v42, %v1088_v41 }
 0x17a   : > { %v1016_v49 = vmul.f32 %v2355_v8, %v938_v47  ;;  %v940_v50 = vpop.f32.mrb[10].mxu0  ;;  %v1119_v51 = vpack.c.bf16 %v1091_v44, %v1089_v43 }
 0x17b   : > { %v1060_v52 = vadd.f32 %v2357_v9, %v1015_v46  ;;  %v1017_v53 = vmul.f32 %v2353_v7, %v940_v50  ;;  %v942_v54 = vpop.f32.mrb[11].mxu0 }
 0x17c   : > { %v1061_v55 = vadd.f32 %v2359_v11, %v1016_v49  ;;  %v1018_v56 = vmul.f32 %v2355_v8, %v942_v54  ;;  %1366 = vmatprep.mubr.bf16.mxu1 %v1119_v51 }
 0x17d   : > { %v1062_v57 = vadd.f32 %v2357_v9, %v1017_v53  ;;  %1367 = vmatmul.mubr.bf16.gmra.mrb[4].mxu1 %v1118_v48  ;;  %v1092_v59 = vmax.f32 %v1060_v52, 0.0 }
 0x17e   : > { %v1063_v58 = vadd.f32 %v2359_v11, %v1018_v56  ;;  %v1093_v61 = vmax.f32 %v1061_v55, 0.0 }
 0x17f   : > { %v1094_v60 = vmax.f32 %v1062_v57, 0.0 }
 0x180   : > { %v1095_v62 = vmax.f32 %v1063_v58, 0.0  ;;  %v946_v63 = vpop.f32.mrb[12].mxu0 }
 0x181   : > { %v1019_v0 = vmul.f32 %v2353_v7, %v946_v63  ;;  %v948_v1 = vpop.f32.mrb[13].mxu0  ;;  %v1120_v3 = vpack.c.bf16 %v1094_v60, %v1092_v59 }
 0x182   : > { %v1020_v4 = vmul.f32 %v2355_v8, %v948_v1  ;;  %v950_v5 = vpop.f32.mrb[14].mxu0  ;;  %v1121_v6 = vpack.c.bf16 %v1095_v62, %v1093_v61 }
 0x183   : > { %v1064_v10 = vadd.f32 %v2357_v9, %v1019_v0  ;;  %v1021_v12 = vmul.f32 %v2353_v7, %v950_v5  ;;  %v952_v13 = vpop.f32.mrb[15].mxu0 }
 0x184   : > { %v1065_v14 = vadd.f32 %v2359_v11, %v1020_v4  ;;  %v1022_v15 = vmul.f32 %v2355_v8, %v952_v13  ;;  %1376 = vmatprep.mubr.bf16.mxu1 %v1121_v6 }
 0x185   : > { %v1066_v16 = vadd.f32 %v2357_v9, %v1021_v12  ;;  %1377 = vmatmul.mubr.bf16.gmra.mrb[8].mxu1 %v1120_v3  ;;  %v1096_v18 = vmax.f32 %v1064_v10, 0.0 }
 0x186   : > { %v1067_v17 = vadd.f32 %v2359_v11, %v1022_v15  ;;  %v1097_v20 = vmax.f32 %v1065_v14, 0.0 }
 0x187   : > { %v1098_v19 = vmax.f32 %v1066_v16, 0.0 }
 0x188   : > { %v1099_v21 = vmax.f32 %v1067_v17, 0.0  ;;  %v956_v22 = vpop.f32.mrb[16].mxu0 }
 0x189   : > { %v1023_v23 = vmul.f32 %v2353_v7, %v956_v22  ;;  %v958_v24 = vpop.f32.mrb[17].mxu0  ;;  %v1122_v25 = vpack.c.bf16 %v1098_v19, %v1096_v18 }
 0x18a   : > { %v1024_v26 = vmul.f32 %v2355_v8, %v958_v24  ;;  %v960_v27 = vpop.f32.mrb[18].mxu0  ;;  %v1123_v28 = vpack.c.bf16 %v1099_v21, %v1097_v20 }
 0x18b   : > { %v1068_v29 = vadd.f32 %v2357_v9, %v1023_v23  ;;  %v1025_v30 = vmul.f32 %v2353_v7, %v960_v27  ;;  %v962_v31 = vpop.f32.mrb[19].mxu0 }
 0x18c   : > { %v1069_v32 = vadd.f32 %v2359_v11, %v1024_v26  ;;  %v1026_v33 = vmul.f32 %v2355_v8, %v962_v31  ;;  %1386 = vmatprep.mubr.bf16.mxu1 %v1123_v28 }
 0x18d   : > { %v1070_v34 = vadd.f32 %v2357_v9, %v1025_v30  ;;  %1387 = vmatmul.mubr.bf16.gmra.mrb[12].mxu1 %v1122_v25  ;;  %v1100_v36 = vmax.f32 %v1068_v29, 0.0 }
 0x18e   : > { %v1071_v35 = vadd.f32 %v2359_v11, %v1026_v33  ;;  %v1101_v38 = vmax.f32 %v1069_v32, 0.0 }
 0x18f   : > { %v1102_v37 = vmax.f32 %v1070_v34, 0.0 }
 0x190   : > { %v1103_v39 = vmax.f32 %v1071_v35, 0.0  ;;  %v966_v40 = vpop.f32.mrb[20].mxu0 }
 0x191   : > { %v1027_v41 = vmul.f32 %v2353_v7, %v966_v40  ;;  %v968_v42 = vpop.f32.mrb[21].mxu0  ;;  %v1124_v43 = vpack.c.bf16 %v1102_v37, %v1100_v36 }
 0x192   : > { %v1028_v44 = vmul.f32 %v2355_v8, %v968_v42  ;;  %v970_v45 = vpop.f32.mrb[22].mxu0  ;;  %v1125_v46 = vpack.c.bf16 %v1103_v39, %v1101_v38 }
 0x193   : > { %v1072_v47 = vadd.f32 %v2357_v9, %v1027_v41  ;;  %v1029_v48 = vmul.f32 %v2353_v7, %v970_v45  ;;  %v972_v49 = vpop.f32.mrb[23].mxu0 }
 0x194   : > { %v1073_v50 = vadd.f32 %v2359_v11, %v1028_v44  ;;  %v1030_v51 = vmul.f32 %v2355_v8, %v972_v49  ;;  %1396 = vmatprep.mubr.bf16.mxu1 %v1125_v46 }
 0x195   : > { %v1074_v52 = vadd.f32 %v2357_v9, %v1029_v48  ;;  %1397 = vmatmul.mubr.bf16.gmra.mrb[16].mxu1 %v1124_v43  ;;  %v1104_v54 = vmax.f32 %v1072_v47, 0.0 }
 0x196   : > { %v1075_v53 = vadd.f32 %v2359_v11, %v1030_v51  ;;  %v1105_v56 = vmax.f32 %v1073_v50, 0.0 }
 0x197   : > { %v1106_v55 = vmax.f32 %v1074_v52, 0.0 }
 0x198   : > { %v1107_v57 = vmax.f32 %v1075_v53, 0.0  ;;  %v976_v58 = vpop.f32.mrb[24].mxu0 }
 0x199   : > { %v1031_v59 = vmul.f32 %v2353_v7, %v976_v58  ;;  %v978_v60 = vpop.f32.mrb[25].mxu0  ;;  %v1126_v61 = vpack.c.bf16 %v1106_v55, %v1104_v54 }
 0x19a   : > { %v1032_v62 = vmul.f32 %v2355_v8, %v978_v60  ;;  %v980_v63 = vpop.f32.mrb[26].mxu0  ;;  %v1127_v0 = vpack.c.bf16 %v1107_v57, %v1105_v56 }
 0x19b   : > { %v1076_v1 = vadd.f32 %v2357_v9, %v1031_v59  ;;  %v1033_v3 = vmul.f32 %v2353_v7, %v980_v63  ;;  %v982_v4 = vpop.f32.mrb[27].mxu0 }
 0x19c   : > { %v1077_v5 = vadd.f32 %v2359_v11, %v1032_v62  ;;  %v1034_v6 = vmul.f32 %v2355_v8, %v982_v4  ;;  %1406 = vmatprep.mubr.bf16.mxu1 %v1127_v0 }
 0x19d   : > { %v1078_v10 = vadd.f32 %v2357_v9, %v1033_v3  ;;  %1407 = vmatmul.mubr.bf16.gmra.mrb[20].mxu1 %v1126_v61  ;;  %v1108_v13 = vmax.f32 %v1076_v1, 0.0 }
 0x19e   : > { %v1079_v12 = vadd.f32 %v2359_v11, %v1034_v6  ;;  %v1109_v15 = vmax.f32 %v1077_v5, 0.0 }
 0x19f   : > { %v1110_v14 = vmax.f32 %v1078_v10, 0.0 }
 0x1a0   : > { %v1111_v16 = vmax.f32 %v1079_v12, 0.0  ;;  %v986_v17 = vpop.f32.mrb[28].mxu0 }
 0x1a1   : > { %v1035_v18 = vmul.f32 %v2353_v7, %v986_v17  ;;  %v988_v19 = vpop.f32.mrb[29].mxu0  ;;  %v1128_v20 = vpack.c.bf16 %v1110_v14, %v1108_v13 }
 0x1a2   : > { %v1036_v21 = vmul.f32 %v2355_v8, %v988_v19  ;;  %v990_v22 = vpop.f32.mrb[30].mxu0  ;;  %v1129_v23 = vpack.c.bf16 %v1111_v16, %v1109_v15 }
 0x1a3   : > { %v1080_v24 = vadd.f32 %v2357_v9, %v1035_v18  ;;  %v1037_v25 = vmul.f32 %v2353_v7, %v990_v22  ;;  %v992_v26 = vpop.f32.mrb[31].mxu0 }
 0x1a4   : > { %v1081_v27 = vadd.f32 %v2359_v11, %v1036_v21  ;;  %v1038_v28 = vmul.f32 %v2355_v8, %v992_v26  ;;  %1416 = vmatprep.mubr.bf16.mxu1 %v1129_v23 }
 0x1a5   : > { %v1082_v29 = vadd.f32 %v2357_v9, %v1037_v25  ;;  %1417 = vmatmul.mubr.bf16.gmra.mrb[24].mxu1 %v1128_v20  ;;  %v1112_v31 = vmax.f32 %v1080_v24, 0.0 }
 0x1a6   : > { %v1083_v30 = vadd.f32 %v2359_v11, %v1038_v28  ;;  %v1113_v33 = vmax.f32 %v1081_v27, 0.0 }
 0x1a7   : > { %v1114_v32 = vmax.f32 %v1082_v29, 0.0 }
 0x1a8   : > { %v1115_v34 = vmax.f32 %v1083_v30, 0.0 }
 0x1a9   : > { %v1130_v35 = vpack.c.bf16 %v1114_v32, %v1112_v31 }
 0x1aa   : > { %v1131_v36 = vpack.c.bf16 %v1115_v34, %v1113_v33 }
 0x1ac   : > { %1426 = vmatprep.mubr.bf16.mxu1 %v1131_v36 }
 0x1ad   : > { %1427 = vmatmul.mubr.bf16.gmra.mrb[28].mxu1 %v1130_v35 }
 0x248   : > { %v1358_v7 = vpop.f32.mrb[0].mxu1 }
 0x249   : > { %v1360_v37 = vpop.f32.mrb[1].mxu1  ;;  %v1480_v39 = vmul.f32 %v1358_v7, %v1358_v7 }
 0x24a   : > { %v1362_v38 = vpop.f32.mrb[2].mxu1  ;;  %v1481_v42 = vmul.f32 %v1360_v37, %v1360_v37 }
 0x24b   : > { %v1438_v40 = vadd.f32 %v1362_v38, %v1358_v7  ;;  %v1482_v8 = vmul.f32 %v1362_v38, %v1362_v38  ;;  %v1364_v41 = vpop.f32.mrb[3].mxu1 }
 0x24c   : > { %v1459_v9 = vadd.f32 %v1364_v41, %v1360_v37  ;;  %v1483_v43 = vmul.f32 %v1364_v41, %v1364_v41 }
 0x24d   : > { %v1512_v44 = vadd.f32 %v1482_v8, %v1480_v39 }
 0x24e   : > { %v1533_v11 = vadd.f32 %v1483_v43, %v1481_v42 }
 0x250   : > { %v1368_v45 = vpop.f32.mrb[4].mxu1 }
 0x251   : > { %v1439_v46 = vadd.f32 %v1438_v40, %v1368_v45  ;;  %v1484_v47 = vmul.f32 %v1368_v45, %v1368_v45  ;;  %v1370_v48 = vpop.f32.mrb[5].mxu1 }
 0x252   : > { %v1460_v49 = vadd.f32 %v1459_v9, %v1370_v48  ;;  %v1485_v50 = vmul.f32 %v1370_v48, %v1370_v48  ;;  %v1372_v51 = vpop.f32.mrb[6].mxu1 }
 0x253   : > { %v1513_v52 = vadd.f32 %v1512_v44, %v1484_v47  ;;  %v1440_v53 = vadd.f32 %v1439_v46, %v1372_v51  ;;  %v1486_v54 = vmul.f32 %v1372_v51, %v1372_v51  ;;  %v1374_v55 = vpop.f32.mrb[7].mxu1 }
 0x254   : > { %v1534_v56 = vadd.f32 %v1533_v11, %v1485_v50  ;;  %v1461_v57 = vadd.f32 %v1460_v49, %v1374_v55  ;;  %v1487_v58 = vmul.f32 %v1374_v55, %v1374_v55 }
 0x255   : > { %v1514_v59 = vadd.f32 %v1513_v52, %v1486_v54 }
 0x256   : > { %v1535_v60 = vadd.f32 %v1534_v56, %v1487_v58 }
 0x258   : > { %v1378_v61 = vpop.f32.mrb[8].mxu1 }
 0x259   : > { %v1441_v62 = vadd.f32 %v1440_v53, %v1378_v61  ;;  %v1488_v63 = vmul.f32 %v1378_v61, %v1378_v61  ;;  %v1380_v0 = vpop.f32.mrb[9].mxu1 }
 0x25a   : > { %v1462_v1 = vadd.f32 %v1461_v57, %v1380_v0  ;;  %v1489_v3 = vmul.f32 %v1380_v0, %v1380_v0  ;;  %v1382_v4 = vpop.f32.mrb[10].mxu1 }
 0x25b   : > { %v1515_v5 = vadd.f32 %v1514_v59, %v1488_v63  ;;  %v1442_v6 = vadd.f32 %v1441_v62, %v1382_v4  ;;  %v1490_v10 = vmul.f32 %v1382_v4, %v1382_v4  ;;  %v1384_v12 = vpop.f32.mrb[11].mxu1 }
 0x25c   : > { %v1536_v13 = vadd.f32 %v1535_v60, %v1489_v3  ;;  %v1463_v14 = vadd.f32 %v1462_v1, %v1384_v12  ;;  %v1491_v15 = vmul.f32 %v1384_v12, %v1384_v12 }
 0x25d   : > { %v1516_v16 = vadd.f32 %v1515_v5, %v1490_v10 }
 0x25e   : > { %v1537_v17 = vadd.f32 %v1536_v13, %v1491_v15 }
 0x260   : > { %v1388_v18 = vpop.f32.mrb[12].mxu1 }
 0x261   : > { %v1443_v19 = vadd.f32 %v1442_v6, %v1388_v18  ;;  %v1492_v20 = vmul.f32 %v1388_v18, %v1388_v18  ;;  %v1390_v21 = vpop.f32.mrb[13].mxu1 }
 0x262   : > { %v1464_v22 = vadd.f32 %v1463_v14, %v1390_v21  ;;  %v1493_v23 = vmul.f32 %v1390_v21, %v1390_v21  ;;  %v1392_v24 = vpop.f32.mrb[14].mxu1 }
 0x263   : > { %v1517_v25 = vadd.f32 %v1516_v16, %v1492_v20  ;;  %v1444_v26 = vadd.f32 %v1443_v19, %v1392_v24  ;;  %v1494_v27 = vmul.f32 %v1392_v24, %v1392_v24  ;;  %v1394_v28 = vpop.f32.mrb[15].mxu1 }
 0x264   : > { %v1538_v29 = vadd.f32 %v1537_v17, %v1493_v23  ;;  %v1465_v30 = vadd.f32 %v1464_v22, %v1394_v28  ;;  %v1495_v31 = vmul.f32 %v1394_v28, %v1394_v28 }
 0x265   : > { %v1518_v32 = vadd.f32 %v1517_v25, %v1494_v27 }
 0x266   : > { %v1539_v33 = vadd.f32 %v1538_v29, %v1495_v31 }
 0x268   : > { %v1398_v34 = vpop.f32.mrb[16].mxu1 }
 0x269   : > { %v1445_v35 = vadd.f32 %v1444_v26, %v1398_v34  ;;  %v1496_v36 = vmul.f32 %v1398_v34, %v1398_v34  ;;  %v1400_v7 = vpop.f32.mrb[17].mxu1 }
 0x26a   : > { %v1466_v37 = vadd.f32 %v1465_v30, %v1400_v7  ;;  %v1497_v38 = vmul.f32 %v1400_v7, %v1400_v7  ;;  %v1402_v39 = vpop.f32.mrb[18].mxu1 }
 0x26b   : > { %v1519_v40 = vadd.f32 %v1518_v32, %v1496_v36  ;;  %v1446_v8 = vadd.f32 %v1445_v35, %v1402_v39  ;;  %v1498_v41 = vmul.f32 %v1402_v39, %v1402_v39  ;;  %v1404_v42 = vpop.f32.mrb[19].mxu1 }
 0x26c   : > { %v1540_v9 = vadd.f32 %v1539_v33, %v1497_v38  ;;  %v1467_v43 = vadd.f32 %v1466_v37, %v1404_v42  ;;  %v1499_v44 = vmul.f32 %v1404_v42, %v1404_v42 }
 0x26d   : > { %v1520_v11 = vadd.f32 %v1519_v40, %v1498_v41 }
 0x26e   : > { %v1541_v45 = vadd.f32 %v1540_v9, %v1499_v44  ;;  %v1981_v44 = vmov 1983009808  }
 0x270   : > { %v1408_v46 = vpop.f32.mrb[20].mxu1 }
 0x271   : > { %v1447_v47 = vadd.f32 %v1446_v8, %v1408_v46  ;;  %v1500_v48 = vmul.f32 %v1408_v46, %v1408_v46  ;;  %v1410_v49 = vpop.f32.mrb[21].mxu1 }
 0x272   : > { %v1468_v50 = vadd.f32 %v1467_v43, %v1410_v49  ;;  %v1501_v51 = vmul.f32 %v1410_v49, %v1410_v49  ;;  %v1412_v52 = vpop.f32.mrb[22].mxu1 }
 0x273   : > { %v1521_v53 = vadd.f32 %v1520_v11, %v1500_v48  ;;  %v1448_v54 = vadd.f32 %v1447_v47, %v1412_v52  ;;  %v1502_v55 = vmul.f32 %v1412_v52, %v1412_v52  ;;  %v1414_v56 = vpop.f32.mrb[23].mxu1  ;;  %v1561_v11 = vunpack.c.l.s4 %v1981_v44 }
 0x274   : > { %v1542_v57 = vadd.f32 %v1541_v45, %v1501_v51  ;;  %v1469_v58 = vadd.f32 %v1468_v50, %v1414_v56  ;;  %v1503_v59 = vmul.f32 %v1414_v56, %v1414_v56 }
 0x275   : > { %v1522_v60 = vadd.f32 %v1521_v53, %v1502_v55  ;;  %v1562_v52 = vunpack.c.0.s8 %v1561_v11 }
 0x276   : > { %v1543_v61 = vadd.f32 %v1542_v57, %v1503_v59 }
 0x277   : > { %v1565_v59 = vsub.s32 %v1562_v52, %v2343_v2 }
 0x278   : > { %v1418_v62 = vpop.f32.mrb[24].mxu1 }
 0x279   : > { %v1449_v63 = vadd.f32 %v1448_v54, %v1418_v62  ;;  %v1504_v0 = vmul.f32 %v1418_v62, %v1418_v62  ;;  %v1420_v1 = vpop.f32.mrb[25].mxu1  ;;  %v1437_v62 = vld [vmem:[%s2439_s4] sm:$0xf] }
 0x27a   : > { %v1470_v3 = vadd.f32 %v1469_v58, %v1420_v1  ;;  %v1505_v4 = vmul.f32 %v1420_v1, %v1420_v1  ;;  %v1422_v5 = vpop.f32.mrb[26].mxu1 }
 0x27b   : > { %v1523_v6 = vadd.f32 %v1522_v60, %v1504_v0  ;;  %v1450_v10 = vadd.f32 %v1449_v63, %v1422_v5  ;;  %v1506_v12 = vmul.f32 %v1422_v5, %v1422_v5  ;;  %v1424_v13 = vpop.f32.mrb[27].mxu1 }
 0x27c   : > { %v1544_v14 = vadd.f32 %v1543_v61, %v1505_v4  ;;  %v1471_v15 = vadd.f32 %v1470_v3, %v1424_v13  ;;  %v1507_v16 = vmul.f32 %v1424_v13, %v1424_v13 }
 0x27d   : > { %v1524_v17 = vadd.f32 %v1523_v6, %v1506_v12 }
 0x27e   : > { %v1545_v18 = vadd.f32 %v1544_v14, %v1507_v16 }
 0x280   : > { %v1428_v19 = vpop.f32.mrb[28].mxu1 }
 0x281   : > { %v1451_v20 = vadd.f32 %v1450_v10, %v1428_v19  ;;  %v1508_v21 = vmul.f32 %v1428_v19, %v1428_v19  ;;  %v1430_v22 = vpop.f32.mrb[29].mxu1 }
 0x282   : > { %v1472_v23 = vadd.f32 %v1471_v15, %v1430_v22  ;;  %v1509_v24 = vmul.f32 %v1430_v22, %v1430_v22  ;;  %v1432_v25 = vpop.f32.mrb[30].mxu1 }
 0x283   : > { %v1525_v26 = vadd.f32 %v1524_v17, %v1508_v21  ;;  %v1452_v27 = vadd.f32 %v1451_v20, %v1432_v25  ;;  %v1510_v28 = vmul.f32 %v1432_v25, %v1432_v25  ;;  %v1434_v29 = vpop.f32.mrb[31].mxu1 }
 0x284   : > { %v1546_v30 = vadd.f32 %v1545_v18, %v1509_v24  ;;  %v1473_v31 = vadd.f32 %v1472_v23, %v1434_v29  ;;  %v1511_v32 = vmul.f32 %v1434_v29, %v1434_v29 }
 0x285   : > { %v1453_v33 = vrot.slane %v1452_v27, 4  ;;  %v1526_v34 = vadd.f32 %v1525_v26, %v1510_v28 }
 0x286   : > { %v1474_v35 = vrot.slane %v1473_v31, 4  ;;  %v1547_v36 = vadd.f32 %v1546_v30, %v1511_v32 }
 0x287   : > { %v1454_v7 = vadd.f32 %v1453_v33, %v1452_v27  ;;  %v1527_v37 = vrot.slane %v1526_v34, 4 }
 0x288   : > { %v1475_v38 = vadd.f32 %v1474_v35, %v1473_v31  ;;  %v1548_v39 = vrot.slane %v1547_v36, 4 }
 0x289   : > { %v1455_v40 = vrot.slane %v1454_v7, 2  ;;  %v1528_v8 = vadd.f32 %v1527_v37, %v1526_v34 }
 0x28a   : > { %v1476_v41 = vrot.slane %v1475_v38, 2  ;;  %v1549_v42 = vadd.f32 %v1548_v39, %v1547_v36 }
 0x28b   : > { %v1456_v9 = vadd.f32 %v1455_v40, %v1454_v7  ;;  %v1529_v43 = vrot.slane %v1528_v8, 2 }
 0x28c   : > { %v1477_v45 = vadd.f32 %v1476_v41, %v1475_v38  ;;  %v1550_v46 = vrot.slane %v1549_v42, 2 }
 0x28d   : > { %v1457_v47 = vrot.slane %v1456_v9, 1  ;;  %v1530_v48 = vadd.f32 %v1529_v43, %v1528_v8 }
 0x28e   : > { %v1478_v49 = vrot.slane %v1477_v45, 1  ;;  %v1551_v50 = vadd.f32 %v1550_v46, %v1549_v42 }
 0x28f   : > { %v1531_v51 = vrot.slane %v1530_v48, 1  ;;  %v1458_v54 = vadd.f32 %v1457_v47, %v1456_v9 }
 0x290   : > { %v1552_v53 = vrot.slane %v1551_v50, 1  ;;  %v1479_v56 = vadd.f32 %v1478_v49, %v1477_v45 }
 0x291   : > { %v1532_v55 = vadd.f32 %v1531_v51, %v1530_v48 }
 0x292   : > { %v1553_v57 = vadd.f32 %v1552_v53, %v1551_v50 }
 0x293   : > { %v1555_v58 = vsel %vm1554_vm0, %v1458_v54, %v1532_v55 }
 0x294   : > { %v1556_v60 = vsel %vm1554_vm0, %v1479_v56, %v1553_v57 }
 0x295   : > { %v1559_v61 = vcombine.low %v1555_v58, %v1556_v60 }
 0x297   : > { %v1566_v63 = vrot.slane %v1559_v61, %v1565_v59 }
 0x299   : > { %v1568_v0 = vadd.f32 %v1566_v63, %v1437_v62 }
 0x29b   : > { %1569 = vst [vmem:[%s2439_s4] sm:$0xf] %v1568_v0 }
 0x29c PF: > { %s14_s15 = sadd.s32 1, %s1978_s15  }
 0x29d   : > { %p11_p5 = scmp.ge.s32.totalorder %s14_s15, 4  }
 0x29f   :  { %13 = sbr.rel (!%p11_p5) target bundleno = 1 (0x1), region = 67 }

// kernel: ficlass_forward.5
= control target key start
LH: loop header
LB: loop body
LE: loop exit
PB: predicated region body
PF: predicated region fallthrough
CT: control target
= control target key end

     0   :  { %9 = vsyncpa [#allocation3], 0  ;;  %s2813_s0 = inlined_call_operand.vmem [shape: bf16[256,512], index: 0, kind: input, shape index: {}]   ;;  %s2814_s1 = inlined_call_operand.vmem [shape: bf16[512,256], index: 1, kind: input, shape index: {}]   ;;  %s2815_s2 = inlined_call_operand.vmem [shape: bf16[256,256], index: 2, kind: input, shape index: {}]   ;;  %s2816_s3 = inlined_call_operand.vmem [shape: f32[4,256], index: 3, kind: input, shape index: {}]   ;;  %s2817_s4 = inlined_call_operand.hbm [shape: f32[256,256], index: 4, kind: output, shape index: {}]  }
   0x1   :  { %11 = vsyncpa [#allocation3 + $0x1], 0  ;;  %s2182_s15 = smov 0   ;;  %s2184_s16 = smov 0  }
   0x2   :  { %s2186_s17 = smov 0   ;;  %s2188_s18 = smov 0  }
   0x3 LB: > { %s2203_s19 = sadd.s32 4294967295, %s2152_s18   ;;  %s1677_s20 = sadd.s32 4294967294, %s2152_s18   ;;  %s2152_s18 = sphi %s2188_s18, %s2823_s18   ;;  %s2148_s17 = sphi %s2186_s17, %s2822_s17   ;;  %s2144_s16 = sphi %s2184_s16, %s2821_s16   ;;  %s2140_s15 = sphi %s2182_s15, %s2820_s15  }
   0x4   : > { %s2207_s21 = sadd.s32 1, %s2152_s18   ;;  %s113_s22 = sadd.s32 1, %s2148_s17 }
   0x5   : > { %s110_s23 = ssub.s32 %s2152_s18, %s2207_s21  ;;  %p123_p0 = scmp.ne.s32.totalorder %s2148_s17, %s2144_s16 }
   0x6   : > { %p111_p1 = scmp.eq.s32.totalorder %s110_s23, 0  ;;  %p124_p2 = scmp.eq.s32.totalorder %s2203_s19, 1 }
   0x7   : > { %p129_p3 = scmp.ne.s32.totalorder %s2144_s16, %s2140_s15  ;;  %p130_p4 = scmp.eq.s32.totalorder %s1677_s20, 1 }
   0x8   : > { %s2218_s24 = scalar_select %p111_p1, %s2148_s17, %s113_s22  }
   0x9   : > { %p2220_p5 = por %p124_p2, %p123_p0  ;;  %p2224_p6 = por %p130_p4, %p129_p3 }
   0xa   : > { %p1680_p7 = scmp.ge.s32.totalorder %s2152_s18, 1  ;;  %p167_p8 = scmp.lt.s32.totalorder %s2152_s18, 3 }
   0xc   : > { %p168_p9 = pnand %p1680_p7, %p167_p8 }
   0xd   : > { %v1898_v0 = vld [vmem:[%s2814_s1 + $0x4] ss:$8 sps:$4 sm:$0xff] (!%p168_p9)   ;;  %v1900_v1 = vld [vmem:[%s2814_s1] ss:$8 sps:$4 sm:$0xff] (!%p168_p9)   ;;  %v1901_v2 = vld [vmem:[%s2814_s1 + $0x14] ss:$8 sps:$4 sm:$0xff] (!%p168_p9)  }
   0xe   : > { %171 = sbr.rel (%p168_p9) target bundleno = 658 (0x292), region = 36  ;;  %778 = vmatprep.subr.bf16.mxu0 (!%p168_p9), %v1898_v0  ;;  %v1903_v3 = vld [vmem:[%s2814_s1 + $0x10] ss:$8 sps:$4 sm:$0xff] (!%p168_p9)   ;;  %v1904_v4 = vld [vmem:[%s2814_s1 + $0x24] ss:$8 sps:$4 sm:$0xff] (!%p168_p9)   ;;  %s1682_s11 = sshll.u32 (!%p168_p9), %s2203_s19, 4 }
   0xf   : > { %779 = vmatpush1.bf16.msra.mxu0 (!%p168_p9), %v1900_v1  ;;  %v1906_v5 = vld [vmem:[%s2814_s1 + $0x20] ss:$8 sps:$4 sm:$0xff] (!%p168_p9)   ;;  %v1907_v6 = vld [vmem:[%s2814_s1 + $0x34] ss:$8 sps:$4 sm:$0xff] (!%p168_p9)   ;;  %p195_p10 = scmp.lt.s32.totalorder (!%p168_p9), %s1682_s11, 31  ;;  %s191_s12 = sand.u32 (!%p168_p9), 1, %s2144_s16  }
  0x10   : > { %780 = vmatprep.subr.bf16.mxu0 (!%p168_p9), %v1901_v2  ;;  %v1909_v7 = vld [vmem:[%s2814_s1 + $0x30] ss:$8 sps:$4 sm:$0xff] (!%p168_p9)   ;;  %v1910_v8 = vld [vmem:[%s2814_s1 + $0x44] ss:$8 sps:$4 sm:$0xff] (!%p168_p9)   ;;  %v1912_v9 = vld [vmem:[%s2814_s1 + $0x40] ss:$8 sps:$4 sm:$0xff] (!%p168_p9)  }
  0x11   : > { %v1913_v10 = vld [vmem:[%s2814_s1 + $0x54] ss:$8 sps:$4 sm:$0xff] (!%p168_p9)   ;;  %v1915_v11 = vld [vmem:[%s2814_s1 + $0x50] ss:$8 sps:$4 sm:$0xff] (!%p168_p9)   ;;  %v1916_v12 = vld [vmem:[%s2814_s1 + $0x64] ss:$8 sps:$4 sm:$0xff] (!%p168_p9)  }
  0x12   : > { %v1918_v14 = vld [vmem:[%s2814_s1 + $0x60] ss:$8 sps:$4 sm:$0xff] (!%p168_p9)   ;;  %v1919_v15 = vld [vmem:[%s2814_s1 + $0x74] ss:$8 sps:$4 sm:$0xff] (!%p168_p9)   ;;  %v1921_v16 = vld [vmem:[%s2814_s1 + $0x70] ss:$8 sps:$4 sm:$0xff] (!%p168_p9)  }
  0x13   : > { %781 = vmatpush1.bf16.msra.mxu0 (!%p168_p9), %v1903_v3  ;;  %v1922_v17 = vld [vmem:[%s2814_s1 + $0x84] ss:$8 sps:$4 sm:$0xff] (!%p168_p9)   ;;  %v1924_v18 = vld [vmem:[%s2814_s1 + $0x80] ss:$8 sps:$4 sm:$0xff] (!%p168_p9)   ;;  %v1925_v19 = vld [vmem:[%s2814_s1 + $0x94] ss:$8 sps:$4 sm:$0xff] (!%p168_p9)  }
  0x14   : > { %782 = vmatprep.subr.bf16.mxu0 (!%p168_p9), %v1904_v4  ;;  %v1927_v20 = vld [vmem:[%s2814_s1 + $0x90] ss:$8 sps:$4 sm:$0xff] (!%p168_p9)   ;;  %v1928_v21 = vld [vmem:[%s2814_s1 + $0xa4] ss:$8 sps:$4 sm:$0xff] (!%p168_p9)   ;;  %v1930_v22 = vld [vmem:[%s2814_s1 + $0xa0] ss:$8 sps:$4 sm:$0xff] (!%p168_p9)  }
  0x15   : > { %s2825_s11 = smov (!%p195_p10, %s1682_s11), 31  ;;  %v1931_v23 = vld [vmem:[%s2814_s1 + $0xb4] ss:$8 sps:$4 sm:$0xff]   ;;  %v1933_v24 = vld [vmem:[%s2814_s1 + $0xb0] ss:$8 sps:$4 sm:$0xff]   ;;  %s1681_s14 = sshll.u32 %s191_s12, 8 }
  0x16   : > { %s1822_s7 = sshll.u32 %s2825_s11, 4  ;;  %v1934_v25 = vld [vmem:[%s2814_s1 + $0xc4] ss:$8 sps:$4 sm:$0xff]   ;;  %v1936_v26 = vld [vmem:[%s2814_s1 + $0xc0] ss:$8 sps:$4 sm:$0xff]   ;;  %s2671_s20 = scalar_lea.vmem [#allocation2], %s1681_s14 }
  0x17   : > { %783 = vmatpush1.bf16.msra.mxu0 %v1906_v5  ;;  %s2270_s13 = scalar_lea.vmem %s2813_s0, %s1822_s7  ;;  %v1937_v27 = vld [vmem:[%s2814_s1 + $0xd4] ss:$8 sps:$4 sm:$0xff]   ;;  %v1939_v28 = vld [vmem:[%s2814_s1 + $0xd0] ss:$8 sps:$4 sm:$0xff]   ;;  %v1940_v29 = vld [vmem:[%s2814_s1 + $0xe4] ss:$8 sps:$4 sm:$0xff]  }
  0x18   : > { %784 = vmatprep.subr.bf16.mxu0 %v1907_v6  ;;  %v1948_v13 = vld [vmem:[%s2270_s13 + $0x4] ss:$16 sps:$4 sm:$0xff]   ;;  %v1942_v30 = vld [vmem:[%s2814_s1 + $0xe0] ss:$8 sps:$4 sm:$0xff]   ;;  %v1945_v32 = vld [vmem:[%s2814_s1 + $0xf0] ss:$8 sps:$4 sm:$0xff]  }
  0x19   : > { %810 = vmatprep.mubr.bf16.mxu0 %v1948_v13  ;;  %v1943_v31 = vld [vmem:[%s2814_s1 + $0xf4] ss:$8 sps:$4 sm:$0xff]   ;;  %v1951_v33 = vld [vmem:[%s2814_s1 + $0x104] ss:$8 sps:$4 sm:$0xff]   ;;  %v1946_v34 = vld [vmem:[%s2270_s13] ss:$16 sps:$4 sm:$0xff]  }
  0x1a   : > { %v1949_v35 = vld [vmem:[%s2814_s1 + $0x100] ss:$8 sps:$4 sm:$0xff]   ;;  %v1954_v36 = vld [vmem:[%s2814_s1 + $0x114] ss:$8 sps:$4 sm:$0xff]   ;;  %v2042_v38 = vld [vmem:[%s2815_s2 + $0x4] ss:$8 sps:$4 sm:$0xff]  }
  0x1b   : > { %785 = vmatpush1.bf16.msra.mxu0 %v1909_v7  ;;  %v1955_v37 = vld [vmem:[%s2270_s13 + $0x24] ss:$16 sps:$4 sm:$0xff]   ;;  %v2044_v39 = vld [vmem:[%s2815_s2] ss:$8 sps:$4 sm:$0xff]   ;;  %1333 = vmatprep.subr.bf16.mxu1 %v2042_v38  ;;  %v1952_v41 = vld [vmem:[%s2814_s1 + $0x110] ss:$8 sps:$4 sm:$0xff]  }
  0x1c   : > { %786 = vmatprep.subr.bf16.mxu0 %v1910_v8  ;;  %v2045_v40 = vld [vmem:[%s2815_s2 + $0x14] ss:$8 sps:$4 sm:$0xff]   ;;  %v1960_v42 = vld [vmem:[%s2814_s1 + $0x124] ss:$8 sps:$4 sm:$0xff]   ;;  %1334 = vmatpush1.bf16.msra.mxu1 %v2044_v39  ;;  %v2047_v43 = vld [vmem:[%s2815_s2 + $0x10] ss:$8 sps:$4 sm:$0xff]  }
  0x1d   : > { %1335 = vmatprep.subr.bf16.mxu1 %v2045_v40  ;;  %v2048_v44 = vld [vmem:[%s2815_s2 + $0x24] ss:$8 sps:$4 sm:$0xff]   ;;  %v1957_v45 = vld [vmem:[%s2270_s13 + $0x20] ss:$16 sps:$4 sm:$0xff]   ;;  %v1963_v47 = vld [vmem:[%s2814_s1 + $0x134] ss:$8 sps:$4 sm:$0xff]  }
  0x1e   : > { %v1958_v46 = vld [vmem:[%s2814_s1 + $0x120] ss:$8 sps:$4 sm:$0xff]   ;;  %v1964_v48 = vld [vmem:[%s2270_s13 + $0x44] ss:$16 sps:$4 sm:$0xff]   ;;  %v1961_v51 = vld [vmem:[%s2814_s1 + $0x130] ss:$8 sps:$4 sm:$0xff]  }
  0x1f   : > { %787 = vmatpush1.bf16.msra.mxu0 %v1912_v9  ;;  %v2050_v49 = vld [vmem:[%s2815_s2 + $0x20] ss:$8 sps:$4 sm:$0xff]   ;;  %v2051_v50 = vld [vmem:[%s2815_s2 + $0x34] ss:$8 sps:$4 sm:$0xff]   ;;  %v1969_v52 = vld [vmem:[%s2814_s1 + $0x144] ss:$8 sps:$4 sm:$0xff]  }
  0x20   : > { %788 = vmatprep.subr.bf16.mxu0 %v1913_v10  ;;  %1336 = vmatpush1.bf16.msra.mxu1 %v2047_v43  ;;  %v2053_v53 = vld [vmem:[%s2815_s2 + $0x30] ss:$8 sps:$4 sm:$0xff]   ;;  %v2054_v54 = vld [vmem:[%s2815_s2 + $0x44] ss:$8 sps:$4 sm:$0xff]   ;;  %v1967_v56 = vld [vmem:[%s2814_s1 + $0x140] ss:$8 sps:$4 sm:$0xff]  }
  0x21   : > { %1337 = vmatprep.subr.bf16.mxu1 %v2048_v44  ;;  %v1966_v55 = vld [vmem:[%s2270_s13 + $0x40] ss:$16 sps:$4 sm:$0xff]   ;;  %v1972_v57 = vld [vmem:[%s2814_s1 + $0x154] ss:$8 sps:$4 sm:$0xff]   ;;  %v1978_v62 = vld [vmem:[%s2814_s1 + $0x164] ss:$8 sps:$4 sm:$0xff]  }
  0x22   : > { %v1973_v58 = vld [vmem:[%s2270_s13 + $0x64] ss:$16 sps:$4 sm:$0xff]   ;;  %v2056_v59 = vld [vmem:[%s2815_s2 + $0x40] ss:$8 sps:$4 sm:$0xff]   ;;  %v1970_v61 = vld [vmem:[%s2814_s1 + $0x150] ss:$8 sps:$4 sm:$0xff]  }
  0x23   : > { %789 = vmatpush1.bf16.msra.mxu0 %v1915_v11  ;;  %v2057_v60 = vld [vmem:[%s2815_s2 + $0x54] ss:$8 sps:$4 sm:$0xff]   ;;  %v2059_v63 = vld [vmem:[%s2815_s2 + $0x50] ss:$8 sps:$4 sm:$0xff]   ;;  %v2060_v0 = vld [vmem:[%s2815_s2 + $0x64] ss:$8 sps:$4 sm:$0xff]  }
  0x24   : > { %790 = vmatprep.subr.bf16.mxu0 %v1916_v12  ;;  %1338 = vmatpush1.bf16.msra.mxu1 %v2050_v49  ;;  %v1975_v1 = vld [vmem:[%s2270_s13 + $0x60] ss:$16 sps:$4 sm:$0xff]   ;;  %v1982_v3 = vld [vmem:[%s2270_s13 + $0x84] ss:$16 sps:$4 sm:$0xff]   ;;  %v2020_v40 = vld [vmem:[%s2270_s13 + $0xc] ss:$16 sps:$4 sm:$0xff]  }
  0x25   : > { %1339 = vmatprep.subr.bf16.mxu1 %v2051_v50  ;;  %v1976_v2 = vld [vmem:[%s2814_s1 + $0x160] ss:$8 sps:$4 sm:$0xff]   ;;  %v1981_v4 = vld [vmem:[%s2814_s1 + $0x174] ss:$8 sps:$4 sm:$0xff]   ;;  %v1979_v7 = vld [vmem:[%s2814_s1 + $0x170] ss:$8 sps:$4 sm:$0xff]  }
  0x26   : > { %v2062_v5 = vld [vmem:[%s2815_s2 + $0x60] ss:$8 sps:$4 sm:$0xff]   ;;  %v2063_v6 = vld [vmem:[%s2815_s2 + $0x74] ss:$8 sps:$4 sm:$0xff]   ;;  %v1987_v8 = vld [vmem:[%s2814_s1 + $0x184] ss:$8 sps:$4 sm:$0xff]  }
  0x27   : > { %791 = vmatpush1.bf16.msra.mxu0 %v1918_v14  ;;  %v2065_v9 = vld [vmem:[%s2815_s2 + $0x70] ss:$8 sps:$4 sm:$0xff]   ;;  %v2066_v10 = vld [vmem:[%s2815_s2 + $0x84] ss:$8 sps:$4 sm:$0xff]   ;;  %v1985_v12 = vld [vmem:[%s2814_s1 + $0x180] ss:$8 sps:$4 sm:$0xff]  }
  0x28   : > { %792 = vmatprep.subr.bf16.mxu0 %v1919_v15  ;;  %1340 = vmatpush1.bf16.msra.mxu1 %v2053_v53  ;;  %v1984_v11 = vld [vmem:[%s2270_s13 + $0x80] ss:$16 sps:$4 sm:$0xff]   ;;  %v1991_v13 = vld [vmem:[%s2270_s13 + $0xa4] ss:$16 sps:$4 sm:$0xff]   ;;  %v2018_v43 = vld [vmem:[%s2270_s13 + $0x8] ss:$16 sps:$4 sm:$0xff]  }
  0x29   : > { %1341 = vmatprep.subr.bf16.mxu1 %v2054_v54  ;;  %v1990_v14 = vld [vmem:[%s2814_s1 + $0x194] ss:$8 sps:$4 sm:$0xff]   ;;  %v2068_v15 = vld [vmem:[%s2815_s2 + $0x80] ss:$8 sps:$4 sm:$0xff]   ;;  %s1824_s22 = sshll.u32 %s2203_s19, 12  ;;  %s1615_s11 = sshll.u32 %s2671_s20, 4  ;;  %s2765_s11 = int_to_ptr.vmem [resolvable:$true] %s1615_s11 }
  0x2a   : > { %v2011_v38 = vld [vmem:[%s2270_s13 + $0xe0] ss:$16 sps:$4 sm:$0xff]   ;;  %v2021_v44 = vld [vmem:[%s2270_s13 + $0x2c] ss:$16 sps:$4 sm:$0xff]   ;;  %v2029_v49 = vld [vmem:[%s2270_s13 + $0x68] ss:$16 sps:$4 sm:$0xff]   ;;  %s2763_s27 = scalar_lea.hbm %s2817_s4, %s1824_s22 }
  0x2b   : > { %793 = vmatpush1.bf16.msra.mxu0 %v1921_v16  ;;  %v2069_v16 = vld [vmem:[%s2815_s2 + $0x94] ss:$8 sps:$4 sm:$0xff]   ;;  %v2012_v39 = vld [vmem:[%s2814_s1 + $0x1e0] ss:$8 sps:$4 sm:$0xff]   ;;  %s2772_s19 = scalar_lea.sflag [#allocation3], %s191_s12  ;;  %s2090_s28 = scalar_lea.vmem %s2765_s11, 4096 }
  0x2c   : > { %794 = vmatprep.subr.bf16.mxu0 %v1922_v17  ;;  %1342 = vmatpush1.bf16.msra.mxu1 %v2056_v59  ;;  %v1988_v17 = vld [vmem:[%s2814_s1 + $0x190] ss:$8 sps:$4 sm:$0xff]   ;;  %v2030_v50 = vld [vmem:[%s2270_s13 + $0x8c] ss:$16 sps:$4 sm:$0xff]   ;;  %p2091_p11 = scmp.ne.s32.totalorder %s2765_s11, %s2090_s28  ;;  %s2154_s29 = smov [#allocation2]  }
  0x2d   : > { %1343 = vmatprep.subr.bf16.mxu1 %v2057_v60  ;;  %v2035_v53 = vld [vmem:[%s2270_s13 + $0xa8] ss:$16 sps:$4 sm:$0xff]   ;;  %v2036_v54 = vld [vmem:[%s2270_s13 + $0xcc] ss:$16 sps:$4 sm:$0xff]   ;;  %s2094_s30 = sshll.u32 %s2154_s29, 4  ;;  %s2095_s30 = int_to_ptr.vmem [resolvable:$false] %s2094_s30 }
  0x2e   : > { %v2083_v59 = vld [vmem:[%s2815_s2 + $0xd0] ss:$8 sps:$4 sm:$0xff]   ;;  %v2084_v60 = vld [vmem:[%s2815_s2 + $0xe4] ss:$8 sps:$4 sm:$0xff]   ;;  %p2092_p12 = pnand %p2091_p11, %p2220_p5  ;;  %s2096_s5 = scalar_lea.vmem %s2095_s30, 8192 }
  0x2f   : > { %795 = vmatpush1.bf16.msra.mxu0 %v1924_v18  ;;  %v1996_v18 = vld [vmem:[%s2814_s1 + $0x1a4] ss:$8 sps:$4 sm:$0xff]   ;;  %p2097_p0 = scmp.lt.s32.totalorder %s2765_s11, %s2095_s30  ;;  %p2098_p1 = scmp.lt.s32.totalorder %s2096_s5, %s2090_s28 }
  0x30   : > { %796 = vmatprep.subr.bf16.mxu0 %v1925_v19  ;;  %1344 = vmatpush1.bf16.msra.mxu1 %v2059_v63  ;;  %v2071_v19 = vld [vmem:[%s2815_s2 + $0x90] ss:$8 sps:$4 sm:$0xff]   ;;  %p2093_p13 = pneg %p2092_p12 }
  0x31   : > { %1345 = vmatprep.subr.bf16.mxu1 %v2060_v0  ;;  %v2089_v63 = vld [vmem:[%s2815_s2 + $0xf0] ss:$8 sps:$4 sm:$0xff]   ;;  %v1006_v0 = vlaneseq  ;;  %p2099_p2 = por %p2098_p1, %p2097_p0 }
  0x33   : > { %797 = vmatpush1.bf16.msra.mxu0 %v1927_v20  ;;  %v2072_v20 = vld [vmem:[%s2815_s2 + $0xa4] ss:$8 sps:$4 sm:$0xff]   ;;  %p2100_p3 = pnand %p2099_p2, %p2093_p13 }
  0x34   : > { %798 = vmatprep.subr.bf16.mxu0 %v1928_v21  ;;  %1346 = vmatpush1.bf16.msra.mxu1 %v2062_v5  ;;  %v1993_v21 = vld [vmem:[%s2270_s13 + $0xa0] ss:$16 sps:$4 sm:$0xff]  }
  0x35   : > { %1347 = vmatprep.subr.bf16.mxu1 %v2063_v6  ;;  %v1781_v5 = vld [vmem:[%s2816_s3 + $0x1] ss:$4 sm:$0x3] }
  0x37   : > { %799 = vmatpush1.bf16.msra.mxu0 %v1930_v22  ;;  %v1994_v22 = vld [vmem:[%s2814_s1 + $0x1a0] ss:$8 sps:$4 sm:$0xff]  }
  0x38   : > { %800 = vmatprep.subr.bf16.mxu0 %v1931_v23  ;;  %1348 = vmatpush1.bf16.msra.mxu1 %v2065_v9  ;;  %v2000_v23 = vld [vmem:[%s2270_s13 + $0xc4] ss:$16 sps:$4 sm:$0xff]  }
  0x39   : > { %1349 = vmatprep.subr.bf16.mxu1 %v2066_v10 }
  0x3b   : > { %801 = vmatpush1.bf16.msra.mxu0 %v1933_v24  ;;  %v1999_v24 = vld [vmem:[%s2814_s1 + $0x1b4] ss:$8 sps:$4 sm:$0xff]  }
  0x3c   : > { %802 = vmatprep.subr.bf16.mxu0 %v1934_v25  ;;  %1350 = vmatpush1.bf16.msra.mxu1 %v2068_v15  ;;  %v2074_v25 = vld [vmem:[%s2815_s2 + $0xa0] ss:$8 sps:$4 sm:$0xff]  }
  0x3d   : > { %1351 = vmatprep.subr.bf16.mxu1 %v2069_v16 }
  0x3f   : > { %803 = vmatpush1.bf16.msra.mxu0 %v1936_v26  ;;  %v2075_v26 = vld [vmem:[%s2815_s2 + $0xb4] ss:$8 sps:$4 sm:$0xff]  }
  0x40   : > { %804 = vmatprep.subr.bf16.mxu0 %v1937_v27  ;;  %1352 = vmatpush1.bf16.msra.mxu1 %v2071_v19  ;;  %v1997_v27 = vld [vmem:[%s2814_s1 + $0x1b0] ss:$8 sps:$4 sm:$0xff]  }
  0x41   : > { %1353 = vmatprep.subr.bf16.mxu1 %v2072_v20 }
  0x43   : > { %805 = vmatpush1.bf16.msra.mxu0 %v1939_v28  ;;  %v2005_v28 = vld [vmem:[%s2814_s1 + $0x1c4] ss:$8 sps:$4 sm:$0xff]  }
  0x44   : > { %806 = vmatprep.subr.bf16.mxu0 %v1940_v29  ;;  %1354 = vmatpush1.bf16.msra.mxu1 %v2074_v25  ;;  %v2077_v29 = vld [vmem:[%s2815_s2 + $0xb0] ss:$8 sps:$4 sm:$0xff]  }
  0x45   : > { %1355 = vmatprep.subr.bf16.mxu1 %v2075_v26 }
  0x47   : > { %807 = vmatpush1.bf16.msra.mxu0 %v1942_v30  ;;  %v2078_v30 = vld [vmem:[%s2815_s2 + $0xc4] ss:$8 sps:$4 sm:$0xff]  }
  0x48   : > { %808 = vmatprep.subr.bf16.mxu0 %v1943_v31  ;;  %v2002_v31 = vld [vmem:[%s2270_s13 + $0xc0] ss:$16 sps:$4 sm:$0xff]   ;;  %1356 = vmatpush1.bf16.msra.mxu1 %v2077_v29 }
  0x49   : > { %1357 = vmatprep.subr.bf16.mxu1 %v2078_v30 }
  0x4b   : > { %809 = vmatpush1.bf16.msra.mxu0 %v1945_v32  ;;  %v2003_v32 = vld [vmem:[%s2814_s1 + $0x1c0] ss:$8 sps:$4 sm:$0xff]  }
  0x4c   : > { %891 = vmatprep.subr.bf16.mxu0 %v1951_v33  ;;  %v2009_v33 = vld [vmem:[%s2270_s13 + $0xe4] ss:$16 sps:$4 sm:$0xff]  }
  0x4e   : > { %811 = vmatmul.mubr.bf16.vlgmr.msra.gmra.mrb[0].mxu0 %v1946_v34  ;;  %v2008_v34 = vld [vmem:[%s2814_s1 + $0x1d4] ss:$8 sps:$4 sm:$0xff]  }
  0x4f   : > { %892 = vmatpush1.bf16.msra.mxu0 %v1949_v35  ;;  %820 = vmatprep.mubr.bf16.mxu0 %v1955_v37  ;;  %v2080_v35 = vld [vmem:[%s2815_s2 + $0xc0] ss:$8 sps:$4 sm:$0xff]   ;;  %v2014_v37 = vld [vmem:[%s2814_s1 + $0x1e4] ss:$8 sps:$4 sm:$0xff]  }
  0x50   : > { %893 = vmatprep.subr.bf16.mxu0 %v1954_v36  ;;  %v2006_v36 = vld [vmem:[%s2814_s1 + $0x1d0] ss:$8 sps:$4 sm:$0xff]   ;;  %1358 = vmatpush1.bf16.msra.mxu1 %v2080_v35 }
  0x53   : > { %894 = vmatpush1.bf16.msra.mxu0 %v1952_v41  ;;  %v2017_v41 = vld [vmem:[%s2814_s1 + $0x1f4] ss:$8 sps:$4 sm:$0xff]  }
  0x54   : > { %895 = vmatprep.subr.bf16.mxu0 %v1960_v42  ;;  %v2015_v42 = vld [vmem:[%s2814_s1 + $0x1f0] ss:$8 sps:$4 sm:$0xff]  }
  0x56   : > { %821 = vmatmul.mubr.bf16.gmra.mrb[4].mxu0 %v1957_v45  ;;  %v2023_v45 = vld [vmem:[%s2270_s13 + $0x28] ss:$16 sps:$4 sm:$0xff]  }
  0x57   : > { %896 = vmatpush1.bf16.msra.mxu0 %v1958_v46  ;;  %830 = vmatprep.mubr.bf16.mxu0 %v1964_v48  ;;  %v2024_v46 = vld [vmem:[%s2270_s13 + $0x4c] ss:$16 sps:$4 sm:$0xff]  }
  0x58   : > { %897 = vmatprep.subr.bf16.mxu0 %v1963_v47  ;;  %v2026_v47 = vld [vmem:[%s2270_s13 + $0x48] ss:$16 sps:$4 sm:$0xff]   ;;  %v2027_v48 = vld [vmem:[%s2270_s13 + $0x6c] ss:$16 sps:$4 sm:$0xff]  }
  0x5b   : > { %898 = vmatpush1.bf16.msra.mxu0 %v1961_v51  ;;  %v2032_v51 = vld [vmem:[%s2270_s13 + $0x88] ss:$16 sps:$4 sm:$0xff]  }
  0x5c   : > { %899 = vmatprep.subr.bf16.mxu0 %v1969_v52  ;;  %v2033_v52 = vld [vmem:[%s2270_s13 + $0xac] ss:$16 sps:$4 sm:$0xff]  }
  0x5e   : > { %831 = vmatmul.mubr.bf16.gmra.mrb[8].mxu0 %v1966_v55  ;;  %v2038_v55 = vld [vmem:[%s2270_s13 + $0xc8] ss:$16 sps:$4 sm:$0xff]  }
  0x5f   : > { %900 = vmatpush1.bf16.msra.mxu0 %v1967_v56  ;;  %840 = vmatprep.mubr.bf16.mxu0 %v1973_v58  ;;  %v2039_v56 = vld [vmem:[%s2270_s13 + $0xec] ss:$16 sps:$4 sm:$0xff]  }
  0x60   : > { %901 = vmatprep.subr.bf16.mxu0 %v1972_v57  ;;  %v2041_v57 = vld [vmem:[%s2270_s13 + $0xe8] ss:$16 sps:$4 sm:$0xff]   ;;  %v2081_v58 = vld [vmem:[%s2815_s2 + $0xd4] ss:$8 sps:$4 sm:$0xff]  }
  0x61   : > { %1359 = vmatprep.subr.bf16.mxu1 %v2081_v58 }
  0x62   : > { %1360 = vmatpush1.bf16.msra.mxu1 %v2083_v59 }
  0x63   : > { %902 = vmatpush1.bf16.msra.mxu0 %v1970_v61  ;;  %v2086_v61 = vld [vmem:[%s2815_s2 + $0xe0] ss:$8 sps:$4 sm:$0xff]   ;;  %1361 = vmatprep.subr.bf16.mxu1 %v2084_v60 }
  0x64   : > { %903 = vmatprep.subr.bf16.mxu0 %v1978_v62  ;;  %v2087_v62 = vld [vmem:[%s2815_s2 + $0xf4] ss:$8 sps:$4 sm:$0xff]  }
  0x66   : > { %841 = vmatmul.mubr.bf16.gmra.mrb[12].mxu0 %v1975_v1  ;;  %1362 = vmatpush1.bf16.msra.mxu1 %v2086_v61  ;;  %v1007_v1 = vshrl.u32 %v1006_v0, 7 }
  0x67   : > { %904 = vmatpush1.bf16.msra.mxu0 %v1976_v2  ;;  %850 = vmatprep.mubr.bf16.mxu0 %v1982_v3  ;;  %v1004_v3 = vld [vmem:[%s2816_s3] ss:$4 sm:$0x3] }
  0x68   : > { %905 = vmatprep.subr.bf16.mxu0 %v1981_v4  ;;  %1363 = vmatprep.subr.bf16.mxu1 %v2087_v62  ;;  %v2556_v2 = vsub.s32 0, %v1007_v1  ;;  %v2561_v4 = vsub.s32 1, %v1007_v1 }
  0x6a   : > { %1364 = vmatpush1.bf16.msra.mxu1 %v2089_v63  ;;  %v2567_v6 = vrot.slane %v1004_v3, %v2556_v2  ;;  %v2576_v10 = vrot.slane %v1781_v5, %v2561_v4 }
  0x6b   : > { %906 = vmatpush1.bf16.msra.mxu0 %v1979_v7  ;;  %v2570_v7 = vrot.slane %v1004_v3, %v2561_v4 }
  0x6c   : > { %907 = vmatprep.subr.bf16.mxu0 %v1987_v8  ;;  %v2573_v8 = vrot.slane %v1781_v5, %v2556_v2 }
  0x6e   : > { %851 = vmatmul.mubr.bf16.gmra.mrb[16].mxu0 %v1984_v11 }
  0x6f   : > { %908 = vmatpush1.bf16.msra.mxu0 %v1985_v12  ;;  %860 = vmatprep.mubr.bf16.mxu0 %v1991_v13 }
  0x70   : > { %909 = vmatprep.subr.bf16.mxu0 %v1990_v14 }
  0x73   : > { %910 = vmatpush1.bf16.msra.mxu0 %v1988_v17 }
  0x74   : > { %911 = vmatprep.subr.bf16.mxu0 %v1996_v18 }
  0x76   : > { %861 = vmatmul.mubr.bf16.gmra.mrb[20].mxu0 %v1993_v21 }
  0x77   : > { %912 = vmatpush1.bf16.msra.mxu0 %v1994_v22  ;;  %870 = vmatprep.mubr.bf16.mxu0 %v2000_v23 }
  0x78   : > { %913 = vmatprep.subr.bf16.mxu0 %v1999_v24 }
  0x7b   : > { %914 = vmatpush1.bf16.msra.mxu0 %v1997_v27 }
  0x7c   : > { %915 = vmatprep.subr.bf16.mxu0 %v2005_v28 }
  0x7e   : > { %871 = vmatmul.mubr.bf16.gmra.mrb[24].mxu0 %v2002_v31 }
  0x7f   : > { %916 = vmatpush1.bf16.msra.mxu0 %v2003_v32  ;;  %880 = vmatprep.mubr.bf16.mxu0 %v2009_v33 }
  0x80   : > { %917 = vmatprep.subr.bf16.mxu0 %v2008_v34 }
  0x83   : > { %918 = vmatpush1.bf16.msra.mxu0 %v2006_v36 }
  0x84   : > { %919 = vmatprep.subr.bf16.mxu0 %v2014_v37 }
  0x86   : > { %881 = vmatmul.mubr.bf16.gmra.mrb[28].mxu0 %v2011_v38 }
  0x87   : > { %920 = vmatpush1.bf16.msra.mxu0 %v2012_v39  ;;  %923 = vmatprep.mubr.bf16.mxu0 %v2020_v40 }
  0x88   : > { %921 = vmatprep.subr.bf16.mxu0 %v2017_v41 }
  0x8b   : > { %922 = vmatpush1.bf16.msra.mxu0 %v2015_v42 }
  0x8e   : > { %924 = vmatmul.mubr.bf16.vlgmr.msra.gmra.mrb[0].mxu0 %v2018_v43 }
  0x8f   : > { %933 = vmatprep.mubr.bf16.mxu0 %v2021_v44 }
  0x96   : > { %934 = vmatmul.mubr.bf16.gmra.mrb[4].mxu0 %v2023_v45 }
  0x97   : > { %943 = vmatprep.mubr.bf16.mxu0 %v2024_v46 }
  0x9e   : > { %944 = vmatmul.mubr.bf16.gmra.mrb[8].mxu0 %v2026_v47 }
  0x9f   : > { %953 = vmatprep.mubr.bf16.mxu0 %v2027_v48 }
  0xa6   : > { %954 = vmatmul.mubr.bf16.gmra.mrb[12].mxu0 %v2029_v49 }
  0xa7   : > { %963 = vmatprep.mubr.bf16.mxu0 %v2030_v50 }
  0xae   : > { %964 = vmatmul.mubr.bf16.gmra.mrb[16].mxu0 %v2032_v51 }
  0xaf   : > { %973 = vmatprep.mubr.bf16.mxu0 %v2033_v52 }
  0xb6   : > { %974 = vmatmul.mubr.bf16.gmra.mrb[20].mxu0 %v2035_v53 }
  0xb7   : > { %983 = vmatprep.mubr.bf16.mxu0 %v2036_v54 }
  0xbe   : > { %984 = vmatmul.mubr.bf16.gmra.mrb[24].mxu0 %v2038_v55 }
  0xbf   : > { %993 = vmatprep.mubr.bf16.mxu0 %v2039_v56 }
  0xc6   : > { %994 = vmatmul.mubr.bf16.gmra.mrb[28].mxu0 %v2041_v57 }
 0x161   : > { %v925_v9 = vpop.f32.mrb[0].mxu0 }
 0x162   : > { %v1016_v11 = vmul.f32 %v2567_v6, %v925_v9  ;;  %v927_v12 = vpop.f32.mrb[1].mxu0 }
 0x163   : > { %v1017_v13 = vmul.f32 %v2570_v7, %v927_v12  ;;  %v929_v14 = vpop.f32.mrb[2].mxu0 }
 0x164   : > { %v1061_v15 = vadd.f32 %v2573_v8, %v1016_v11  ;;  %v1018_v16 = vmul.f32 %v2567_v6, %v929_v14  ;;  %v931_v17 = vpop.f32.mrb[3].mxu0 }
 0x165   : > { %v1019_v18 = vmul.f32 %v2570_v7, %v931_v17  ;;  %v1062_v19 = vadd.f32 %v2576_v10, %v1017_v13 }
 0x166   : > { %v1063_v20 = vadd.f32 %v2573_v8, %v1018_v16  ;;  %v1093_v22 = vmax.f32 %v1061_v15, 0.0 }
 0x167   : > { %v1064_v21 = vadd.f32 %v2576_v10, %v1019_v18  ;;  %v1094_v25 = vmax.f32 %v1062_v19, 0.0 }
 0x168   : > { %v1095_v23 = vmax.f32 %v1063_v20, 0.0 }
 0x169   : > { %v935_v24 = vpop.f32.mrb[4].mxu0  ;;  %v1096_v26 = vmax.f32 %v1064_v21, 0.0 }
 0x16a   : > { %v1020_v27 = vmul.f32 %v2567_v6, %v935_v24  ;;  %v937_v28 = vpop.f32.mrb[5].mxu0  ;;  %v1125_v29 = vpack.c.bf16 %v1095_v23, %v1093_v22 }
 0x16b   : > { %v1021_v30 = vmul.f32 %v2570_v7, %v937_v28  ;;  %v939_v31 = vpop.f32.mrb[6].mxu0  ;;  %v1126_v32 = vpack.c.bf16 %v1096_v26, %v1094_v25 }
 0x16c   : > { %v1065_v33 = vadd.f32 %v2573_v8, %v1020_v27  ;;  %v1022_v34 = vmul.f32 %v2567_v6, %v939_v31  ;;  %v941_v35 = vpop.f32.mrb[7].mxu0 }
 0x16d   : > { %v1066_v36 = vadd.f32 %v2576_v10, %v1021_v30  ;;  %v1023_v37 = vmul.f32 %v2570_v7, %v941_v35  ;;  %1365 = vmatprep.mubr.bf16.mxu1 %v1126_v32 }
 0x16e   : > { %v1067_v38 = vadd.f32 %v2573_v8, %v1022_v34  ;;  %1366 = vmatmul.mubr.bf16.vlgmr.msra.gmra.mrb[0].mxu1 %v1125_v29  ;;  %v1097_v40 = vmax.f32 %v1065_v33, 0.0 }
 0x16f   : > { %v1068_v39 = vadd.f32 %v2576_v10, %v1023_v37  ;;  %v1098_v42 = vmax.f32 %v1066_v36, 0.0 }
 0x170   : > { %v1099_v41 = vmax.f32 %v1067_v38, 0.0 }
 0x171   : > { %v1100_v43 = vmax.f32 %v1068_v39, 0.0  ;;  %v945_v44 = vpop.f32.mrb[8].mxu0 }
 0x172   : > { %v1024_v45 = vmul.f32 %v2567_v6, %v945_v44  ;;  %v947_v46 = vpop.f32.mrb[9].mxu0  ;;  %v1127_v47 = vpack.c.bf16 %v1099_v41, %v1097_v40 }
 0x173   : > { %v1025_v48 = vmul.f32 %v2570_v7, %v947_v46  ;;  %v949_v49 = vpop.f32.mrb[10].mxu0  ;;  %v1128_v50 = vpack.c.bf16 %v1100_v43, %v1098_v42 }
 0x174   : > { %v1069_v51 = vadd.f32 %v2573_v8, %v1024_v45  ;;  %v1026_v52 = vmul.f32 %v2567_v6, %v949_v49  ;;  %v951_v53 = vpop.f32.mrb[11].mxu0 }
 0x175   : > { %v1070_v54 = vadd.f32 %v2576_v10, %v1025_v48  ;;  %v1027_v55 = vmul.f32 %v2570_v7, %v951_v53  ;;  %1375 = vmatprep.mubr.bf16.mxu1 %v1128_v50 }
 0x176   : > { %v1071_v56 = vadd.f32 %v2573_v8, %v1026_v52  ;;  %1376 = vmatmul.mubr.bf16.gmra.mrb[4].mxu1 %v1127_v47  ;;  %v1101_v58 = vmax.f32 %v1069_v51, 0.0 }
 0x177   : > { %v1072_v57 = vadd.f32 %v2576_v10, %v1027_v55  ;;  %v1102_v60 = vmax.f32 %v1070_v54, 0.0 }
 0x178   : > { %v1103_v59 = vmax.f32 %v1071_v56, 0.0 }
 0x179   : > { %v1104_v61 = vmax.f32 %v1072_v57, 0.0  ;;  %v955_v62 = vpop.f32.mrb[12].mxu0 }
 0x17a   : > { %v1028_v63 = vmul.f32 %v2567_v6, %v955_v62  ;;  %v957_v0 = vpop.f32.mrb[13].mxu0  ;;  %v1129_v1 = vpack.c.bf16 %v1103_v59, %v1101_v58 }
 0x17b   : > { %v1029_v3 = vmul.f32 %v2570_v7, %v957_v0  ;;  %v959_v5 = vpop.f32.mrb[14].mxu0  ;;  %v1130_v9 = vpack.c.bf16 %v1104_v61, %v1102_v60 }
 0x17c   : > { %v1073_v11 = vadd.f32 %v2573_v8, %v1028_v63  ;;  %v1030_v12 = vmul.f32 %v2567_v6, %v959_v5  ;;  %v961_v13 = vpop.f32.mrb[15].mxu0 }
 0x17d   : > { %v1074_v14 = vadd.f32 %v2576_v10, %v1029_v3  ;;  %v1031_v15 = vmul.f32 %v2570_v7, %v961_v13  ;;  %1385 = vmatprep.mubr.bf16.mxu1 %v1130_v9 }
 0x17e   : > { %v1075_v16 = vadd.f32 %v2573_v8, %v1030_v12  ;;  %1386 = vmatmul.mubr.bf16.gmra.mrb[8].mxu1 %v1129_v1  ;;  %v1105_v18 = vmax.f32 %v1073_v11, 0.0 }
 0x17f   : > { %v1076_v17 = vadd.f32 %v2576_v10, %v1031_v15  ;;  %v1106_v20 = vmax.f32 %v1074_v14, 0.0 }
 0x180   : > { %v1107_v19 = vmax.f32 %v1075_v16, 0.0 }
 0x181   : > { %v1108_v21 = vmax.f32 %v1076_v17, 0.0  ;;  %v965_v22 = vpop.f32.mrb[16].mxu0 }
 0x182   : > { %v1032_v23 = vmul.f32 %v2567_v6, %v965_v22  ;;  %v967_v24 = vpop.f32.mrb[17].mxu0  ;;  %v1131_v25 = vpack.c.bf16 %v1107_v19, %v1105_v18 }
 0x183   : > { %v1033_v26 = vmul.f32 %v2570_v7, %v967_v24  ;;  %v969_v27 = vpop.f32.mrb[18].mxu0  ;;  %v1132_v28 = vpack.c.bf16 %v1108_v21, %v1106_v20 }
 0x184   : > { %v1077_v29 = vadd.f32 %v2573_v8, %v1032_v23  ;;  %v1034_v30 = vmul.f32 %v2567_v6, %v969_v27  ;;  %v971_v31 = vpop.f32.mrb[19].mxu0 }
 0x185   : > { %v1078_v32 = vadd.f32 %v2576_v10, %v1033_v26  ;;  %v1035_v33 = vmul.f32 %v2570_v7, %v971_v31  ;;  %1395 = vmatprep.mubr.bf16.mxu1 %v1132_v28 }
 0x186   : > { %v1079_v34 = vadd.f32 %v2573_v8, %v1034_v30  ;;  %1396 = vmatmul.mubr.bf16.gmra.mrb[12].mxu1 %v1131_v25  ;;  %v1109_v36 = vmax.f32 %v1077_v29, 0.0 }
 0x187   : > { %v1080_v35 = vadd.f32 %v2576_v10, %v1035_v33  ;;  %v1110_v38 = vmax.f32 %v1078_v32, 0.0 }
 0x188   : > { %v1111_v37 = vmax.f32 %v1079_v34, 0.0 }
 0x189   : > { %v1112_v39 = vmax.f32 %v1080_v35, 0.0  ;;  %v975_v40 = vpop.f32.mrb[20].mxu0 }
 0x18a   : > { %v1036_v41 = vmul.f32 %v2567_v6, %v975_v40  ;;  %v977_v42 = vpop.f32.mrb[21].mxu0  ;;  %v1133_v43 = vpack.c.bf16 %v1111_v37, %v1109_v36 }
 0x18b   : > { %v1037_v44 = vmul.f32 %v2570_v7, %v977_v42  ;;  %v979_v45 = vpop.f32.mrb[22].mxu0  ;;  %v1134_v46 = vpack.c.bf16 %v1112_v39, %v1110_v38 }
 0x18c   : > { %v1081_v47 = vadd.f32 %v2573_v8, %v1036_v41  ;;  %v1038_v48 = vmul.f32 %v2567_v6, %v979_v45  ;;  %v981_v49 = vpop.f32.mrb[23].mxu0 }
 0x18d   : > { %v1082_v50 = vadd.f32 %v2576_v10, %v1037_v44  ;;  %v1039_v51 = vmul.f32 %v2570_v7, %v981_v49  ;;  %1405 = vmatprep.mubr.bf16.mxu1 %v1134_v46 }
 0x18e   : > { %v1083_v52 = vadd.f32 %v2573_v8, %v1038_v48  ;;  %1406 = vmatmul.mubr.bf16.gmra.mrb[16].mxu1 %v1133_v43  ;;  %v1113_v54 = vmax.f32 %v1081_v47, 0.0 }
 0x18f   : > { %v1084_v53 = vadd.f32 %v2576_v10, %v1039_v51  ;;  %v1114_v56 = vmax.f32 %v1082_v50, 0.0 }
 0x190   : > { %v1115_v55 = vmax.f32 %v1083_v52, 0.0 }
 0x191   : > { %v1116_v57 = vmax.f32 %v1084_v53, 0.0  ;;  %v985_v58 = vpop.f32.mrb[24].mxu0 }
 0x192   : > { %v1040_v59 = vmul.f32 %v2567_v6, %v985_v58  ;;  %v987_v60 = vpop.f32.mrb[25].mxu0  ;;  %v1135_v61 = vpack.c.bf16 %v1115_v55, %v1113_v54 }
 0x193   : > { %v1041_v62 = vmul.f32 %v2570_v7, %v987_v60  ;;  %v989_v63 = vpop.f32.mrb[26].mxu0  ;;  %v1136_v0 = vpack.c.bf16 %v1116_v57, %v1114_v56 }
 0x194   : > { %v1085_v1 = vadd.f32 %v2573_v8, %v1040_v59  ;;  %v1042_v3 = vmul.f32 %v2567_v6, %v989_v63  ;;  %v991_v5 = vpop.f32.mrb[27].mxu0 }
 0x195   : > { %v1086_v9 = vadd.f32 %v2576_v10, %v1041_v62  ;;  %v1043_v11 = vmul.f32 %v2570_v7, %v991_v5  ;;  %1415 = vmatprep.mubr.bf16.mxu1 %v1136_v0 }
 0x196   : > { %v1087_v12 = vadd.f32 %v2573_v8, %v1042_v3  ;;  %1416 = vmatmul.mubr.bf16.gmra.mrb[20].mxu1 %v1135_v61  ;;  %v1117_v14 = vmax.f32 %v1085_v1, 0.0 }
 0x197   : > { %v1088_v13 = vadd.f32 %v2576_v10, %v1043_v11  ;;  %v1118_v16 = vmax.f32 %v1086_v9, 0.0 }
 0x198   : > { %v1119_v15 = vmax.f32 %v1087_v12, 0.0 }
 0x199   : > { %v1120_v17 = vmax.f32 %v1088_v13, 0.0  ;;  %v995_v18 = vpop.f32.mrb[28].mxu0 }
 0x19a   : > { %v1044_v19 = vmul.f32 %v2567_v6, %v995_v18  ;;  %v997_v20 = vpop.f32.mrb[29].mxu0  ;;  %v1137_v21 = vpack.c.bf16 %v1119_v15, %v1117_v14 }
 0x19b   : > { %v1045_v22 = vmul.f32 %v2570_v7, %v997_v20  ;;  %v999_v23 = vpop.f32.mrb[30].mxu0  ;;  %v1138_v24 = vpack.c.bf16 %v1120_v17, %v1118_v16 }
 0x19c   : > { %v1089_v25 = vadd.f32 %v2573_v8, %v1044_v19  ;;  %v1046_v26 = vmul.f32 %v2567_v6, %v999_v23  ;;  %v1001_v27 = vpop.f32.mrb[31].mxu0  ;;  %v1814_v6 = vld [vmem:[%s2816_s3 + $0x2] ss:$4 sm:$0x3] }
 0x19d   : > { %v1090_v28 = vadd.f32 %v2576_v10, %v1045_v22  ;;  %v1047_v29 = vmul.f32 %v2570_v7, %v1001_v27  ;;  %1425 = vmatprep.mubr.bf16.mxu1 %v1138_v24  ;;  %v1815_v7 = vld [vmem:[%s2816_s3 + $0x3] ss:$4 sm:$0x3] }
 0x19e   : > { %v1091_v30 = vadd.f32 %v2573_v8, %v1046_v26  ;;  %1426 = vmatmul.mubr.bf16.gmra.mrb[24].mxu1 %v1137_v21  ;;  %v1121_v32 = vmax.f32 %v1089_v25, 0.0  ;;  %v2649_v8 = vrot.slane %v1814_v6, %v2556_v2  ;;  %v2656_v38 = vrot.slane %v1815_v7, %v2556_v2 }
 0x19f   : > { %v1092_v31 = vadd.f32 %v2576_v10, %v1047_v29  ;;  %v1122_v34 = vmax.f32 %v1090_v28, 0.0  ;;  %v2653_v10 = vrot.slane %v1814_v6, %v2561_v4  ;;  %v2659_v40 = vrot.slane %v1815_v7, %v2561_v4 }
 0x1a0   : > { %v1123_v33 = vmax.f32 %v1091_v30, 0.0 }
 0x1a1   : > { %v1124_v35 = vmax.f32 %v1092_v31, 0.0 }
 0x1a2   : > { %v1139_v36 = vpack.c.bf16 %v1123_v33, %v1121_v32 }
 0x1a3   : > { %v1140_v37 = vpack.c.bf16 %v1124_v35, %v1122_v34 }
 0x1a5   : > { %1435 = vmatprep.mubr.bf16.mxu1 %v1140_v37 }
 0x1a6   : > { %1436 = vmatmul.mubr.bf16.gmra.mrb[28].mxu1 %v1139_v36 }
 0x241   : > { %v1367_v39 = vpop.f32.mrb[0].mxu1 }
 0x242   : > { %v1459_v41 = vmul.f32 %v2649_v8, %v1367_v39  ;;  %v1369_v42 = vpop.f32.mrb[1].mxu1 }
 0x243   : > { %v1460_v43 = vmul.f32 %v2653_v10, %v1369_v42  ;;  %v1371_v44 = vpop.f32.mrb[2].mxu1 }
 0x244   : > { %v1504_v45 = vadd.f32 %v2656_v38, %v1459_v41  ;;  %v1461_v46 = vmul.f32 %v2649_v8, %v1371_v44  ;;  %v1373_v47 = vpop.f32.mrb[3].mxu1 }
 0x245   : > { %v1505_v2 = vadd.f32 %v2659_v40, %v1460_v43  ;;  %v1462_v48 = vmul.f32 %v2653_v10, %v1373_v47 }
 0x246   : > { %v1536_v49 = vmax.f32 %v1504_v45, 0.0  ;;  %v1506_v4 = vadd.f32 %v2656_v38, %v1461_v46 }
 0x247   : > { %v1537_v50 = vmax.f32 %v1505_v2, 0.0  ;;  %v1507_v51 = vadd.f32 %v2659_v40, %v1462_v48 }
 0x248   : > { %1568 = vst [vmem:[%s2671_s20] sm:$0xff] %v1536_v49  ;;  %v1538_v52 = vmax.f32 %v1506_v4, 0.0 }
 0x249   : > { %1569 = vst [vmem:[%s2671_s20 + $0x8] sm:$0xff] %v1537_v50  ;;  %v1539_v53 = vmax.f32 %v1507_v51, 0.0  ;;  %v1377_v54 = vpop.f32.mrb[4].mxu1 }
 0x24a   : > { %1570 = vst [vmem:[%s2671_s20 + $0x10] sm:$0xff] %v1538_v52  ;;  %v1463_v55 = vmul.f32 %v2649_v8, %v1377_v54  ;;  %v1379_v56 = vpop.f32.mrb[5].mxu1 }
 0x24b   : > { %1571 = vst [vmem:[%s2671_s20 + $0x18] sm:$0xff] %v1539_v53  ;;  %v1464_v57 = vmul.f32 %v2653_v10, %v1379_v56  ;;  %v1381_v58 = vpop.f32.mrb[6].mxu1 }
 0x24c   : > { %v1508_v59 = vadd.f32 %v2656_v38, %v1463_v55  ;;  %v1465_v60 = vmul.f32 %v2649_v8, %v1381_v58  ;;  %v1383_v61 = vpop.f32.mrb[7].mxu1 }
 0x24d   : > { %v1509_v62 = vadd.f32 %v2659_v40, %v1464_v57  ;;  %v1466_v63 = vmul.f32 %v2653_v10, %v1383_v61 }
 0x24e   : > { %v1540_v0 = vmax.f32 %v1508_v59, 0.0  ;;  %v1510_v1 = vadd.f32 %v2656_v38, %v1465_v60 }
 0x24f   : > { %v1541_v3 = vmax.f32 %v1509_v62, 0.0  ;;  %v1511_v5 = vadd.f32 %v2659_v40, %v1466_v63 }
 0x250   : > { %1572 = vst [vmem:[%s2671_s20 + $0x20] sm:$0xff] %v1540_v0  ;;  %v1542_v9 = vmax.f32 %v1510_v1, 0.0 }
 0x251   : > { %1573 = vst [vmem:[%s2671_s20 + $0x28] sm:$0xff] %v1541_v3  ;;  %v1543_v11 = vmax.f32 %v1511_v5, 0.0  ;;  %v1387_v12 = vpop.f32.mrb[8].mxu1 }
 0x252   : > { %1574 = vst [vmem:[%s2671_s20 + $0x30] sm:$0xff] %v1542_v9  ;;  %v1467_v13 = vmul.f32 %v2649_v8, %v1387_v12  ;;  %v1389_v14 = vpop.f32.mrb[9].mxu1 }
 0x253   : > { %1575 = vst [vmem:[%s2671_s20 + $0x38] sm:$0xff] %v1543_v11  ;;  %v1468_v15 = vmul.f32 %v2653_v10, %v1389_v14  ;;  %v1391_v16 = vpop.f32.mrb[10].mxu1 }
 0x254   : > { %v1512_v17 = vadd.f32 %v2656_v38, %v1467_v13  ;;  %v1469_v18 = vmul.f32 %v2649_v8, %v1391_v16  ;;  %v1393_v19 = vpop.f32.mrb[11].mxu1 }
 0x255   : > { %v1513_v20 = vadd.f32 %v2659_v40, %v1468_v15  ;;  %v1470_v21 = vmul.f32 %v2653_v10, %v1393_v19 }
 0x256   : > { %v1544_v22 = vmax.f32 %v1512_v17, 0.0  ;;  %v1514_v23 = vadd.f32 %v2656_v38, %v1469_v18 }
 0x257   : > { %v1545_v24 = vmax.f32 %v1513_v20, 0.0  ;;  %v1515_v25 = vadd.f32 %v2659_v40, %v1470_v21 }
 0x258   : > { %1576 = vst [vmem:[%s2671_s20 + $0x40] sm:$0xff] %v1544_v22  ;;  %v1546_v26 = vmax.f32 %v1514_v23, 0.0 }
 0x259   : > { %1577 = vst [vmem:[%s2671_s20 + $0x48] sm:$0xff] %v1545_v24  ;;  %v1547_v27 = vmax.f32 %v1515_v25, 0.0  ;;  %v1397_v28 = vpop.f32.mrb[12].mxu1 }
 0x25a   : > { %1578 = vst [vmem:[%s2671_s20 + $0x50] sm:$0xff] %v1546_v26  ;;  %v1471_v29 = vmul.f32 %v2649_v8, %v1397_v28  ;;  %v1399_v30 = vpop.f32.mrb[13].mxu1 }
 0x25b   : > { %1579 = vst [vmem:[%s2671_s20 + $0x58] sm:$0xff] %v1547_v27  ;;  %v1472_v31 = vmul.f32 %v2653_v10, %v1399_v30  ;;  %v1401_v32 = vpop.f32.mrb[14].mxu1 }
 0x25c   : > { %v1516_v33 = vadd.f32 %v2656_v38, %v1471_v29  ;;  %v1473_v34 = vmul.f32 %v2649_v8, %v1401_v32  ;;  %v1403_v35 = vpop.f32.mrb[15].mxu1 }
 0x25d   : > { %v1517_v36 = vadd.f32 %v2659_v40, %v1472_v31  ;;  %v1474_v37 = vmul.f32 %v2653_v10, %v1403_v35 }
 0x25e   : > { %v1548_v6 = vmax.f32 %v1516_v33, 0.0  ;;  %v1518_v7 = vadd.f32 %v2656_v38, %v1473_v34 }
 0x25f   : > { %v1549_v39 = vmax.f32 %v1517_v36, 0.0  ;;  %v1519_v41 = vadd.f32 %v2659_v40, %v1474_v37 }
 0x260   : > { %1580 = vst [vmem:[%s2671_s20 + $0x60] sm:$0xff] %v1548_v6  ;;  %v1550_v42 = vmax.f32 %v1518_v7, 0.0 }
 0x261   : > { %1581 = vst [vmem:[%s2671_s20 + $0x68] sm:$0xff] %v1549_v39  ;;  %v1551_v43 = vmax.f32 %v1519_v41, 0.0  ;;  %v1407_v44 = vpop.f32.mrb[16].mxu1 }
 0x262   : > { %1582 = vst [vmem:[%s2671_s20 + $0x70] sm:$0xff] %v1550_v42  ;;  %v1475_v45 = vmul.f32 %v2649_v8, %v1407_v44  ;;  %v1409_v46 = vpop.f32.mrb[17].mxu1 }
 0x263   : > { %1583 = vst [vmem:[%s2671_s20 + $0x78] sm:$0xff] %v1551_v43  ;;  %v1476_v47 = vmul.f32 %v2653_v10, %v1409_v46  ;;  %v1411_v2 = vpop.f32.mrb[18].mxu1 }
 0x264   : > { %v1520_v48 = vadd.f32 %v2656_v38, %v1475_v45  ;;  %v1477_v49 = vmul.f32 %v2649_v8, %v1411_v2  ;;  %v1413_v4 = vpop.f32.mrb[19].mxu1 }
 0x265   : > { %v1521_v50 = vadd.f32 %v2659_v40, %v1476_v47  ;;  %v1478_v51 = vmul.f32 %v2653_v10, %v1413_v4 }
 0x266   : > { %v1552_v52 = vmax.f32 %v1520_v48, 0.0  ;;  %v1522_v53 = vadd.f32 %v2656_v38, %v1477_v49 }
 0x267   : > { %v1553_v54 = vmax.f32 %v1521_v50, 0.0  ;;  %v1523_v55 = vadd.f32 %v2659_v40, %v1478_v51 }
 0x268   : > { %1584 = vst [vmem:[%s2671_s20 + $0x80] sm:$0xff] %v1552_v52  ;;  %v1554_v56 = vmax.f32 %v1522_v53, 0.0 }
 0x269   : > { %1585 = vst [vmem:[%s2671_s20 + $0x88] sm:$0xff] %v1553_v54  ;;  %v1555_v57 = vmax.f32 %v1523_v55, 0.0  ;;  %v1417_v58 = vpop.f32.mrb[20].mxu1 }
 0x26a   : > { %1586 = vst [vmem:[%s2671_s20 + $0x90] sm:$0xff] %v1554_v56  ;;  %v1479_v59 = vmul.f32 %v2649_v8, %v1417_v58  ;;  %v1419_v60 = vpop.f32.mrb[21].mxu1 }
 0x26b   : > { %1587 = vst [vmem:[%s2671_s20 + $0x98] sm:$0xff] %v1555_v57  ;;  %v1480_v61 = vmul.f32 %v2653_v10, %v1419_v60  ;;  %v1421_v62 = vpop.f32.mrb[22].mxu1 }
 0x26c   : > { %v1524_v63 = vadd.f32 %v2656_v38, %v1479_v59  ;;  %v1481_v0 = vmul.f32 %v2649_v8, %v1421_v62  ;;  %v1423_v1 = vpop.f32.mrb[23].mxu1 }
 0x26d   : > { %v1525_v3 = vadd.f32 %v2659_v40, %v1480_v61  ;;  %v1482_v5 = vmul.f32 %v2653_v10, %v1423_v1 }
 0x26e   : > { %v1556_v9 = vmax.f32 %v1524_v63, 0.0  ;;  %v1526_v11 = vadd.f32 %v2656_v38, %v1481_v0 }
 0x26f   : > { %v1557_v12 = vmax.f32 %v1525_v3, 0.0  ;;  %v1527_v13 = vadd.f32 %v2659_v40, %v1482_v5 }
 0x270   : > { %1588 = vst [vmem:[%s2671_s20 + $0xa0] sm:$0xff] %v1556_v9  ;;  %v1558_v14 = vmax.f32 %v1526_v11, 0.0 }
 0x271   : > { %1589 = vst [vmem:[%s2671_s20 + $0xa8] sm:$0xff] %v1557_v12  ;;  %v1559_v15 = vmax.f32 %v1527_v13, 0.0  ;;  %v1427_v16 = vpop.f32.mrb[24].mxu1 }
 0x272   : > { %1590 = vst [vmem:[%s2671_s20 + $0xb0] sm:$0xff] %v1558_v14  ;;  %v1483_v17 = vmul.f32 %v2649_v8, %v1427_v16  ;;  %v1429_v18 = vpop.f32.mrb[25].mxu1 }
 0x273   : > { %1591 = vst [vmem:[%s2671_s20 + $0xb8] sm:$0xff] %v1559_v15  ;;  %v1484_v19 = vmul.f32 %v2653_v10, %v1429_v18  ;;  %v1431_v20 = vpop.f32.mrb[26].mxu1 }
 0x274   : > { %v1528_v21 = vadd.f32 %v2656_v38, %v1483_v17  ;;  %v1485_v22 = vmul.f32 %v2649_v8, %v1431_v20  ;;  %v1433_v23 = vpop.f32.mrb[27].mxu1 }
 0x275   : > { %v1529_v24 = vadd.f32 %v2659_v40, %v1484_v19  ;;  %v1486_v25 = vmul.f32 %v2653_v10, %v1433_v23 }
 0x276   : > { %v1560_v26 = vmax.f32 %v1528_v21, 0.0  ;;  %v1530_v27 = vadd.f32 %v2656_v38, %v1485_v22 }
 0x277   : > { %v1561_v28 = vmax.f32 %v1529_v24, 0.0  ;;  %v1531_v29 = vadd.f32 %v2659_v40, %v1486_v25 }
 0x278   : > { %1592 = vst [vmem:[%s2671_s20 + $0xc0] sm:$0xff] %v1560_v26  ;;  %v1562_v30 = vmax.f32 %v1530_v27, 0.0 }
 0x279   : > { %1593 = vst [vmem:[%s2671_s20 + $0xc8] sm:$0xff] %v1561_v28  ;;  %v1563_v31 = vmax.f32 %v1531_v29, 0.0  ;;  %v1437_v32 = vpop.f32.mrb[28].mxu1 }
 0x27a   : > { %1594 = vst [vmem:[%s2671_s20 + $0xd0] sm:$0xff] %v1562_v30  ;;  %v1487_v33 = vmul.f32 %v2649_v8, %v1437_v32  ;;  %v1439_v34 = vpop.f32.mrb[29].mxu1 }
 0x27b   : > { %1595 = vst [vmem:[%s2671_s20 + $0xd8] sm:$0xff] %v1563_v31  ;;  %v1488_v35 = vmul.f32 %v2653_v10, %v1439_v34  ;;  %v1441_v36 = vpop.f32.mrb[30].mxu1 }
 0x27c   : > { %v1532_v37 = vadd.f32 %v2656_v38, %v1487_v33  ;;  %v1489_v6 = vmul.f32 %v2649_v8, %v1441_v36  ;;  %v1443_v7 = vpop.f32.mrb[31].mxu1 }
 0x27d   : > { %v1533_v39 = vadd.f32 %v2659_v40, %v1488_v35  ;;  %v1490_v41 = vmul.f32 %v2653_v10, %v1443_v7 }
 0x27e   : > { %v1564_v42 = vmax.f32 %v1532_v37, 0.0  ;;  %v1534_v43 = vadd.f32 %v2656_v38, %v1489_v6 }
 0x27f   : > { %v1565_v44 = vmax.f32 %v1533_v39, 0.0  ;;  %v1535_v45 = vadd.f32 %v2659_v40, %v1490_v41 }
 0x280   : > { %1596 = vst [vmem:[%s2671_s20 + $0xe0] sm:$0xff] %v1564_v42  ;;  %v1566_v46 = vmax.f32 %v1534_v43, 0.0 }
 0x281   : > { %1597 = vst [vmem:[%s2671_s20 + $0xe8] sm:$0xff] %v1565_v44  ;;  %v1567_v8 = vmax.f32 %v1535_v45, 0.0 }
 0x282   : > { %1598 = vst [vmem:[%s2671_s20 + $0xf0] sm:$0xff] %v1566_v46 }
 0x283   : > { %1599 = vst [vmem:[%s2671_s20 + $0xf8] sm:$0xff] %v1567_v8 }
 0x284   : > { %2103 = shalt.err (!%p2100_p3)
}
 0x285   : > { %s2104_s6 = scalar_lea.hbm %s2763_s27, 4096  ;;  %s2108_s9 = scalar_lea.hbm %s2817_s4, 8192 }
 0x286   : > { %p2105_p4 = scmp.ne.s32.totalorder %s2763_s27, %s2104_s6  ;;  %p2109_p9 = scmp.lt.u32.totalorder %s2763_s27, %s2817_s4 }
 0x287   : > { %p2110_p10 = scmp.lt.u32.totalorder %s2108_s9, %s2104_s6  ;;  %p2112_p12 = scmp.lt.u32.totalorder %s2104_s6, %s2763_s27 }
 0x288   : > { %p2106_p7 = pnand %p2105_p4, %p2220_p5 }
 0x289   : > { %p2111_p11 = por %p2110_p10, %p2109_p9 }
 0x28a   : > { %p2107_p8 = pneg %p2106_p7 }
 0x28b   : > { %p2113_p13 = por %p2112_p12, %p2111_p11 }
 0x28d   : > { %p2114_p0 = pnand %p2113_p13, %p2107_p8 }
 0x28f   : > { %2117 = shalt.err (!%p2114_p0)
}
 0x290   : > { %s2155_s14 = smov 256   ;;  %s2156_s20 = smov 16  }
 0x291   : > { %1857 = dma.vmem_to_hbm [thread:$0]  (%p2220_p5), %s2765_s11, 4096, %s2763_s27, %s2772_s19, %s2155_s14, %s2155_s14, %s2156_s20  }
 0x292 PF: > { %p1863_p1 = scmp.ge.s32.totalorder %s2152_s18, 2  ;;  %s1630_s22 = sand.u32 1, %s2140_s15  }
 0x293   : > { %s1631_s13 = scalar_lea.sflag [#allocation3], %s1630_s22 }
 0x294   : > { %p1860_p2 = pnand %p1863_p1, %p2224_p6 }
 0x296   : > { %2135 = dma.done.wait (!%p1860_p2), %s1631_s13, 4096  }
 0x297   : > { %2137 = vsyncadd (!%p1860_p2), %s1631_s13, 4294963200  ;;  %p14_p3 = scmp.ge.s32.totalorder %s2207_s21, 4   ;;  %s2820_s15 = smov %s2144_s16 }
 0x298   : > { %s2821_s16 = smov %s2148_s17  ;;  %s2822_s17 = smov %s2218_s24 }
 0x299   : > { %s2823_s18 = smov %s2207_s21  ;;  %16 = sbr.rel (!%p14_p3) target bundleno = 3 (0x3), region = 74 }
 0x2a0   :  { %1636 = vsyncpa [#allocation3], 1 }
 0x2a1   :  { %1638 = vsyncpa [#allocation3 + $0x1], 1 }

</bundles_post_ra>
